<compile_context>
chip_gen: v7x
topology: tpu7x:2x2x1
jax: 0.10.0
libtpu: 0.0.40
codegen_flags: <defaults>
</compile_context>

<pallas_src>
import functools
import numpy as np
import jax
import jax.numpy as jnp
from jax.experimental import pallas as pl
from jax.experimental.pallas import tpu as pltpu

# ----- small, forward-consistent config (scaled-down ViT) -----
IMG = 32          # small spatial size (divisible by patch=8)
PATCH = 8         # vit_base_patch8 -> patch size 8
IN_CHANS = 3
EMBED_DIM = 32
DEPTH = 2
NUM_HEADS = 4
MLP_RATIO = 4
BACKBONE_CLASSES = 1000   # timm head output, feeds fc1
NUM_CLASSES = 10          # TODO(synk): len(class_names) undefined in the reference module; using 10.
LN_EPS = 1e-6

GH = IMG // PATCH
NUM_PATCHES = GH * GH                    # 16
SEQ = NUM_PATCHES + 1                    # 17 tokens (cls + patches)
PATCH_DIM = IN_CHANS * PATCH * PATCH     # 192
HIDDEN = MLP_RATIO * EMBED_DIM           # 128


# ---------------- in-kernel helpers (traced inside the Pallas kernel) ----------------

def _layernorm(x, g, b):
    # x: (M, D) f32 ; g/b: (1, D)
    mean = jnp.mean(x, axis=-1, keepdims=True)
    var = jnp.mean((x - mean) ** 2, axis=-1, keepdims=True)
    return (x - mean) * jax.lax.rsqrt(var + LN_EPS) * g + b


def _gelu(x):
    # exact (erf) GELU, like nn.GELU default used by the timm ViT MLP
    return 0.5 * x * (1.0 + jax.lax.erf(x * (1.0 / np.sqrt(2.0))))


# ---------------- fused forward kernel (one batch element per grid step) ----------------

def fused_vit_kernel(patches_ref, patch_w_ref, pos_bias_ref,
                     ln1_g_ref, ln1_b_ref, qkv_w_ref, qkv_b_ref,
                     proj_w_ref, proj_b_ref, ln2_g_ref, ln2_b_ref,
                     mlp1_w_ref, mlp1_b_ref, mlp2_w_ref, mlp2_b_ref,
                     norm_g_ref, norm_b_ref, head_w_ref, head_b_ref,
                     o_ref, *, depth, num_heads):
    # --- patch embed + cls token + positional embedding ---
    # Row 0 of patches is all-zero, so row 0 of the matmul result is 0 and the
    # cls token comes entirely from pos_bias[0] (= cls_token + pos_embed[0]).
    p = patches_ref[0].astype(jnp.float32)                               # (T, K)
    x = jnp.dot(p, patch_w_ref[...],
                preferred_element_type=jnp.float32) + pos_bias_ref[...]  # (T, D)

    T, D = x.shape
    dh = D // num_heads

    for d in range(depth):                       # static unroll over blocks
        # ---- attention branch ----
        h = _layernorm(x, ln1_g_ref[d], ln1_b_ref[d])
        qkv = jnp.dot(h, qkv_w_ref[d],
                      preferred_element_type=jnp.float32) + qkv_b_ref[d]  # (T, 3D)
        proj_w = proj_w_ref[d]                                            # (D, D)

        attn = jnp.zeros((T, D), jnp.float32)
        for hd in range(num_heads):              # static unroll over heads
            lo = hd * dh
            qh = qkv[:, lo:lo + dh]              # 1/sqrt(dh) already folded into q weights
            kh = qkv[:, D + lo:D + lo + dh]
            vh = qkv[:, 2 * D + lo:2 * D + lo + dh]
            s = jax.lax.dot_general(qh, kh, (((1,), (1,)), ((), ())),
                                    preferred_element_type=jnp.float32)   # (T, T)
            s = s - jnp.max(s, axis=-1, keepdims=True)
            e = jnp.exp(s)
            pmat = e / jnp.sum(e, axis=-1, keepdims=True)                 # exact softmax
            oh = jnp.dot(pmat, vh, preferred_element_type=jnp.float32)    # (T, dh)
            # fold output projection per head: a @ W = sum_h oh @ W[h*dh:(h+1)*dh]
            attn = attn + jnp.dot(oh, proj_w[lo:lo + dh, :],
                                  preferred_element_type=jnp.float32)
        x = x + attn + proj_b_ref[d]

        # ---- MLP branch ----
        h = _layernorm(x, ln2_g_ref[d], ln2_b_ref[d])
        h = jnp.dot(h, mlp1_w_ref[d],
                    preferred_element_type=jnp.float32) + mlp1_b_ref[d]
        h = _gelu(h)
        h = jnp.dot(h, mlp2_w_ref[d],
                    preferred_element_type=jnp.float32) + mlp2_b_ref[d]
        x = x + h

    # ---- final LayerNorm on the cls token + folded head/fc1/fc2/fc3 affine map ----
    cls = _layernorm(x[0:1, :], norm_g_ref[...], norm_b_ref[...])        # (1, D)
    out = jnp.dot(cls, head_w_ref[...],
                  preferred_element_type=jnp.float32) + head_b_ref[...]  # (1, N)
    o_ref[0] = out.astype(o_ref.dtype)


# ---------------- wrapper: one pallas_call for the whole network ----------------

def model_forward(kparams, x):
    # x: (B, C, H, W)  NCHW
    B = x.shape[0]
    D, H, T, K, N = EMBED_DIM, HIDDEN, SEQ, PATCH_DIM, NUM_CLASSES

    # im2col for the patch conv (k = stride = PATCH); single XLA copy op, then
    # one zero row is prepended so the same matmul also yields the cls-token row.
    patches = x.reshape(B, IN_CHANS, GH, PATCH, GH, PATCH)
    patches = patches.transpose(0, 2, 4, 1, 3, 5).reshape(B, NUM_PATCHES, K)
    patches = jnp.pad(patches, ((0, 0), (1, 0), (0, 0)))                 # (B, T, K)

    def full(shape):
        n = len(shape)
        return pl.BlockSpec(shape, lambda bi, _n=n: (0,) * _n)

    out = pl.pallas_call(
        functools.partial(fused_vit_kernel, depth=DEPTH, num_heads=NUM_HEADS),
        out_shape=jax.ShapeDtypeStruct((B, 1, N), jnp.float32),
        grid=(B,),
        in_specs=[
            pl.BlockSpec((1, T, K), lambda bi: (bi, 0, 0)),  # patches (per batch element)
            full((K, D)),                                    # patch_w
            full((T, D)),                                    # pos_bias (cls+pos+patch_b folded)
            full((DEPTH, 1, D)), full((DEPTH, 1, D)),        # ln1 g/b
            full((DEPTH, D, 3 * D)), full((DEPTH, 1, 3 * D)),# qkv w/b (scale folded into q)
            full((DEPTH, D, D)), full((DEPTH, 1, D)),        # proj w/b
            full((DEPTH, 1, D)), full((DEPTH, 1, D)),        # ln2 g/b
            full((DEPTH, D, H)), full((DEPTH, 1, H)),        # mlp1 w/b
            full((DEPTH, H, D)), full((DEPTH, 1, D)),        # mlp2 w/b
            full((1, D)), full((1, D)),                      # final norm g/b
            full((D, N)), full((1, N)),                      # folded head w/b
        ],
        out_specs=pl.BlockSpec((1, 1, N), lambda bi: (bi, 0, 0)),
        compiler_params=pltpu.CompilerParams(dimension_semantics=("parallel",)),
    )(patches,
      kparams["patch_w"], kparams["pos_bias"],
      kparams["ln1_g"], kparams["ln1_b"],
      kparams["qkv_w"], kparams["qkv_b"],
      kparams["proj_w"], kparams["proj_b"],
      kparams["ln2_g"], kparams["ln2_b"],
      kparams["mlp1_w"], kparams["mlp1_b"],
      kparams["mlp2_w"], kparams["mlp2_b"],
      kparams["norm_g"], kparams["norm_b"],
      kparams["head_w"], kparams["head_b"])
    return out.reshape(B, N)


# ---------------- deterministic parameter init + one-time folding ----------------

def init_params(seed=42):
    keys = iter(jax.random.split(jax.random.PRNGKey(seed), 256))

    def nrm(shape, std=0.02):
        return std * jax.random.normal(next(keys), shape, jnp.float32)

    D = EMBED_DIM
    params = {
        "patch_w": nrm((PATCH_DIM, D)),
        "patch_b": jnp.zeros((D,), jnp.float32),
        "cls_token": nrm((1, 1, D)),
        "pos_embed": nrm((1, SEQ, D)),
        "blocks": [],
        "norm_g": jnp.ones((D,), jnp.float32),
        "norm_b": jnp.zeros((D,), jnp.float32),
        "head_w": nrm((D, BACKBONE_CLASSES)),
        "head_b": jnp.zeros((BACKBONE_CLASSES,), jnp.float32),
        "fc1_w": nrm((BACKBONE_CLASSES, 16)),
        "fc1_b": jnp.zeros((16,), jnp.float32),
        "fc2_w": nrm((16, 64)),
        "fc2_b": jnp.zeros((64,), jnp.float32),
        "fc3_w": nrm((64, NUM_CLASSES)),
        "fc3_b": jnp.zeros((NUM_CLASSES,), jnp.float32),
    }
    for _ in range(DEPTH):
        params["blocks"].append({
            "ln1_g": jnp.ones((D,), jnp.float32),
            "ln1_b": jnp.zeros((D,), jnp.float32),
            "qkv_w": nrm((D, 3 * D)),
            "qkv_b": jnp.zeros((3 * D,), jnp.float32),
            "proj_w": nrm((D, D)),
            "proj_b": jnp.zeros((D,), jnp.float32),
            "ln2_g": jnp.ones((D,), jnp.float32),
            "ln2_b": jnp.zeros((D,), jnp.float32),
            "mlp1_w": nrm((D, HIDDEN)),
            "mlp1_b": jnp.zeros((HIDDEN,), jnp.float32),
            "mlp2_w": nrm((HIDDEN, D)),
            "mlp2_b": jnp.zeros((D,), jnp.float32),
        })
    return params


def prepare_params(p):
    """One-time (outside jit) weight folding into the fused-kernel layout."""
    D = EMBED_DIM
    dh = D // NUM_HEADS
    scale = float(dh) ** -0.5

    # cls_token + pos_embed + patch bias folded into a single (T, D) additive term
    pos = p["pos_embed"][0]                                # (T, D)
    pos_bias = pos.at[0].add(p["cls_token"].reshape(D))
    pos_bias = pos_bias.at[1:].add(p["patch_b"])

    # head(1000) -> fc1 -> fc2 -> fc3 has no nonlinearity: fold to one (D, N) affine map
    w_fold = p["head_w"] @ p["fc1_w"] @ p["fc2_w"] @ p["fc3_w"]
    b_fold = ((p["head_b"] @ p["fc1_w"] + p["fc1_b"]) @ p["fc2_w"]
              + p["fc2_b"]) @ p["fc3_w"] + p["fc3_b"]

    blocks = p["blocks"]

    def stk(name, shape2d=None):
        a = jnp.stack([b[name] for b in blocks], axis=0)
        if shape2d is not None:
            a = a.reshape((DEPTH,) + shape2d)
        return a

    qkv_w = stk("qkv_w")                                    # (DEPTH, D, 3D)
    qkv_b = stk("qkv_b", (1, 3 * D))
    # fold the 1/sqrt(dh) attention scale into the Q third of qkv
    qkv_w = qkv_w.at[:, :, :D].multiply(scale)
    qkv_b = qkv_b.at[:, :, :D].multiply(scale)

    kparams = {
        "patch_w": p["patch_w"],
        "pos_bias": pos_bias,
        "ln1_g": stk("ln1_g", (1, D)), "ln1_b": stk("ln1_b", (1, D)),
        "qkv_w": qkv_w, "qkv_b": qkv_b,
        "proj_w": stk("proj_w"), "proj_b": stk("proj_b", (1, D)),
        "ln2_g": stk("ln2_g", (1, D)), "ln2_b": stk("ln2_b", (1, D)),
        "mlp1_w": stk("mlp1_w"), "mlp1_b": stk("mlp1_b", (1, HIDDEN)),
        "mlp2_w": stk("mlp2_w"), "mlp2_b": stk("mlp2_b", (1, D)),
        "norm_g": p["norm_g"].reshape(1, D), "norm_b": p["norm_b"].reshape(1, D),
        "head_w": w_fold, "head_b": b_fold.reshape(1, NUM_CLASSES),
    }
    return jax.tree_util.tree_map(lambda a: jnp.asarray(a, jnp.float32), kparams)


if __name__ == "__main__":
    raw = init_params(seed=42)
    kparams = prepare_params(raw)          # folded once, outside the jitted path
    x = jax.random.normal(jax.random.PRNGKey(0), (2, IN_CHANS, IMG, IMG), jnp.float32)
    fwd = jax.jit(model_forward)
    out = fwd(kparams, x)
    jax.block_until_ready(out)
    assert out.shape == (2, NUM_CLASSES), out.shape
    assert bool(jnp.all(jnp.isfinite(out)))
    print("KERNEL_OK")
</pallas_src>

<mosaic_0001>
module attributes {stable_mosaic.version = 11 : i64} {
  func.func @fused_vit_kernel(%arg0: i32, %arg1: memref<1x17x192xf32, #tpu.memory_space<vmem>>, %arg2: memref<192x32xf32, #tpu.memory_space<vmem>>, %arg3: memref<17x32xf32, #tpu.memory_space<vmem>>, %arg4: memref<2x1x32xf32, #tpu.memory_space<vmem>>, %arg5: memref<2x1x32xf32, #tpu.memory_space<vmem>>, %arg6: memref<2x32x96xf32, #tpu.memory_space<vmem>>, %arg7: memref<2x1x96xf32, #tpu.memory_space<vmem>>, %arg8: memref<2x32x32xf32, #tpu.memory_space<vmem>>, %arg9: memref<2x1x32xf32, #tpu.memory_space<vmem>>, %arg10: memref<2x1x32xf32, #tpu.memory_space<vmem>>, %arg11: memref<2x1x32xf32, #tpu.memory_space<vmem>>, %arg12: memref<2x32x128xf32, #tpu.memory_space<vmem>>, %arg13: memref<2x1x128xf32, #tpu.memory_space<vmem>>, %arg14: memref<2x128x32xf32, #tpu.memory_space<vmem>>, %arg15: memref<2x1x32xf32, #tpu.memory_space<vmem>>, %arg16: memref<1x32xf32, #tpu.memory_space<vmem>>, %arg17: memref<1x32xf32, #tpu.memory_space<vmem>>, %arg18: memref<32x10xf32, #tpu.memory_space<vmem>>, %arg19: memref<1x10xf32, #tpu.memory_space<vmem>>, %arg20: memref<1x1x10xf32, #tpu.memory_space<vmem>>) attributes {dimension_semantics = [#tpu.dimension_semantics<parallel>], iteration_bounds = array<i64: 2>, scalar_prefetch = 0 : i64, scratch_operands = 0 : i64, tpu.core_type = #tpu.core_type<tc>, window_params = [{transform_indices = @transform_0, window_bounds = array<i64: 1, 17, 192>}, {pipeline_mode = #tpu.pipeline_mode<synchronous>, transform_indices = @transform_1, window_bounds = array<i64: 192, 32>}, {pipeline_mode = #tpu.pipeline_mode<synchronous>, transform_indices = @transform_2, window_bounds = array<i64: 17, 32>}, {pipeline_mode = #tpu.pipeline_mode<synchronous>, transform_indices = @transform_3, window_bounds = array<i64: 2, 1, 32>}, {pipeline_mode = #tpu.pipeline_mode<synchronous>, transform_indices = @transform_4, window_bounds = array<i64: 2, 1, 32>}, {pipeline_mode = #tpu.pipeline_mode<synchronous>, transform_indices = @transform_5, window_bounds = array<i64: 2, 32, 96>}, {pipeline_mode = #tpu.pipeline_mode<synchronous>, transform_indices = @transform_6, window_bounds = array<i64: 2, 1, 96>}, {pipeline_mode = #tpu.pipeline_mode<synchronous>, transform_indices = @transform_7, window_bounds = array<i64: 2, 32, 32>}, {pipeline_mode = #tpu.pipeline_mode<synchronous>, transform_indices = @transform_8, window_bounds = array<i64: 2, 1, 32>}, {pipeline_mode = #tpu.pipeline_mode<synchronous>, transform_indices = @transform_9, window_bounds = array<i64: 2, 1, 32>}, {pipeline_mode = #tpu.pipeline_mode<synchronous>, transform_indices = @transform_10, window_bounds = array<i64: 2, 1, 32>}, {pipeline_mode = #tpu.pipeline_mode<synchronous>, transform_indices = @transform_11, window_bounds = array<i64: 2, 32, 128>}, {pipeline_mode = #tpu.pipeline_mode<synchronous>, transform_indices = @transform_12, window_bounds = array<i64: 2, 1, 128>}, {pipeline_mode = #tpu.pipeline_mode<synchronous>, transform_indices = @transform_13, window_bounds = array<i64: 2, 128, 32>}, {pipeline_mode = #tpu.pipeline_mode<synchronous>, transform_indices = @transform_14, window_bounds = array<i64: 2, 1, 32>}, {pipeline_mode = #tpu.pipeline_mode<synchronous>, transform_indices = @transform_15, window_bounds = array<i64: 1, 32>}, {pipeline_mode = #tpu.pipeline_mode<synchronous>, transform_indices = @transform_16, window_bounds = array<i64: 1, 32>}, {pipeline_mode = #tpu.pipeline_mode<synchronous>, transform_indices = @transform_17, window_bounds = array<i64: 32, 10>}, {pipeline_mode = #tpu.pipeline_mode<synchronous>, transform_indices = @transform_18, window_bounds = array<i64: 1, 10>}, {transform_indices = @transform_19, window_bounds = array<i64: 1, 1, 10>}]} {
    %c0 = arith.constant 0 : index
    %c0_0 = arith.constant 0 : index
    %c0_1 = arith.constant 0 : index
    %0 = vector.load %arg1[%c0, %c0_0, %c0_1] : memref<1x17x192xf32, #tpu.memory_space<vmem>>, vector<1x17x192xf32>
    %1 = vector.shape_cast %0 : vector<1x17x192xf32> to vector<17x192xf32>
    %c0_2 = arith.constant 0 : index
    %c0_3 = arith.constant 0 : index
    %2 = vector.load %arg2[%c0_2, %c0_3] : memref<192x32xf32, #tpu.memory_space<vmem>>, vector<192x32xf32>
    %cst = arith.constant dense<0.000000e+00> : vector<17x32xf32>
    %3 = tpu.matmul %1, %2, %cst {dimension_numbers = #tpu.dot_dimension_numbers<[1], [0], [0], [1], [0, 0, 1, 1], [], []>} : vector<17x192xf32>, vector<192x32xf32>, vector<17x32xf32> -> vector<17x32xf32>
    %c0_4 = arith.constant 0 : index
    %c0_5 = arith.constant 0 : index
    %4 = vector.load %arg3[%c0_4, %c0_5] : memref<17x32xf32, #tpu.memory_space<vmem>>, vector<17x32xf32>
    %5 = arith.addf %3, %4 : vector<17x32xf32>
    %c0_6 = arith.constant 0 : index
    %c0_7 = arith.constant 0 : index
    %c0_8 = arith.constant 0 : index
    %6 = vector.load %arg4[%c0_6, %c0_7, %c0_8] : memref<2x1x32xf32, #tpu.memory_space<vmem>>, vector<1x1x32xf32>
    %7 = vector.shape_cast %6 : vector<1x1x32xf32> to vector<1x32xf32>
    %c0_9 = arith.constant 0 : index
    %c0_10 = arith.constant 0 : index
    %c0_11 = arith.constant 0 : index
    %8 = vector.load %arg5[%c0_9, %c0_10, %c0_11] : memref<2x1x32xf32, #tpu.memory_space<vmem>>, vector<1x1x32xf32>
    %9 = vector.shape_cast %8 : vector<1x1x32xf32> to vector<1x32xf32>
    %cst_12 = arith.constant dense<0.000000e+00> : vector<17xf32>
    %10 = vector.multi_reduction <add>, %5, %cst_12 [1] : vector<17x32xf32> to vector<17xf32>
    %11 = vector.shape_cast %10 : vector<17xf32> to vector<17x1xf32>
    %cst_13 = arith.constant 3.200000e+01 : f32
    %12 = vector.broadcast %cst_13 : f32 to vector<17x1xf32>
    %13 = arith.divf %11, %12 : vector<17x1xf32>
    %14 = vector.broadcast %13 : vector<17x1xf32> to vector<17x32xf32>
    %15 = arith.subf %5, %14 : vector<17x32xf32>
    %16 = arith.mulf %15, %15 : vector<17x32xf32>
    %cst_14 = arith.constant dense<0.000000e+00> : vector<17xf32>
    %17 = vector.multi_reduction <add>, %16, %cst_14 [1] : vector<17x32xf32> to vector<17xf32>
    %18 = vector.shape_cast %17 : vector<17xf32> to vector<17x1xf32>
    %cst_15 = arith.constant 3.200000e+01 : f32
    %19 = vector.broadcast %cst_15 : f32 to vector<17x1xf32>
    %20 = arith.divf %18, %19 : vector<17x1xf32>
    %21 = vector.broadcast %13 : vector<17x1xf32> to vector<17x32xf32>
    %22 = arith.subf %5, %21 : vector<17x32xf32>
    %cst_16 = arith.constant 9.99999997E-7 : f32
    %23 = vector.broadcast %cst_16 : f32 to vector<17x1xf32>
    %24 = arith.addf %20, %23 : vector<17x1xf32>
    %25 = math.rsqrt %24 : vector<17x1xf32>
    %26 = vector.broadcast %25 : vector<17x1xf32> to vector<17x32xf32>
    %27 = arith.mulf %22, %26 : vector<17x32xf32>
    %28 = vector.broadcast %7 : vector<1x32xf32> to vector<17x32xf32>
    %29 = arith.mulf %27, %28 : vector<17x32xf32>
    %30 = vector.broadcast %9 : vector<1x32xf32> to vector<17x32xf32>
    %31 = arith.addf %29, %30 : vector<17x32xf32>
    %c0_17 = arith.constant 0 : index
    %c0_18 = arith.constant 0 : index
    %c0_19 = arith.constant 0 : index
    %32 = vector.load %arg6[%c0_17, %c0_18, %c0_19] : memref<2x32x96xf32, #tpu.memory_space<vmem>>, vector<1x32x96xf32>
    %33 = vector.shape_cast %32 : vector<1x32x96xf32> to vector<32x96xf32>
    %cst_20 = arith.constant dense<0.000000e+00> : vector<17x96xf32>
    %34 = tpu.matmul %31, %33, %cst_20 {dimension_numbers = #tpu.dot_dimension_numbers<[1], [0], [0], [1], [0, 0, 1, 1], [], []>} : vector<17x32xf32>, vector<32x96xf32>, vector<17x96xf32> -> vector<17x96xf32>
    %c0_21 = arith.constant 0 : index
    %c0_22 = arith.constant 0 : index
    %c0_23 = arith.constant 0 : index
    %35 = vector.load %arg7[%c0_21, %c0_22, %c0_23] : memref<2x1x96xf32, #tpu.memory_space<vmem>>, vector<1x1x96xf32>
    %36 = vector.shape_cast %35 : vector<1x1x96xf32> to vector<1x96xf32>
    %37 = vector.broadcast %36 : vector<1x96xf32> to vector<17x96xf32>
    %38 = arith.addf %34, %37 : vector<17x96xf32>
    %c0_24 = arith.constant 0 : index
    %c0_25 = arith.constant 0 : index
    %c0_26 = arith.constant 0 : index
    %39 = vector.load %arg8[%c0_24, %c0_25, %c0_26] : memref<2x32x32xf32, #tpu.memory_space<vmem>>, vector<1x32x32xf32>
    %40 = vector.shape_cast %39 : vector<1x32x32xf32> to vector<32x32xf32>
    %cst_27 = arith.constant 0.000000e+00 : f32
    %41 = vector.broadcast %cst_27 : f32 to vector<17x32xf32>
    %42 = vector.extract_strided_slice %38 {offsets = [0, 0], sizes = [17, 8], strides = [1, 1]} : vector<17x96xf32> to vector<17x8xf32>
    %43 = vector.extract_strided_slice %38 {offsets = [0, 32], sizes = [17, 8], strides = [1, 1]} : vector<17x96xf32> to vector<17x8xf32>
    %44 = vector.extract_strided_slice %38 {offsets = [0, 64], sizes = [17, 8], strides = [1, 1]} : vector<17x96xf32> to vector<17x8xf32>
    %cst_28 = arith.constant dense<0.000000e+00> : vector<17x17xf32>
    %45 = tpu.matmul %42, %43, %cst_28 {dimension_numbers = #tpu.dot_dimension_numbers<[1], [1], [0], [0], [0, 0, 1, 0], [], []>} : vector<17x8xf32>, vector<17x8xf32>, vector<17x17xf32> -> vector<17x17xf32>
    %cst_29 = arith.constant dense<0xFF800000> : vector<17xf32>
    %46 = vector.multi_reduction <maximumf>, %45, %cst_29 [1] : vector<17x17xf32> to vector<17xf32>
    %47 = vector.shape_cast %46 : vector<17xf32> to vector<17x1xf32>
    %48 = vector.broadcast %47 : vector<17x1xf32> to vector<17x17xf32>
    %49 = arith.subf %45, %48 : vector<17x17xf32>
    %50 = math.exp %49 : vector<17x17xf32>
    %cst_30 = arith.constant dense<0.000000e+00> : vector<17xf32>
    %51 = vector.multi_reduction <add>, %50, %cst_30 [1] : vector<17x17xf32> to vector<17xf32>
    %52 = vector.shape_cast %51 : vector<17xf32> to vector<17x1xf32>
    %53 = vector.broadcast %52 : vector<17x1xf32> to vector<17x17xf32>
    %54 = arith.divf %50, %53 : vector<17x17xf32>
    %cst_31 = arith.constant dense<0.000000e+00> : vector<17x8xf32>
    %55 = tpu.matmul %54, %44, %cst_31 {dimension_numbers = #tpu.dot_dimension_numbers<[1], [0], [0], [1], [0, 0, 1, 1], [], []>} : vector<17x17xf32>, vector<17x8xf32>, vector<17x8xf32> -> vector<17x8xf32>
    %56 = vector.extract_strided_slice %40 {offsets = [0, 0], sizes = [8, 32], strides = [1, 1]} : vector<32x32xf32> to vector<8x32xf32>
    %cst_32 = arith.constant dense<0.000000e+00> : vector<17x32xf32>
    %57 = tpu.matmul %55, %56, %cst_32 {dimension_numbers = #tpu.dot_dimension_numbers<[1], [0], [0], [1], [0, 0, 1, 1], [], []>} : vector<17x8xf32>, vector<8x32xf32>, vector<17x32xf32> -> vector<17x32xf32>
    %58 = arith.addf %41, %57 : vector<17x32xf32>
    %59 = vector.extract_strided_slice %38 {offsets = [0, 8], sizes = [17, 8], strides = [1, 1]} : vector<17x96xf32> to vector<17x8xf32>
    %60 = vector.extract_strided_slice %38 {offsets = [0, 40], sizes = [17, 8], strides = [1, 1]} : vector<17x96xf32> to vector<17x8xf32>
    %61 = vector.extract_strided_slice %38 {offsets = [0, 72], sizes = [17, 8], strides = [1, 1]} : vector<17x96xf32> to vector<17x8xf32>
    %cst_33 = arith.constant dense<0.000000e+00> : vector<17x17xf32>
    %62 = tpu.matmul %59, %60, %cst_33 {dimension_numbers = #tpu.dot_dimension_numbers<[1], [1], [0], [0], [0, 0, 1, 0], [], []>} : vector<17x8xf32>, vector<17x8xf32>, vector<17x17xf32> -> vector<17x17xf32>
    %cst_34 = arith.constant dense<0xFF800000> : vector<17xf32>
    %63 = vector.multi_reduction <maximumf>, %62, %cst_34 [1] : vector<17x17xf32> to vector<17xf32>
    %64 = vector.shape_cast %63 : vector<17xf32> to vector<17x1xf32>
    %65 = vector.broadcast %64 : vector<17x1xf32> to vector<17x17xf32>
    %66 = arith.subf %62, %65 : vector<17x17xf32>
    %67 = math.exp %66 : vector<17x17xf32>
    %cst_35 = arith.constant dense<0.000000e+00> : vector<17xf32>
    %68 = vector.multi_reduction <add>, %67, %cst_35 [1] : vector<17x17xf32> to vector<17xf32>
    %69 = vector.shape_cast %68 : vector<17xf32> to vector<17x1xf32>
    %70 = vector.broadcast %69 : vector<17x1xf32> to vector<17x17xf32>
    %71 = arith.divf %67, %70 : vector<17x17xf32>
    %cst_36 = arith.constant dense<0.000000e+00> : vector<17x8xf32>
    %72 = tpu.matmul %71, %61, %cst_36 {dimension_numbers = #tpu.dot_dimension_numbers<[1], [0], [0], [1], [0, 0, 1, 1], [], []>} : vector<17x17xf32>, vector<17x8xf32>, vector<17x8xf32> -> vector<17x8xf32>
    %73 = vector.extract_strided_slice %40 {offsets = [8, 0], sizes = [8, 32], strides = [1, 1]} : vector<32x32xf32> to vector<8x32xf32>
    %cst_37 = arith.constant dense<0.000000e+00> : vector<17x32xf32>
    %74 = tpu.matmul %72, %73, %cst_37 {dimension_numbers = #tpu.dot_dimension_numbers<[1], [0], [0], [1], [0, 0, 1, 1], [], []>} : vector<17x8xf32>, vector<8x32xf32>, vector<17x32xf32> -> vector<17x32xf32>
    %75 = arith.addf %58, %74 : vector<17x32xf32>
    %76 = vector.extract_strided_slice %38 {offsets = [0, 16], sizes = [17, 8], strides = [1, 1]} : vector<17x96xf32> to vector<17x8xf32>
    %77 = vector.extract_strided_slice %38 {offsets = [0, 48], sizes = [17, 8], strides = [1, 1]} : vector<17x96xf32> to vector<17x8xf32>
    %78 = vector.extract_strided_slice %38 {offsets = [0, 80], sizes = [17, 8], strides = [1, 1]} : vector<17x96xf32> to vector<17x8xf32>
    %cst_38 = arith.constant dense<0.000000e+00> : vector<17x17xf32>
    %79 = tpu.matmul %76, %77, %cst_38 {dimension_numbers = #tpu.dot_dimension_numbers<[1], [1], [0], [0], [0, 0, 1, 0], [], []>} : vector<17x8xf32>, vector<17x8xf32>, vector<17x17xf32> -> vector<17x17xf32>
    %cst_39 = arith.constant dense<0xFF800000> : vector<17xf32>
    %80 = vector.multi_reduction <maximumf>, %79, %cst_39 [1] : vector<17x17xf32> to vector<17xf32>
    %81 = vector.shape_cast %80 : vector<17xf32> to vector<17x1xf32>
    %82 = vector.broadcast %81 : vector<17x1xf32> to vector<17x17xf32>
    %83 = arith.subf %79, %82 : vector<17x17xf32>
    %84 = math.exp %83 : vector<17x17xf32>
    %cst_40 = arith.constant dense<0.000000e+00> : vector<17xf32>
    %85 = vector.multi_reduction <add>, %84, %cst_40 [1] : vector<17x17xf32> to vector<17xf32>
    %86 = vector.shape_cast %85 : vector<17xf32> to vector<17x1xf32>
    %87 = vector.broadcast %86 : vector<17x1xf32> to vector<17x17xf32>
    %88 = arith.divf %84, %87 : vector<17x17xf32>
    %cst_41 = arith.constant dense<0.000000e+00> : vector<17x8xf32>
    %89 = tpu.matmul %88, %78, %cst_41 {dimension_numbers = #tpu.dot_dimension_numbers<[1], [0], [0], [1], [0, 0, 1, 1], [], []>} : vector<17x17xf32>, vector<17x8xf32>, vector<17x8xf32> -> vector<17x8xf32>
    %90 = vector.extract_strided_slice %40 {offsets = [16, 0], sizes = [8, 32], strides = [1, 1]} : vector<32x32xf32> to vector<8x32xf32>
    %cst_42 = arith.constant dense<0.000000e+00> : vector<17x32xf32>
    %91 = tpu.matmul %89, %90, %cst_42 {dimension_numbers = #tpu.dot_dimension_numbers<[1], [0], [0], [1], [0, 0, 1, 1], [], []>} : vector<17x8xf32>, vector<8x32xf32>, vector<17x32xf32> -> vector<17x32xf32>
    %92 = arith.addf %75, %91 : vector<17x32xf32>
    %93 = vector.extract_strided_slice %38 {offsets = [0, 24], sizes = [17, 8], strides = [1, 1]} : vector<17x96xf32> to vector<17x8xf32>
    %94 = vector.extract_strided_slice %38 {offsets = [0, 56], sizes = [17, 8], strides = [1, 1]} : vector<17x96xf32> to vector<17x8xf32>
    %95 = vector.extract_strided_slice %38 {offsets = [0, 88], sizes = [17, 8], strides = [1, 1]} : vector<17x96xf32> to vector<17x8xf32>
    %cst_43 = arith.constant dense<0.000000e+00> : vector<17x17xf32>
    %96 = tpu.matmul %93, %94, %cst_43 {dimension_numbers = #tpu.dot_dimension_numbers<[1], [1], [0], [0], [0, 0, 1, 0], [], []>} : vector<17x8xf32>, vector<17x8xf32>, vector<17x17xf32> -> vector<17x17xf32>
    %cst_44 = arith.constant dense<0xFF800000> : vector<17xf32>
    %97 = vector.multi_reduction <maximumf>, %96, %cst_44 [1] : vector<17x17xf32> to vector<17xf32>
    %98 = vector.shape_cast %97 : vector<17xf32> to vector<17x1xf32>
    %99 = vector.broadcast %98 : vector<17x1xf32> to vector<17x17xf32>
    %100 = arith.subf %96, %99 : vector<17x17xf32>
    %101 = math.exp %100 : vector<17x17xf32>
    %cst_45 = arith.constant dense<0.000000e+00> : vector<17xf32>
    %102 = vector.multi_reduction <add>, %101, %cst_45 [1] : vector<17x17xf32> to vector<17xf32>
    %103 = vector.shape_cast %102 : vector<17xf32> to vector<17x1xf32>
    %104 = vector.broadcast %103 : vector<17x1xf32> to vector<17x17xf32>
    %105 = arith.divf %101, %104 : vector<17x17xf32>
    %cst_46 = arith.constant dense<0.000000e+00> : vector<17x8xf32>
    %106 = tpu.matmul %105, %95, %cst_46 {dimension_numbers = #tpu.dot_dimension_numbers<[1], [0], [0], [1], [0, 0, 1, 1], [], []>} : vector<17x17xf32>, vector<17x8xf32>, vector<17x8xf32> -> vector<17x8xf32>
    %107 = vector.extract_strided_slice %40 {offsets = [24, 0], sizes = [8, 32], strides = [1, 1]} : vector<32x32xf32> to vector<8x32xf32>
    %cst_47 = arith.constant dense<0.000000e+00> : vector<17x32xf32>
    %108 = tpu.matmul %106, %107, %cst_47 {dimension_numbers = #tpu.dot_dimension_numbers<[1], [0], [0], [1], [0, 0, 1, 1], [], []>} : vector<17x8xf32>, vector<8x32xf32>, vector<17x32xf32> -> vector<17x32xf32>
    %109 = arith.addf %92, %108 : vector<17x32xf32>
    %110 = arith.addf %5, %109 : vector<17x32xf32>
    %c0_48 = arith.constant 0 : index
    %c0_49 = arith.constant 0 : index
    %c0_50 = arith.constant 0 : index
    %111 = vector.load %arg9[%c0_48, %c0_49, %c0_50] : memref<2x1x32xf32, #tpu.memory_space<vmem>>, vector<1x1x32xf32>
    %112 = vector.shape_cast %111 : vector<1x1x32xf32> to vector<1x32xf32>
    %113 = vector.broadcast %112 : vector<1x32xf32> to vector<17x32xf32>
    %114 = arith.addf %110, %113 : vector<17x32xf32>
    %c0_51 = arith.constant 0 : index
    %c0_52 = arith.constant 0 : index
    %c0_53 = arith.constant 0 : index
    %115 = vector.load %arg10[%c0_51, %c0_52, %c0_53] : memref<2x1x32xf32, #tpu.memory_space<vmem>>, vector<1x1x32xf32>
    %116 = vector.shape_cast %115 : vector<1x1x32xf32> to vector<1x32xf32>
    %c0_54 = arith.constant 0 : index
    %c0_55 = arith.constant 0 : index
    %c0_56 = arith.constant 0 : index
    %117 = vector.load %arg11[%c0_54, %c0_55, %c0_56] : memref<2x1x32xf32, #tpu.memory_space<vmem>>, vector<1x1x32xf32>
    %118 = vector.shape_cast %117 : vector<1x1x32xf32> to vector<1x32xf32>
    %cst_57 = arith.constant dense<0.000000e+00> : vector<17xf32>
    %119 = vector.multi_reduction <add>, %114, %cst_57 [1] : vector<17x32xf32> to vector<17xf32>
    %120 = vector.shape_cast %119 : vector<17xf32> to vector<17x1xf32>
    %cst_58 = arith.constant 3.200000e+01 : f32
    %121 = vector.broadcast %cst_58 : f32 to vector<17x1xf32>
    %122 = arith.divf %120, %121 : vector<17x1xf32>
    %123 = vector.broadcast %122 : vector<17x1xf32> to vector<17x32xf32>
    %124 = arith.subf %114, %123 : vector<17x32xf32>
    %125 = arith.mulf %124, %124 : vector<17x32xf32>
    %cst_59 = arith.constant dense<0.000000e+00> : vector<17xf32>
    %126 = vector.multi_reduction <add>, %125, %cst_59 [1] : vector<17x32xf32> to vector<17xf32>
    %127 = vector.shape_cast %126 : vector<17xf32> to vector<17x1xf32>
    %cst_60 = arith.constant 3.200000e+01 : f32
    %128 = vector.broadcast %cst_60 : f32 to vector<17x1xf32>
    %129 = arith.divf %127, %128 : vector<17x1xf32>
    %130 = vector.broadcast %122 : vector<17x1xf32> to vector<17x32xf32>
    %131 = arith.subf %114, %130 : vector<17x32xf32>
    %cst_61 = arith.constant 9.99999997E-7 : f32
    %132 = vector.broadcast %cst_61 : f32 to vector<17x1xf32>
    %133 = arith.addf %129, %132 : vector<17x1xf32>
    %134 = math.rsqrt %133 : vector<17x1xf32>
    %135 = vector.broadcast %134 : vector<17x1xf32> to vector<17x32xf32>
    %136 = arith.mulf %131, %135 : vector<17x32xf32>
    %137 = vector.broadcast %116 : vector<1x32xf32> to vector<17x32xf32>
    %138 = arith.mulf %136, %137 : vector<17x32xf32>
    %139 = vector.broadcast %118 : vector<1x32xf32> to vector<17x32xf32>
    %140 = arith.addf %138, %139 : vector<17x32xf32>
    %c0_62 = arith.constant 0 : index
    %c0_63 = arith.constant 0 : index
    %c0_64 = arith.constant 0 : index
    %141 = vector.load %arg12[%c0_62, %c0_63, %c0_64] : memref<2x32x128xf32, #tpu.memory_space<vmem>>, vector<1x32x128xf32>
    %142 = vector.shape_cast %141 : vector<1x32x128xf32> to vector<32x128xf32>
    %cst_65 = arith.constant dense<0.000000e+00> : vector<17x128xf32>
    %143 = tpu.matmul %140, %142, %cst_65 {dimension_numbers = #tpu.dot_dimension_numbers<[1], [0], [0], [1], [0, 0, 1, 1], [], []>} : vector<17x32xf32>, vector<32x128xf32>, vector<17x128xf32> -> vector<17x128xf32>
    %c0_66 = arith.constant 0 : index
    %c0_67 = arith.constant 0 : index
    %c0_68 = arith.constant 0 : index
    %144 = vector.load %arg13[%c0_66, %c0_67, %c0_68] : memref<2x1x128xf32, #tpu.memory_space<vmem>>, vector<1x1x128xf32>
    %145 = vector.shape_cast %144 : vector<1x1x128xf32> to vector<1x128xf32>
    %146 = vector.broadcast %145 : vector<1x128xf32> to vector<17x128xf32>
    %147 = arith.addf %143, %146 : vector<17x128xf32>
    %cst_69 = arith.constant 5.000000e-01 : f32
    %148 = vector.broadcast %cst_69 : f32 to vector<17x128xf32>
    %149 = arith.mulf %148, %147 : vector<17x128xf32>
    %cst_70 = arith.constant 0.707106769 : f32
    %150 = vector.broadcast %cst_70 : f32 to vector<17x128xf32>
    %151 = arith.mulf %147, %150 : vector<17x128xf32>
    %152 = math.erf %151 : vector<17x128xf32>
    %cst_71 = arith.constant 1.000000e+00 : f32
    %153 = vector.broadcast %cst_71 : f32 to vector<17x128xf32>
    %154 = arith.addf %153, %152 : vector<17x128xf32>
    %155 = arith.mulf %149, %154 : vector<17x128xf32>
    %c0_72 = arith.constant 0 : index
    %c0_73 = arith.constant 0 : index
    %c0_74 = arith.constant 0 : index
    %156 = vector.load %arg14[%c0_72, %c0_73, %c0_74] : memref<2x128x32xf32, #tpu.memory_space<vmem>>, vector<1x128x32xf32>
    %157 = vector.shape_cast %156 : vector<1x128x32xf32> to vector<128x32xf32>
    %cst_75 = arith.constant dense<0.000000e+00> : vector<17x32xf32>
    %158 = tpu.matmul %155, %157, %cst_75 {dimension_numbers = #tpu.dot_dimension_numbers<[1], [0], [0], [1], [0, 0, 1, 1], [], []>} : vector<17x128xf32>, vector<128x32xf32>, vector<17x32xf32> -> vector<17x32xf32>
    %c0_76 = arith.constant 0 : index
    %c0_77 = arith.constant 0 : index
    %c0_78 = arith.constant 0 : index
    %159 = vector.load %arg15[%c0_76, %c0_77, %c0_78] : memref<2x1x32xf32, #tpu.memory_space<vmem>>, vector<1x1x32xf32>
    %160 = vector.shape_cast %159 : vector<1x1x32xf32> to vector<1x32xf32>
    %161 = vector.broadcast %160 : vector<1x32xf32> to vector<17x32xf32>
    %162 = arith.addf %158, %161 : vector<17x32xf32>
    %163 = arith.addf %114, %162 : vector<17x32xf32>
    %c1 = arith.constant 1 : index
    %c0_79 = arith.constant 0 : index
    %c0_80 = arith.constant 0 : index
    %164 = vector.load %arg4[%c1, %c0_79, %c0_80] : memref<2x1x32xf32, #tpu.memory_space<vmem>>, vector<1x1x32xf32>
    %165 = vector.shape_cast %164 : vector<1x1x32xf32> to vector<1x32xf32>
    %c1_81 = arith.constant 1 : index
    %c0_82 = arith.constant 0 : index
    %c0_83 = arith.constant 0 : index
    %166 = vector.load %arg5[%c1_81, %c0_82, %c0_83] : memref<2x1x32xf32, #tpu.memory_space<vmem>>, vector<1x1x32xf32>
    %167 = vector.shape_cast %166 : vector<1x1x32xf32> to vector<1x32xf32>
    %cst_84 = arith.constant dense<0.000000e+00> : vector<17xf32>
    %168 = vector.multi_reduction <add>, %163, %cst_84 [1] : vector<17x32xf32> to vector<17xf32>
    %169 = vector.shape_cast %168 : vector<17xf32> to vector<17x1xf32>
    %cst_85 = arith.constant 3.200000e+01 : f32
    %170 = vector.broadcast %cst_85 : f32 to vector<17x1xf32>
    %171 = arith.divf %169, %170 : vector<17x1xf32>
    %172 = vector.broadcast %171 : vector<17x1xf32> to vector<17x32xf32>
    %173 = arith.subf %163, %172 : vector<17x32xf32>
    %174 = arith.mulf %173, %173 : vector<17x32xf32>
    %cst_86 = arith.constant dense<0.000000e+00> : vector<17xf32>
    %175 = vector.multi_reduction <add>, %174, %cst_86 [1] : vector<17x32xf32> to vector<17xf32>
    %176 = vector.shape_cast %175 : vector<17xf32> to vector<17x1xf32>
    %cst_87 = arith.constant 3.200000e+01 : f32
    %177 = vector.broadcast %cst_87 : f32 to vector<17x1xf32>
    %178 = arith.divf %176, %177 : vector<17x1xf32>
    %179 = vector.broadcast %171 : vector<17x1xf32> to vector<17x32xf32>
    %180 = arith.subf %163, %179 : vector<17x32xf32>
    %cst_88 = arith.constant 9.99999997E-7 : f32
    %181 = vector.broadcast %cst_88 : f32 to vector<17x1xf32>
    %182 = arith.addf %178, %181 : vector<17x1xf32>
    %183 = math.rsqrt %182 : vector<17x1xf32>
    %184 = vector.broadcast %183 : vector<17x1xf32> to vector<17x32xf32>
    %185 = arith.mulf %180, %184 : vector<17x32xf32>
    %186 = vector.broadcast %165 : vector<1x32xf32> to vector<17x32xf32>
    %187 = arith.mulf %185, %186 : vector<17x32xf32>
    %188 = vector.broadcast %167 : vector<1x32xf32> to vector<17x32xf32>
    %189 = arith.addf %187, %188 : vector<17x32xf32>
    %c1_89 = arith.constant 1 : index
    %c0_90 = arith.constant 0 : index
    %c0_91 = arith.constant 0 : index
    %190 = vector.load %arg6[%c1_89, %c0_90, %c0_91] : memref<2x32x96xf32, #tpu.memory_space<vmem>>, vector<1x32x96xf32>
    %191 = vector.shape_cast %190 : vector<1x32x96xf32> to vector<32x96xf32>
    %cst_92 = arith.constant dense<0.000000e+00> : vector<17x96xf32>
    %192 = tpu.matmul %189, %191, %cst_92 {dimension_numbers = #tpu.dot_dimension_numbers<[1], [0], [0], [1], [0, 0, 1, 1], [], []>} : vector<17x32xf32>, vector<32x96xf32>, vector<17x96xf32> -> vector<17x96xf32>
    %c1_93 = arith.constant 1 : index
    %c0_94 = arith.constant 0 : index
    %c0_95 = arith.constant 0 : index
    %193 = vector.load %arg7[%c1_93, %c0_94, %c0_95] : memref<2x1x96xf32, #tpu.memory_space<vmem>>, vector<1x1x96xf32>
    %194 = vector.shape_cast %193 : vector<1x1x96xf32> to vector<1x96xf32>
    %195 = vector.broadcast %194 : vector<1x96xf32> to vector<17x96xf32>
    %196 = arith.addf %192, %195 : vector<17x96xf32>
    %c1_96 = arith.constant 1 : index
    %c0_97 = arith.constant 0 : index
    %c0_98 = arith.constant 0 : index
    %197 = vector.load %arg8[%c1_96, %c0_97, %c0_98] : memref<2x32x32xf32, #tpu.memory_space<vmem>>, vector<1x32x32xf32>
    %198 = vector.shape_cast %197 : vector<1x32x32xf32> to vector<32x32xf32>
    %cst_99 = arith.constant 0.000000e+00 : f32
    %199 = vector.broadcast %cst_99 : f32 to vector<17x32xf32>
    %200 = vector.extract_strided_slice %196 {offsets = [0, 0], sizes = [17, 8], strides = [1, 1]} : vector<17x96xf32> to vector<17x8xf32>
    %201 = vector.extract_strided_slice %196 {offsets = [0, 32], sizes = [17, 8], strides = [1, 1]} : vector<17x96xf32> to vector<17x8xf32>
    %202 = vector.extract_strided_slice %196 {offsets = [0, 64], sizes = [17, 8], strides = [1, 1]} : vector<17x96xf32> to vector<17x8xf32>
    %cst_100 = arith.constant dense<0.000000e+00> : vector<17x17xf32>
    %203 = tpu.matmul %200, %201, %cst_100 {dimension_numbers = #tpu.dot_dimension_numbers<[1], [1], [0], [0], [0, 0, 1, 0], [], []>} : vector<17x8xf32>, vector<17x8xf32>, vector<17x17xf32> -> vector<17x17xf32>
    %cst_101 = arith.constant dense<0xFF800000> : vector<17xf32>
    %204 = vector.multi_reduction <maximumf>, %203, %cst_101 [1] : vector<17x17xf32> to vector<17xf32>
    %205 = vector.shape_cast %204 : vector<17xf32> to vector<17x1xf32>
    %206 = vector.broadcast %205 : vector<17x1xf32> to vector<17x17xf32>
    %207 = arith.subf %203, %206 : vector<17x17xf32>
    %208 = math.exp %207 : vector<17x17xf32>
    %cst_102 = arith.constant dense<0.000000e+00> : vector<17xf32>
    %209 = vector.multi_reduction <add>, %208, %cst_102 [1] : vector<17x17xf32> to vector<17xf32>
    %210 = vector.shape_cast %209 : vector<17xf32> to vector<17x1xf32>
    %211 = vector.broadcast %210 : vector<17x1xf32> to vector<17x17xf32>
    %212 = arith.divf %208, %211 : vector<17x17xf32>
    %cst_103 = arith.constant dense<0.000000e+00> : vector<17x8xf32>
    %213 = tpu.matmul %212, %202, %cst_103 {dimension_numbers = #tpu.dot_dimension_numbers<[1], [0], [0], [1], [0, 0, 1, 1], [], []>} : vector<17x17xf32>, vector<17x8xf32>, vector<17x8xf32> -> vector<17x8xf32>
    %214 = vector.extract_strided_slice %198 {offsets = [0, 0], sizes = [8, 32], strides = [1, 1]} : vector<32x32xf32> to vector<8x32xf32>
    %cst_104 = arith.constant dense<0.000000e+00> : vector<17x32xf32>
    %215 = tpu.matmul %213, %214, %cst_104 {dimension_numbers = #tpu.dot_dimension_numbers<[1], [0], [0], [1], [0, 0, 1, 1], [], []>} : vector<17x8xf32>, vector<8x32xf32>, vector<17x32xf32> -> vector<17x32xf32>
    %216 = arith.addf %199, %215 : vector<17x32xf32>
    %217 = vector.extract_strided_slice %196 {offsets = [0, 8], sizes = [17, 8], strides = [1, 1]} : vector<17x96xf32> to vector<17x8xf32>
    %218 = vector.extract_strided_slice %196 {offsets = [0, 40], sizes = [17, 8], strides = [1, 1]} : vector<17x96xf32> to vector<17x8xf32>
    %219 = vector.extract_strided_slice %196 {offsets = [0, 72], sizes = [17, 8], strides = [1, 1]} : vector<17x96xf32> to vector<17x8xf32>
    %cst_105 = arith.constant dense<0.000000e+00> : vector<17x17xf32>
    %220 = tpu.matmul %217, %218, %cst_105 {dimension_numbers = #tpu.dot_dimension_numbers<[1], [1], [0], [0], [0, 0, 1, 0], [], []>} : vector<17x8xf32>, vector<17x8xf32>, vector<17x17xf32> -> vector<17x17xf32>
    %cst_106 = arith.constant dense<0xFF800000> : vector<17xf32>
    %221 = vector.multi_reduction <maximumf>, %220, %cst_106 [1] : vector<17x17xf32> to vector<17xf32>
    %222 = vector.shape_cast %221 : vector<17xf32> to vector<17x1xf32>
    %223 = vector.broadcast %222 : vector<17x1xf32> to vector<17x17xf32>
    %224 = arith.subf %220, %223 : vector<17x17xf32>
    %225 = math.exp %224 : vector<17x17xf32>
    %cst_107 = arith.constant dense<0.000000e+00> : vector<17xf32>
    %226 = vector.multi_reduction <add>, %225, %cst_107 [1] : vector<17x17xf32> to vector<17xf32>
    %227 = vector.shape_cast %226 : vector<17xf32> to vector<17x1xf32>
    %228 = vector.broadcast %227 : vector<17x1xf32> to vector<17x17xf32>
    %229 = arith.divf %225, %228 : vector<17x17xf32>
    %cst_108 = arith.constant dense<0.000000e+00> : vector<17x8xf32>
    %230 = tpu.matmul %229, %219, %cst_108 {dimension_numbers = #tpu.dot_dimension_numbers<[1], [0], [0], [1], [0, 0, 1, 1], [], []>} : vector<17x17xf32>, vector<17x8xf32>, vector<17x8xf32> -> vector<17x8xf32>
    %231 = vector.extract_strided_slice %198 {offsets = [8, 0], sizes = [8, 32], strides = [1, 1]} : vector<32x32xf32> to vector<8x32xf32>
    %cst_109 = arith.constant dense<0.000000e+00> : vector<17x32xf32>
    %232 = tpu.matmul %230, %231, %cst_109 {dimension_numbers = #tpu.dot_dimension_numbers<[1], [0], [0], [1], [0, 0, 1, 1], [], []>} : vector<17x8xf32>, vector<8x32xf32>, vector<17x32xf32> -> vector<17x32xf32>
    %233 = arith.addf %216, %232 : vector<17x32xf32>
    %234 = vector.extract_strided_slice %196 {offsets = [0, 16], sizes = [17, 8], strides = [1, 1]} : vector<17x96xf32> to vector<17x8xf32>
    %235 = vector.extract_strided_slice %196 {offsets = [0, 48], sizes = [17, 8], strides = [1, 1]} : vector<17x96xf32> to vector<17x8xf32>
    %236 = vector.extract_strided_slice %196 {offsets = [0, 80], sizes = [17, 8], strides = [1, 1]} : vector<17x96xf32> to vector<17x8xf32>
    %cst_110 = arith.constant dense<0.000000e+00> : vector<17x17xf32>
    %237 = tpu.matmul %234, %235, %cst_110 {dimension_numbers = #tpu.dot_dimension_numbers<[1], [1], [0], [0], [0, 0, 1, 0], [], []>} : vector<17x8xf32>, vector<17x8xf32>, vector<17x17xf32> -> vector<17x17xf32>
    %cst_111 = arith.constant dense<0xFF800000> : vector<17xf32>
    %238 = vector.multi_reduction <maximumf>, %237, %cst_111 [1] : vector<17x17xf32> to vector<17xf32>
    %239 = vector.shape_cast %238 : vector<17xf32> to vector<17x1xf32>
    %240 = vector.broadcast %239 : vector<17x1xf32> to vector<17x17xf32>
    %241 = arith.subf %237, %240 : vector<17x17xf32>
    %242 = math.exp %241 : vector<17x17xf32>
    %cst_112 = arith.constant dense<0.000000e+00> : vector<17xf32>
    %243 = vector.multi_reduction <add>, %242, %cst_112 [1] : vector<17x17xf32> to vector<17xf32>
    %244 = vector.shape_cast %243 : vector<17xf32> to vector<17x1xf32>
    %245 = vector.broadcast %244 : vector<17x1xf32> to vector<17x17xf32>
    %246 = arith.divf %242, %245 : vector<17x17xf32>
    %cst_113 = arith.constant dense<0.000000e+00> : vector<17x8xf32>
    %247 = tpu.matmul %246, %236, %cst_113 {dimension_numbers = #tpu.dot_dimension_numbers<[1], [0], [0], [1], [0, 0, 1, 1], [], []>} : vector<17x17xf32>, vector<17x8xf32>, vector<17x8xf32> -> vector<17x8xf32>
    %248 = vector.extract_strided_slice %198 {offsets = [16, 0], sizes = [8, 32], strides = [1, 1]} : vector<32x32xf32> to vector<8x32xf32>
    %cst_114 = arith.constant dense<0.000000e+00> : vector<17x32xf32>
    %249 = tpu.matmul %247, %248, %cst_114 {dimension_numbers = #tpu.dot_dimension_numbers<[1], [0], [0], [1], [0, 0, 1, 1], [], []>} : vector<17x8xf32>, vector<8x32xf32>, vector<17x32xf32> -> vector<17x32xf32>
    %250 = arith.addf %233, %249 : vector<17x32xf32>
    %251 = vector.extract_strided_slice %196 {offsets = [0, 24], sizes = [17, 8], strides = [1, 1]} : vector<17x96xf32> to vector<17x8xf32>
    %252 = vector.extract_strided_slice %196 {offsets = [0, 56], sizes = [17, 8], strides = [1, 1]} : vector<17x96xf32> to vector<17x8xf32>
    %253 = vector.extract_strided_slice %196 {offsets = [0, 88], sizes = [17, 8], strides = [1, 1]} : vector<17x96xf32> to vector<17x8xf32>
    %cst_115 = arith.constant dense<0.000000e+00> : vector<17x17xf32>
    %254 = tpu.matmul %251, %252, %cst_115 {dimension_numbers = #tpu.dot_dimension_numbers<[1], [1], [0], [0], [0, 0, 1, 0], [], []>} : vector<17x8xf32>, vector<17x8xf32>, vector<17x17xf32> -> vector<17x17xf32>
    %cst_116 = arith.constant dense<0xFF800000> : vector<17xf32>
    %255 = vector.multi_reduction <maximumf>, %254, %cst_116 [1] : vector<17x17xf32> to vector<17xf32>
    %256 = vector.shape_cast %255 : vector<17xf32> to vector<17x1xf32>
    %257 = vector.broadcast %256 : vector<17x1xf32> to vector<17x17xf32>
    %258 = arith.subf %254, %257 : vector<17x17xf32>
    %259 = math.exp %258 : vector<17x17xf32>
    %cst_117 = arith.constant dense<0.000000e+00> : vector<17xf32>
    %260 = vector.multi_reduction <add>, %259, %cst_117 [1] : vector<17x17xf32> to vector<17xf32>
    %261 = vector.shape_cast %260 : vector<17xf32> to vector<17x1xf32>
    %262 = vector.broadcast %261 : vector<17x1xf32> to vector<17x17xf32>
    %263 = arith.divf %259, %262 : vector<17x17xf32>
    %cst_118 = arith.constant dense<0.000000e+00> : vector<17x8xf32>
    %264 = tpu.matmul %263, %253, %cst_118 {dimension_numbers = #tpu.dot_dimension_numbers<[1], [0], [0], [1], [0, 0, 1, 1], [], []>} : vector<17x17xf32>, vector<17x8xf32>, vector<17x8xf32> -> vector<17x8xf32>
    %265 = vector.extract_strided_slice %198 {offsets = [24, 0], sizes = [8, 32], strides = [1, 1]} : vector<32x32xf32> to vector<8x32xf32>
    %cst_119 = arith.constant dense<0.000000e+00> : vector<17x32xf32>
    %266 = tpu.matmul %264, %265, %cst_119 {dimension_numbers = #tpu.dot_dimension_numbers<[1], [0], [0], [1], [0, 0, 1, 1], [], []>} : vector<17x8xf32>, vector<8x32xf32>, vector<17x32xf32> -> vector<17x32xf32>
    %267 = arith.addf %250, %266 : vector<17x32xf32>
    %268 = arith.addf %163, %267 : vector<17x32xf32>
    %c1_120 = arith.constant 1 : index
    %c0_121 = arith.constant 0 : index
    %c0_122 = arith.constant 0 : index
    %269 = vector.load %arg9[%c1_120, %c0_121, %c0_122] : memref<2x1x32xf32, #tpu.memory_space<vmem>>, vector<1x1x32xf32>
    %270 = vector.shape_cast %269 : vector<1x1x32xf32> to vector<1x32xf32>
    %271 = vector.broadcast %270 : vector<1x32xf32> to vector<17x32xf32>
    %272 = arith.addf %268, %271 : vector<17x32xf32>
    %c1_123 = arith.constant 1 : index
    %c0_124 = arith.constant 0 : index
    %c0_125 = arith.constant 0 : index
    %273 = vector.load %arg10[%c1_123, %c0_124, %c0_125] : memref<2x1x32xf32, #tpu.memory_space<vmem>>, vector<1x1x32xf32>
    %274 = vector.shape_cast %273 : vector<1x1x32xf32> to vector<1x32xf32>
    %c1_126 = arith.constant 1 : index
    %c0_127 = arith.constant 0 : index
    %c0_128 = arith.constant 0 : index
    %275 = vector.load %arg11[%c1_126, %c0_127, %c0_128] : memref<2x1x32xf32, #tpu.memory_space<vmem>>, vector<1x1x32xf32>
    %276 = vector.shape_cast %275 : vector<1x1x32xf32> to vector<1x32xf32>
    %cst_129 = arith.constant dense<0.000000e+00> : vector<17xf32>
    %277 = vector.multi_reduction <add>, %272, %cst_129 [1] : vector<17x32xf32> to vector<17xf32>
    %278 = vector.shape_cast %277 : vector<17xf32> to vector<17x1xf32>
    %cst_130 = arith.constant 3.200000e+01 : f32
    %279 = vector.broadcast %cst_130 : f32 to vector<17x1xf32>
    %280 = arith.divf %278, %279 : vector<17x1xf32>
    %281 = vector.broadcast %280 : vector<17x1xf32> to vector<17x32xf32>
    %282 = arith.subf %272, %281 : vector<17x32xf32>
    %283 = arith.mulf %282, %282 : vector<17x32xf32>
    %cst_131 = arith.constant dense<0.000000e+00> : vector<17xf32>
    %284 = vector.multi_reduction <add>, %283, %cst_131 [1] : vector<17x32xf32> to vector<17xf32>
    %285 = vector.shape_cast %284 : vector<17xf32> to vector<17x1xf32>
    %cst_132 = arith.constant 3.200000e+01 : f32
    %286 = vector.broadcast %cst_132 : f32 to vector<17x1xf32>
    %287 = arith.divf %285, %286 : vector<17x1xf32>
    %288 = vector.broadcast %280 : vector<17x1xf32> to vector<17x32xf32>
    %289 = arith.subf %272, %288 : vector<17x32xf32>
    %cst_133 = arith.constant 9.99999997E-7 : f32
    %290 = vector.broadcast %cst_133 : f32 to vector<17x1xf32>
    %291 = arith.addf %287, %290 : vector<17x1xf32>
    %292 = math.rsqrt %291 : vector<17x1xf32>
    %293 = vector.broadcast %292 : vector<17x1xf32> to vector<17x32xf32>
    %294 = arith.mulf %289, %293 : vector<17x32xf32>
    %295 = vector.broadcast %274 : vector<1x32xf32> to vector<17x32xf32>
    %296 = arith.mulf %294, %295 : vector<17x32xf32>
    %297 = vector.broadcast %276 : vector<1x32xf32> to vector<17x32xf32>
    %298 = arith.addf %296, %297 : vector<17x32xf32>
    %c1_134 = arith.constant 1 : index
    %c0_135 = arith.constant 0 : index
    %c0_136 = arith.constant 0 : index
    %299 = vector.load %arg12[%c1_134, %c0_135, %c0_136] : memref<2x32x128xf32, #tpu.memory_space<vmem>>, vector<1x32x128xf32>
    %300 = vector.shape_cast %299 : vector<1x32x128xf32> to vector<32x128xf32>
    %cst_137 = arith.constant dense<0.000000e+00> : vector<17x128xf32>
    %301 = tpu.matmul %298, %300, %cst_137 {dimension_numbers = #tpu.dot_dimension_numbers<[1], [0], [0], [1], [0, 0, 1, 1], [], []>} : vector<17x32xf32>, vector<32x128xf32>, vector<17x128xf32> -> vector<17x128xf32>
    %c1_138 = arith.constant 1 : index
    %c0_139 = arith.constant 0 : index
    %c0_140 = arith.constant 0 : index
    %302 = vector.load %arg13[%c1_138, %c0_139, %c0_140] : memref<2x1x128xf32, #tpu.memory_space<vmem>>, vector<1x1x128xf32>
    %303 = vector.shape_cast %302 : vector<1x1x128xf32> to vector<1x128xf32>
    %304 = vector.broadcast %303 : vector<1x128xf32> to vector<17x128xf32>
    %305 = arith.addf %301, %304 : vector<17x128xf32>
    %cst_141 = arith.constant 5.000000e-01 : f32
    %306 = vector.broadcast %cst_141 : f32 to vector<17x128xf32>
    %307 = arith.mulf %306, %305 : vector<17x128xf32>
    %cst_142 = arith.constant 0.707106769 : f32
    %308 = vector.broadcast %cst_142 : f32 to vector<17x128xf32>
    %309 = arith.mulf %305, %308 : vector<17x128xf32>
    %310 = math.erf %309 : vector<17x128xf32>
    %cst_143 = arith.constant 1.000000e+00 : f32
    %311 = vector.broadcast %cst_143 : f32 to vector<17x128xf32>
    %312 = arith.addf %311, %310 : vector<17x128xf32>
    %313 = arith.mulf %307, %312 : vector<17x128xf32>
    %c1_144 = arith.constant 1 : index
    %c0_145 = arith.constant 0 : index
    %c0_146 = arith.constant 0 : index
    %314 = vector.load %arg14[%c1_144, %c0_145, %c0_146] : memref<2x128x32xf32, #tpu.memory_space<vmem>>, vector<1x128x32xf32>
    %315 = vector.shape_cast %314 : vector<1x128x32xf32> to vector<128x32xf32>
    %cst_147 = arith.constant dense<0.000000e+00> : vector<17x32xf32>
    %316 = tpu.matmul %313, %315, %cst_147 {dimension_numbers = #tpu.dot_dimension_numbers<[1], [0], [0], [1], [0, 0, 1, 1], [], []>} : vector<17x128xf32>, vector<128x32xf32>, vector<17x32xf32> -> vector<17x32xf32>
    %c1_148 = arith.constant 1 : index
    %c0_149 = arith.constant 0 : index
    %c0_150 = arith.constant 0 : index
    %317 = vector.load %arg15[%c1_148, %c0_149, %c0_150] : memref<2x1x32xf32, #tpu.memory_space<vmem>>, vector<1x1x32xf32>
    %318 = vector.shape_cast %317 : vector<1x1x32xf32> to vector<1x32xf32>
    %319 = vector.broadcast %318 : vector<1x32xf32> to vector<17x32xf32>
    %320 = arith.addf %316, %319 : vector<17x32xf32>
    %321 = arith.addf %272, %320 : vector<17x32xf32>
    %322 = vector.extract_strided_slice %321 {offsets = [0, 0], sizes = [1, 32], strides = [1, 1]} : vector<17x32xf32> to vector<1x32xf32>
    %c0_151 = arith.constant 0 : index
    %c0_152 = arith.constant 0 : index
    %323 = vector.load %arg16[%c0_151, %c0_152] : memref<1x32xf32, #tpu.memory_space<vmem>>, vector<1x32xf32>
    %c0_153 = arith.constant 0 : index
    %c0_154 = arith.constant 0 : index
    %324 = vector.load %arg17[%c0_153, %c0_154] : memref<1x32xf32, #tpu.memory_space<vmem>>, vector<1x32xf32>
    %cst_155 = arith.constant dense<0.000000e+00> : vector<1xf32>
    %325 = vector.multi_reduction <add>, %322, %cst_155 [1] : vector<1x32xf32> to vector<1xf32>
    %326 = vector.shape_cast %325 : vector<1xf32> to vector<1x1xf32>
    %cst_156 = arith.constant 3.200000e+01 : f32
    %327 = vector.broadcast %cst_156 : f32 to vector<1x1xf32>
    %328 = arith.divf %326, %327 : vector<1x1xf32>
    %329 = vector.broadcast %328 : vector<1x1xf32> to vector<1x32xf32>
    %330 = arith.subf %322, %329 : vector<1x32xf32>
    %331 = arith.mulf %330, %330 : vector<1x32xf32>
    %cst_157 = arith.constant dense<0.000000e+00> : vector<1xf32>
    %332 = vector.multi_reduction <add>, %331, %cst_157 [1] : vector<1x32xf32> to vector<1xf32>
    %333 = vector.shape_cast %332 : vector<1xf32> to vector<1x1xf32>
    %cst_158 = arith.constant 3.200000e+01 : f32
    %334 = vector.broadcast %cst_158 : f32 to vector<1x1xf32>
    %335 = arith.divf %333, %334 : vector<1x1xf32>
    %336 = vector.broadcast %328 : vector<1x1xf32> to vector<1x32xf32>
    %337 = arith.subf %322, %336 : vector<1x32xf32>
    %cst_159 = arith.constant 9.99999997E-7 : f32
    %338 = vector.broadcast %cst_159 : f32 to vector<1x1xf32>
    %339 = arith.addf %335, %338 : vector<1x1xf32>
    %340 = math.rsqrt %339 : vector<1x1xf32>
    %341 = vector.broadcast %340 : vector<1x1xf32> to vector<1x32xf32>
    %342 = arith.mulf %337, %341 : vector<1x32xf32>
    %343 = arith.mulf %342, %323 : vector<1x32xf32>
    %344 = arith.addf %343, %324 : vector<1x32xf32>
    %c0_160 = arith.constant 0 : index
    %c0_161 = arith.constant 0 : index
    %345 = vector.load %arg18[%c0_160, %c0_161] : memref<32x10xf32, #tpu.memory_space<vmem>>, vector<32x10xf32>
    %cst_162 = arith.constant dense<0.000000e+00> : vector<1x10xf32>
    %346 = tpu.matmul %344, %345, %cst_162 {dimension_numbers = #tpu.dot_dimension_numbers<[1], [0], [0], [1], [0, 0, 1, 1], [], []>} : vector<1x32xf32>, vector<32x10xf32>, vector<1x10xf32> -> vector<1x10xf32>
    %c0_163 = arith.constant 0 : index
    %c0_164 = arith.constant 0 : index
    %347 = vector.load %arg19[%c0_163, %c0_164] : memref<1x10xf32, #tpu.memory_space<vmem>>, vector<1x10xf32>
    %348 = arith.addf %346, %347 : vector<1x10xf32>
    %c0_165 = arith.constant 0 : index
    %c0_166 = arith.constant 0 : index
    %c0_167 = arith.constant 0 : index
    %349 = vector.load %arg20[%c0_165, %c0_166, %c0_167] : memref<1x1x10xf32, #tpu.memory_space<vmem>>, vector<1x1x10xf32>
    %350 = vector.shape_cast %349 : vector<1x1x10xf32> to vector<1x10xf32>
    %351 = vector.shape_cast %348 : vector<1x10xf32> to vector<1x1x10xf32>
    tpu.vector_store %arg20[%c0_165, %c0_166, %c0_167], %351 {strides = array<i32>} : memref<1x1x10xf32, #tpu.memory_space<vmem>>, vector<1x1x10xf32>,
    return
  }
  func.func @transform_0(%arg0: i32) -> (i32, i32, i32) {
    %c0_i32 = arith.constant 0 : i32
    %c0_i32_0 = arith.constant 0 : i32
    %c0_i32_1 = arith.constant 0 : i32
    return %arg0, %c0_i32, %c0_i32_0 : i32, i32, i32
  }
  func.func @transform_1(%arg0: i32) -> (i32, i32) {
    %c0_i32 = arith.constant 0 : i32
    %c0_i32_0 = arith.constant 0 : i32
    %c0_i32_1 = arith.constant 0 : i32
    return %c0_i32, %c0_i32_0 : i32, i32
  }
  func.func @transform_2(%arg0: i32) -> (i32, i32) {
    %c0_i32 = arith.constant 0 : i32
    %c0_i32_0 = arith.constant 0 : i32
    %c0_i32_1 = arith.constant 0 : i32
    return %c0_i32, %c0_i32_0 : i32, i32
  }
  func.func @transform_3(%arg0: i32) -> (i32, i32, i32) {
    %c0_i32 = arith.constant 0 : i32
    %c0_i32_0 = arith.constant 0 : i32
    %c0_i32_1 = arith.constant 0 : i32
    %c0_i32_2 = arith.constant 0 : i32
    return %c0_i32, %c0_i32_0, %c0_i32_1 : i32, i32, i32
  }
  func.func @transform_4(%arg0: i32) -> (i32, i32, i32) {
    %c0_i32 = arith.constant 0 : i32
    %c0_i32_0 = arith.constant 0 : i32
    %c0_i32_1 = arith.constant 0 : i32
    %c0_i32_2 = arith.constant 0 : i32
    return %c0_i32, %c0_i32_0, %c0_i32_1 : i32, i32, i32
  }
  func.func @transform_5(%arg0: i32) -> (i32, i32, i32) {
    %c0_i32 = arith.constant 0 : i32
    %c0_i32_0 = arith.constant 0 : i32
    %c0_i32_1 = arith.constant 0 : i32
    %c0_i32_2 = arith.constant 0 : i32
    return %c0_i32, %c0_i32_0, %c0_i32_1 : i32, i32, i32
  }
  func.func @transform_6(%arg0: i32) -> (i32, i32, i32) {
    %c0_i32 = arith.constant 0 : i32
    %c0_i32_0 = arith.constant 0 : i32
    %c0_i32_1 = arith.constant 0 : i32
    %c0_i32_2 = arith.constant 0 : i32
    return %c0_i32, %c0_i32_0, %c0_i32_1 : i32, i32, i32
  }
  func.func @transform_7(%arg0: i32) -> (i32, i32, i32) {
    %c0_i32 = arith.constant 0 : i32
    %c0_i32_0 = arith.constant 0 : i32
    %c0_i32_1 = arith.constant 0 : i32
    %c0_i32_2 = arith.constant 0 : i32
    return %c0_i32, %c0_i32_0, %c0_i32_1 : i32, i32, i32
  }
  func.func @transform_8(%arg0: i32) -> (i32, i32, i32) {
    %c0_i32 = arith.constant 0 : i32
    %c0_i32_0 = arith.constant 0 : i32
    %c0_i32_1 = arith.constant 0 : i32
    %c0_i32_2 = arith.constant 0 : i32
    return %c0_i32, %c0_i32_0, %c0_i32_1 : i32, i32, i32
  }
  func.func @transform_9(%arg0: i32) -> (i32, i32, i32) {
    %c0_i32 = arith.constant 0 : i32
    %c0_i32_0 = arith.constant 0 : i32
    %c0_i32_1 = arith.constant 0 : i32
    %c0_i32_2 = arith.constant 0 : i32
    return %c0_i32, %c0_i32_0, %c0_i32_1 : i32, i32, i32
  }
  func.func @transform_10(%arg0: i32) -> (i32, i32, i32) {
    %c0_i32 = arith.constant 0 : i32
    %c0_i32_0 = arith.constant 0 : i32
    %c0_i32_1 = arith.constant 0 : i32
    %c0_i32_2 = arith.constant 0 : i32
    return %c0_i32, %c0_i32_0, %c0_i32_1 : i32, i32, i32
  }
  func.func @transform_11(%arg0: i32) -> (i32, i32, i32) {
    %c0_i32 = arith.constant 0 : i32
    %c0_i32_0 = arith.constant 0 : i32
    %c0_i32_1 = arith.constant 0 : i32
    %c0_i32_2 = arith.constant 0 : i32
    return %c0_i32, %c0_i32_0, %c0_i32_1 : i32, i32, i32
  }
  func.func @transform_12(%arg0: i32) -> (i32, i32, i32) {
    %c0_i32 = arith.constant 0 : i32
    %c0_i32_0 = arith.constant 0 : i32
    %c0_i32_1 = arith.constant 0 : i32
    %c0_i32_2 = arith.constant 0 : i32
    return %c0_i32, %c0_i32_0, %c0_i32_1 : i32, i32, i32
  }
  func.func @transform_13(%arg0: i32) -> (i32, i32, i32) {
    %c0_i32 = arith.constant 0 : i32
    %c0_i32_0 = arith.constant 0 : i32
    %c0_i32_1 = arith.constant 0 : i32
    %c0_i32_2 = arith.constant 0 : i32
    return %c0_i32, %c0_i32_0, %c0_i32_1 : i32, i32, i32
  }
  func.func @transform_14(%arg0: i32) -> (i32, i32, i32) {
    %c0_i32 = arith.constant 0 : i32
    %c0_i32_0 = arith.constant 0 : i32
    %c0_i32_1 = arith.constant 0 : i32
    %c0_i32_2 = arith.constant 0 : i32
    return %c0_i32, %c0_i32_0, %c0_i32_1 : i32, i32, i32
  }
  func.func @transform_15(%arg0: i32) -> (i32, i32) {
    %c0_i32 = arith.constant 0 : i32
    %c0_i32_0 = arith.constant 0 : i32
    %c0_i32_1 = arith.constant 0 : i32
    return %c0_i32, %c0_i32_0 : i32, i32
  }
  func.func @transform_16(%arg0: i32) -> (i32, i32) {
    %c0_i32 = arith.constant 0 : i32
    %c0_i32_0 = arith.constant 0 : i32
    %c0_i32_1 = arith.constant 0 : i32
    return %c0_i32, %c0_i32_0 : i32, i32
  }
  func.func @transform_17(%arg0: i32) -> (i32, i32) {
    %c0_i32 = arith.constant 0 : i32
    %c0_i32_0 = arith.constant 0 : i32
    %c0_i32_1 = arith.constant 0 : i32
    return %c0_i32, %c0_i32_0 : i32, i32
  }
  func.func @transform_18(%arg0: i32) -> (i32, i32) {
    %c0_i32 = arith.constant 0 : i32
    %c0_i32_0 = arith.constant 0 : i32
    %c0_i32_1 = arith.constant 0 : i32
    return %c0_i32, %c0_i32_0 : i32, i32
  }
  func.func @transform_19(%arg0: i32) -> (i32, i32, i32) {
    %c0_i32 = arith.constant 0 : i32
    %c0_i32_0 = arith.constant 0 : i32
    %c0_i32_1 = arith.constant 0 : i32
    return %arg0, %c0_i32, %c0_i32_0 : i32, i32, i32
  }
}

</mosaic_0001>

<bundles_post_ra>
// kernel: model_forward.1
= control target key start
LH: loop header
LB: loop body
LE: loop exit
PB: predicated region body
PF: predicated region fallthrough
CT: control target
= control target key end

     0   :  { %s7032_s0 = inlined_call_operand.vmem [shape: f32[2,17,192], index: 0, kind: input, shape index: {}]   ;;  %s7033_s1 = inlined_call_operand.vmem [shape: f32[192,32], index: 1, kind: input, shape index: {}]   ;;  %s7034_s2 = inlined_call_operand.vmem [shape: f32[17,32], index: 2, kind: input, shape index: {}]   ;;  %s7035_s3 = inlined_call_operand.vmem [shape: f32[2,1,32], index: 3, kind: input, shape index: {}]   ;;  %s7036_s4 = inlined_call_operand.vmem [shape: f32[2,1,32], index: 4, kind: input, shape index: {}]   ;;  %s7037_s5 = inlined_call_operand.vmem [shape: f32[2,32,96], index: 5, kind: input, shape index: {}]   ;;  %s7038_s6 = inlined_call_operand.vmem [shape: f32[2,1,96], index: 6, kind: input, shape index: {}]   ;;  %s7039_s7 = inlined_call_operand.vmem [shape: f32[2,32,32], index: 7, kind: input, shape index: {}]   ;;  %s7040_s8 = inlined_call_operand.vmem [shape: f32[2,1,32], index: 8, kind: input, shape index: {}]   ;;  %s7041_s9 = inlined_call_operand.vmem [shape: f32[2,1,32], index: 9, kind: input, shape index: {}]   ;;  %s7042_s10 = inlined_call_operand.vmem [shape: f32[2,1,32], index: 10, kind: input, shape index: {}]   ;;  %s7043_s11 = inlined_call_operand.vmem [shape: f32[2,32,128], index: 11, kind: input, shape index: {}]   ;;  %s7044_s12 = inlined_call_operand.vmem [shape: f32[2,1,128], index: 12, kind: input, shape index: {}]   ;;  %s7045_s13 = inlined_call_operand.vmem [shape: f32[2,128,32], index: 13, kind: input, shape index: {}]   ;;  %s7046_s14 = inlined_call_operand.vmem [shape: f32[2,1,32], index: 14, kind: input, shape index: {}]   ;;  %s7047_s15 = inlined_call_operand.vmem [shape: f32[1,32], index: 15, kind: input, shape index: {}]   ;;  %s7048_s16 = inlined_call_operand.vmem [shape: f32[1,32], index: 16, kind: input, shape index: {}]   ;;  %s7049_s17 = inlined_call_operand.vmem [shape: f32[32,10], index: 17, kind: input, shape index: {}]   ;;  %s7050_s18 = inlined_call_operand.vmem [shape: f32[1,10], index: 18, kind: input, shape index: {}]   ;;  %s7051_s19 = inlined_call_operand.hbm [shape: f32[2,1,10], index: 19, kind: output, shape index: {}]  }
   0x1   :  { %7084 = sst [smem:[#allocation11_spill]] %s7032_s0 }
   0x2   :  { %7085 = sst [smem:[#allocation12_spill]] %s7033_s1 }
   0x3   :  { %7086 = sst [smem:[#allocation13_spill]] %s7034_s2 }
   0x4   :  { %7087 = sst [smem:[#allocation14_spill]] %s7035_s3 }
   0x5   :  { %7088 = sst [smem:[#allocation15_spill]] %s7036_s4 }
   0x6   :  { %7089 = sst [smem:[#allocation16_spill]] %s7037_s5 }
   0x7   :  { %7090 = sst [smem:[#allocation17_spill]] %s7038_s6 }
   0x8   :  { %7091 = sst [smem:[#allocation18_spill]] %s7051_s19 }
   0x9   :  { %24 = vsyncpa [#allocation3], 0 }
   0xa   :  { %26 = vsyncpa [#allocation3 + $0x1], 0  ;;  %s5906_s0 = smov 0   ;;  %s5908_s30 = smov 0  }
   0xb   :  { %s5910_s20 = smov 0   ;;  %s5912_s21 = smov 0  }
   0xc LB: > { %7092 = sst [smem:[#allocation5_spill]] %s5777_s0  ;;  %s5927_s1 = sadd.s32 4294967295, %s5789_s21   ;;  %s5789_s21 = sphi %s5912_s21, %s7125_s21   ;;  %s5785_s20 = sphi %s5910_s20, %s7127_s20   ;;  %s5781_s30 = sphi %s5908_s30, %s7129_s30   ;;  %s5777_s0 = sphi %s5906_s0, %s7128_s0  }
   0xd   : > { %7093 = sst [smem:[#allocation6_spill]] %s5785_s20  ;;  %s4421_s22 = sadd.s32 4294967294, %s5789_s21  }
   0xe   : > { %7094 = sst [smem:[#allocation7_spill]] %s5789_s21  ;;  %s5931_s2 = sadd.s32 1, %s5789_s21  }
   0xf   : > { %7095 = sst [smem:[#allocation8_spill]] %s5931_s2  ;;  %s443_s23 = sadd.s32 1, %s5785_s20 }
  0x10   : > { %s440_s24 = ssub.s32 %s5789_s21, %s5931_s2  ;;  %p453_p0 = scmp.ne.s32.totalorder %s5785_s20, %s5781_s30 }
  0x11   : > { %p441_p1 = scmp.eq.s32.totalorder %s440_s24, 0  ;;  %p454_p2 = scmp.eq.s32.totalorder %s5927_s1, 1 }
  0x12   : > { %p459_p3 = scmp.ne.s32.totalorder %s5781_s30, %s5777_s0  ;;  %p460_p4 = scmp.eq.s32.totalorder %s4421_s22, 1 }
  0x13   : > { %s5942_s25 = scalar_select %p441_p1, %s5785_s20, %s443_s23  }
  0x14   : > { %p5944_p5 = por %p454_p2, %p453_p0  ;;  %p5948_p6 = por %p460_p4, %p459_p3 }
  0x15   : > { %7096 = sst [smem:[#allocation9_spill]] %s5942_s25  ;;  %p4424_p7 = scmp.ge.s32.totalorder %s5789_s21, 1 }
  0x16   : > { %s7098_s26 = scalar_select %p5948_p6, 1, 0 }
  0x17   : > { %p540_p8 = scmp.lt.s32.totalorder %s5789_s21, 3 }
  0x18   : > { %7099 = sst [smem:[#allocation10_spill]] %s7098_s26 }
  0x19   : > { %p541_p9 = pnand %p4424_p7, %p540_p8 }
  0x1a   : > { %s7100_s29 = sld [smem:[#allocation12_spill]] (!%p541_p9)  ;;  %p595_p10 = scmp.lt.s32.totalorder (!%p541_p9), %s5927_s1, 1  ;;  %v5791_v3 = vmov (!%p541_p9), 0.0|0.0   ;;  %vm633_vm0 = vcmask (!%p541_p9), 523264   ;;  %vm725_vm1 = vcmask (!%p541_p9), 261120   ;;  %vm732_vm2 = vcmask (!%p541_p9), 253952  }
  0x1b   : > { %544 = sbr.rel (%p541_p9) target bundleno = 8289 (0x2061), region = 96  ;;  %5289 = vmatprep.subr.bf16.mxu0 (!%p541_p9), %v5791_v3  ;;  %5325 = vmatprep.subr.bf16.mxu1 (!%p541_p9), %v5791_v3  ;;  %s7101_s20 = sld [smem:[#allocation11_spill]] (!%p541_p9)  ;;  %vm5792_vm3 = vmmov (!%p541_p9), 0   ;;  %vm898_vm4 = vcmask (!%p541_p9), 64512   ;;  %vm991_vm6 = vcmask (!%p541_p9), 138240   ;;  %vm998_vm7 = vcmask (!%p541_p9), 131072  }
  0x1c   : > { %s7102_s26 = sld [smem:[#allocation13_spill]] (!%p541_p9)  ;;  %s7103_s5 = sld [smem:[#allocation16_spill]] (!%p541_p9)  ;;  %vm6135_vm5 = vmpackc.low (!%p541_p9), %vm898_vm4, %vm898_vm4  ;;  %vm1043_vm8 = vcmask (!%p541_p9), 1040384   ;;  %vm4351_vm9 = vcmask (!%p541_p9), 73728  }
  0x1d   : > { %s7104_s19 = sld [smem:[#allocation14_spill]] (!%p541_p9)  ;;  %s7105_s4 = sld [smem:[#allocation15_spill]] (!%p541_p9) }
  0x1e   : > { %s7106_s6 = sld [smem:[#allocation17_spill]] (!%p541_p9)  ;;  %s7082_s28 = smov (!%p541_p9), 96  }
  0x1f   : > { %s7076_s22 = smov (!%p541_p9), 64   ;;  %s7080_s0 = smov (!%p541_p9), 88  }
  0x20   : > { %v606_v0 = vld [vmem:[%s7100_s29] sm:$0xff] (!%p541_p9)  ;;  %v607_v1 = vld [vmem:[%s7100_s29 + $0x8] sm:$0xff] (!%p541_p9)  ;;  %v608_v2 = vld [vmem:[%s7100_s29 + $0x10] sm:$0xff] (!%p541_p9)  ;;  %s7064_s25 = smov (!%p541_p9), 80   ;;  %s7074_s21 = smov (!%p541_p9), 56  }
  0x21   : > { %v5290_v4 = vpack.c.bf16 (!%p541_p9), %v607_v1, %v606_v0  ;;  %v609_v5 = vld [vmem:[%s7100_s29 + $0x18] sm:$0xff] (!%p541_p9)  ;;  %v610_v7 = vld [vmem:[%s7100_s29 + $0x20] sm:$0xff] (!%p541_p9)  ;;  %v611_v8 = vld [vmem:[%s7100_s29 + $0x28] sm:$0xff] (!%p541_p9)  ;;  %s7072_s23 = smov (!%p541_p9), 48  }
  0x22   : > { %s596_s27 = scalar_select %p595_p10, %s5927_s1, 1  ;;  %v5293_v6 = vpack.c.bf16 %v609_v5, %v608_v2  ;;  %v5296_v9 = vpack.c.bf16 %v611_v8, %v610_v7  ;;  %v612_v10 = vld [vmem:[%s7100_s29 + $0x30] sm:$0xff]  ;;  %v613_v11 = vld [vmem:[%s7100_s29 + $0x38] sm:$0xff]  ;;  %v614_v14 = vld [vmem:[%s7100_s29 + $0x40] sm:$0xff] }
  0x23   : > { %5291 = vmatpush1.bf16.msra.mxu0 %v5290_v4  ;;  %v5299_v13 = vpack.c.bf16 %v613_v11, %v612_v10  ;;  %v615_v15 = vld [vmem:[%s7100_s29 + $0x48] sm:$0xff]  ;;  %v616_v17 = vld [vmem:[%s7100_s29 + $0x50] sm:$0xff]  ;;  %v617_v18 = vld [vmem:[%s7100_s29 + $0x58] sm:$0xff] }
  0x24   : > { %5292 = vmatprep.subr.bf16.mxu0 %v5791_v3  ;;  %s5459_s24 = smul.u32 48, %s596_s27  ;;  %v5302_v16 = vpack.c.bf16 %v615_v15, %v614_v14  ;;  %v5305_v19 = vpack.c.bf16 %v617_v18, %v616_v17  ;;  %v618_v20 = vld [vmem:[%s7100_s29 + $0x60] sm:$0xff]  ;;  %v619_v21 = vld [vmem:[%s7100_s29 + $0x68] sm:$0xff]  ;;  %v620_v23 = vld [vmem:[%s7100_s29 + $0x70] sm:$0xff]  ;;  %v5793_v15 = vmov 0.0   ;;  %s7078_s27 = smov 120  }
  0x25   : > { %v5308_v22 = vpack.c.bf16 %v619_v21, %v618_v20  ;;  %v621_v24 = vld [vmem:[%s7100_s29 + $0x78] sm:$0xff]  ;;  %v622_v26 = vld [vmem:[%s7100_s29 + $0x80] sm:$0xff]  ;;  %v623_v27 = vld [vmem:[%s7100_s29 + $0x88] sm:$0xff]  ;;  %4808 = vmatprep.mubr.msk.f32.mxu1 %vm5792_vm3, %v5793_v15 }
  0x26   : > { %s5980_s2 = scalar_lea.vmem %s7101_s20, %s5459_s24  ;;  %v5311_v25 = vpack.c.bf16 %v621_v24, %v620_v23  ;;  %v5314_v28 = vpack.c.bf16 %v623_v27, %v622_v26  ;;  %v624_v29 = vld [vmem:[%s7100_s29 + $0x90] sm:$0xff]  ;;  %v625_v30 = vld [vmem:[%s7100_s29 + $0x98] sm:$0xff]  ;;  %v626_v32 = vld [vmem:[%s7100_s29 + $0xa0] sm:$0xff]  ;;  %s7066_s24 = smov 104  }
  0x27   : > { %5294 = vmatpush1.bf16.msra.mxu0 %v5293_v6  ;;  %v601_v12 = vld [vmem:[%s5980_s2 + $0x8] sm:$0xff]  ;;  %v5317_v31 = vpack.c.bf16 %v625_v30, %v624_v29  ;;  %v628_v35 = vld [vmem:[%s7100_s29 + $0xb0] sm:$0xff]  ;;  %v629_v36 = vld [vmem:[%s7100_s29 + $0xb8] sm:$0xff] }
  0x28   : > { %5295 = vmatprep.subr.bf16.mxu0 %v5791_v3  ;;  %4426 = vmatprep.mubr.msk.f32.mxu0 %vm633_vm0, %v601_v12  ;;  %v627_v33 = vld [vmem:[%s7100_s29 + $0xa8] sm:$0xff]  ;;  %v5323_v37 = vpack.c.bf16 %v629_v36, %v628_v35  ;;  %v600_v38 = vld [vmem:[%s5980_s2] sm:$0xff]  ;;  %v603_v39 = vld [vmem:[%s5980_s2 + $0x18] sm:$0xff] }
  0x29   : > { %v5320_v34 = vpack.c.bf16 %v627_v33, %v626_v32  ;;  %v602_v40 = vld [vmem:[%s5980_s2 + $0x10] sm:$0xff]  ;;  %v605_v41 = vld [vmem:[%s5980_s2 + $0x28] sm:$0x1]  ;;  %v604_v42 = vld [vmem:[%s5980_s2 + $0x20] sm:$0x1]  ;;  %s7062_s2 = smov 112  }
  0x2a   : > { %v630_v43 = vld [vmem:[%s7102_s26] sm:$0xff]  ;;  %v631_v47 = vld [vmem:[%s7102_s26 + $0x8] sm:$0xff]  ;;  %v632_v52 = vld [vmem:[%s7102_s26 + $0x10] sm:$0x1] }
  0x2b   : > { %5297 = vmatpush1.bf16.msra.mxu0 %v5296_v9  ;;  %v785_v10 = vld [vmem:[%s7103_s5] sm:$0xff]  ;;  %v786_v11 = vld [vmem:[%s7103_s5 + $0x8] sm:$0xff]  ;;  %v788_v14 = vld [vmem:[%s7103_s5 + $0x18] sm:$0xff] }
  0x2c   : > { %5298 = vmatprep.subr.bf16.mxu0 %v5791_v3  ;;  %v5326_v12 = vpack.c.bf16 %v786_v11, %v785_v10  ;;  %v4429_v27 = vld [vmem:[%s7104_s19] ss:$0 sm:$0xff] }
  0x2d   : > { %v4430_v29 = vld [vmem:[%s7105_s4] ss:$0 sm:$0xff] }
  0x2e   : > { %5327 = vmatpush3.bf16.msra.mxu1 %v5326_v12 }
  0x2f   : > { %5300 = vmatpush1.bf16.msra.mxu0 %v5299_v13  ;;  %v787_v13 = vld [vmem:[%s7103_s5 + $0x10] sm:$0xff]  ;;  %5328 = vmatprep.subr.bf16.mxu1 %v5791_v3 }
  0x30   : > { %5301 = vmatprep.subr.bf16.mxu0 %v5791_v3 }
  0x33   : > { %5303 = vmatpush1.bf16.msra.mxu0 %v5302_v16  ;;  %v5329_v16 = vpack.c.bf16 %v788_v14, %v787_v13 }
  0x34   : > { %5304 = vmatprep.subr.bf16.mxu0 %v5791_v3 }
  0x35   : > { %5330 = vmatpush3.bf16.msra.mxu1 %v5329_v16 }
  0x36   : > { %5331 = vmatprep.subr.bf16.mxu1 %v5791_v3 }
  0x37   : > { %5306 = vmatpush1.bf16.msra.mxu0 %v5305_v19 }
  0x38   : > { %5307 = vmatprep.subr.bf16.mxu0 %v5791_v3 }
  0x3b   : > { %5309 = vmatpush1.bf16.msra.mxu0 %v5308_v22 }
  0x3c   : > { %5310 = vmatprep.subr.bf16.mxu0 %v5791_v3 }
  0x3f   : > { %5312 = vmatpush1.bf16.msra.mxu0 %v5311_v25 }
  0x40   : > { %5313 = vmatprep.subr.bf16.mxu0 %v5791_v3 }
  0x43   : > { %5315 = vmatpush1.bf16.msra.mxu0 %v5314_v28 }
  0x44   : > { %5316 = vmatprep.subr.bf16.mxu0 %v5791_v3 }
  0x47   : > { %5318 = vmatpush1.bf16.msra.mxu0 %v5317_v31 }
  0x48   : > { %5319 = vmatprep.subr.bf16.mxu0 %v5791_v3 }
  0x4b   : > { %5321 = vmatpush1.bf16.msra.mxu0 %v5320_v34 }
  0x4c   : > { %5322 = vmatprep.subr.bf16.mxu0 %v5791_v3 }
  0x4f   : > { %5324 = vmatpush1.bf16.msra.mxu0 %v5323_v37 }
  0x50   : > { %5345 = vmatprep.subr.bf16.mxu0 %v5791_v3 }
  0x52   : > { %708 = vmatmul.mubr.f32.vlgmr.msra.gmra.mrb[0].mxu0 %v600_v38 }
  0x53   : > { %4427 = vmatprep.mubr.msk.f32.mxu0 %vm633_vm0, %v603_v39 }
  0x56   : > { %713 = vmatmul.mubr.f32.gmra.mrb[2].mxu0 %v602_v40 }
  0x57   : > { %4428 = vmatprep.mubr.msk.f32.mxu0 %vm633_vm0, %v605_v41 }
  0x5a   : > { %718 = vmatmul.mubr.f32.gmra.mrb[4].mxu0 %v604_v42  ;;  %v4431_v42 = vld [vmem:[%s7106_s6] ss:$0 sm:$0xff] }
  0x5b   : > { %4905 = vmatprep.mubr.msk.f32.mxu0 %vm5792_vm3, %v5793_v15 }
 0x125   : > { %v709_v44 = vpop.f32.mrb[0].mxu0 }
 0x126   : > { %v6059_v45 = vadd.f32 %v709_v44, %v630_v43  ;;  %v711_v46 = vpop.f32.mrb[1].mxu0 }
 0x128   : > { %v726_v48 = vsel %vm725_vm1, %v6059_v45, 0.0 }
 0x129   : > { %v714_v49 = vpop.f32.mrb[2].mxu0  ;;  %727 = vadd.xlane.f32.xlu0 %v726_v48 }
 0x12a   : > { %v6066_v50 = vadd.f32 %v714_v49, %v631_v47  ;;  %v716_v51 = vpop.f32.mrb[3].mxu0 }
 0x12c   : > { %v729_v53 = vsel %vm725_vm1, %v6066_v50, 0.0 }
 0x12d   : > { %v719_v54 = vpop.f32.mrb[4].mxu0  ;;  %730 = vadd.xlane.f32.xlu0 %v729_v53 }
 0x12e   : > { %v6073_v55 = vadd.f32 %v719_v54, %v632_v52  ;;  %v721_v56 = vpop.f32.mrb[5].mxu0 }
 0x130   : > { %v733_v57 = vsel %vm732_vm2, %v6073_v55, 0.0 }
 0x131   : > { %734 = vadd.xlane.f32.xlu1 %v733_v57  ;;  %v4510_v57 = vld [vmem:[%s7039_s7 + $0x30] sm:$0xff] }
 0x1b6   : > { %v728_v58 = vpop.xlane.xlu0 %727 }
 0x1b7   : > { %v737_v59 = vmul.f32 0.03125, %v728_v58 }
 0x1b9   : > { %v740_v60 = vsub.f32 %v6059_v45, %v737_v59 }
 0x1ba   : > { %v731_v61 = vpop.xlane.xlu0 %730 }
 0x1bb   : > { %v738_v62 = vmul.f32 0.03125, %v731_v61  ;;  %v743_v63 = vmul.f32 %v740_v60, %v740_v60 }
 0x1bd   : > { %v741_v0 = vsub.f32 %v6066_v50, %v738_v62  ;;  %v746_v1 = vsel %vm725_vm1, %v743_v63, 0.0 }
 0x1be   : > { %v735_v2 = vpop.xlane.xlu1 %734  ;;  %747 = vadd.xlane.f32.xlu1 %v746_v1 }
 0x1bf   : > { %v739_v4 = vmul.f32 0.03125, %v735_v2  ;;  %v744_v5 = vmul.f32 %v741_v0, %v741_v0 }
 0x1c1   : > { %v742_v6 = vsub.f32 %v6073_v55, %v739_v4  ;;  %v749_v7 = vsel %vm725_vm1, %v744_v5, 0.0 }
 0x1c2   : > { %750 = vadd.xlane.f32.xlu0 %v749_v7 }
 0x1c3   : > { %v745_v8 = vmul.f32 %v742_v6, %v742_v6 }
 0x1c5   : > { %v752_v9 = vsel %vm732_vm2, %v745_v8, 0.0 }
 0x1c6   : > { %753 = vadd.xlane.f32.xlu1 %v752_v9 }
 0x24b   : > { %v748_v17 = vpop.xlane.xlu1 %747 }
 0x24c   : > { %v755_v18 = vmul.f32 0.03125, %v748_v17 }
 0x24e   : > { %v758_v19 = vadd.f32 1e-06, %v755_v18 }
 0x24f   : > { %v751_v20 = vpop.xlane.xlu0 %750 }
 0x250   : > { %5593 = vrsqrt.f32 %v758_v19  ;;  %v756_v21 = vmul.f32 0.03125, %v751_v20 }
 0x252   : > { %v759_v22 = vadd.f32 1e-06, %v756_v21 }
 0x253   : > { %v754_v23 = vpop.xlane.xlu1 %753 }
 0x254   : > { %5595 = vrsqrt.f32 %v759_v22  ;;  %v757_v24 = vmul.f32 0.03125, %v754_v23 }
 0x256   : > { %v760_v25 = vadd.f32 1e-06, %v757_v24 }
 0x258   : > { %5597 = vrsqrt.f32 %v760_v25 }
 0x25a   : > { %v5594_v26 = vpop.eup %5593 }
 0x25b   : > { %v764_v28 = vmul.f32 %v5594_v26, %v740_v60 }
 0x25d   : > { %v773_v30 = vmul.f32 %v4429_v27, %v764_v28 }
 0x25e   : > { %v5596_v31 = vpop.eup %5595 }
 0x25f   : > { %v782_v32 = vadd.f32 %v4430_v29, %v773_v30  ;;  %v765_v33 = vmul.f32 %v5596_v31, %v741_v0 }
 0x261   : > { %4809 = vmatmul.mubr.msk.f32.vlgmr.msra.gmra.mrb[0].mxu1 %vm725_vm1, %v782_v32  ;;  %v774_v34 = vmul.f32 %v4429_v27, %v765_v33 }
 0x262   : > { %v5598_v35 = vpop.eup %5597  ;;  %4811 = vmatprep.mubr.msk.f32.mxu1 %vm5792_vm3, %v5793_v15 }
 0x263   : > { %v783_v36 = vadd.f32 %v4430_v29, %v774_v34  ;;  %v766_v37 = vmul.f32 %v5598_v35, %v742_v6 }
 0x265   : > { %4812 = vmatmul.mubr.msk.f32.gmra.mrb[2].mxu1 %vm725_vm1, %v783_v36  ;;  %v775_v38 = vmul.f32 %v4429_v27, %v766_v37 }
 0x266   : > { %4814 = vmatprep.mubr.msk.f32.mxu1 %vm5792_vm3, %v5793_v15 }
 0x267   : > { %v784_v39 = vadd.f32 %v4430_v29, %v775_v38 }
 0x269   : > { %4815 = vmatmul.mubr.msk.f32.gmra.mrb[4].mxu1 %vm725_vm1, %v784_v39 }
 0x26a   : > { %4823 = vmatprep.mubr.msk.f32.mxu1 %vm5792_vm3, %v5793_v15 }
 0x334   : > { %v871_v40 = vpop.f32.mrb[0].mxu1 }
 0x335   : > { %v4810_v41 = vpop.f32.mrb[1].mxu1  ;;  %v6119_v44 = vadd.f32 %v4431_v42, %v871_v40 }
 0x338   : > { %v876_v43 = vpop.f32.mrb[2].mxu1 }
 0x339   : > { %v6121_v46 = vadd.f32 %v4431_v42, %v876_v43  ;;  %v4813_v47 = vpop.f32.mrb[3].mxu1 }
 0x33b   : > { %v6125_v48 = vpack.i.bf16 %v6121_v46, %v6119_v44 }
 0x33c   : > { %v881_v49 = vpop.f32.mrb[4].mxu1 }
 0x33d   : > { %v6127_v51 = vadd.f32 %v4431_v42, %v881_v49  ;;  %5514 = vrot.lane.b32.xlu0 %v6125_v48, %s7082_s28  ;;  %v4816_v52 = vpop.f32.mrb[5].mxu1 }
 0x33f   : > { %896 = vrot.lane.b32.xlu1 %v6127_v51, %s7082_s28 }
 0x3af   : > { %v5515_v53 = vpop.permute.xlu0 %5514 }
 0x3b0   : > { %v5517_v54 = vunpack.i.h.bf16 %v5515_v53  ;;  %v5516_v56 = vunpack.i.l.bf16 %v5515_v53 }
 0x3b1   : > { %v897_v59 = vpop.permute.xlu1 %896 }
 0x3b2   : > { %v5332_v58 = vpack.c.bf16 %v5517_v54, %v5516_v56 }
 0x3b4   : > { %5334 = vmatpush3.bf16.xpose.msk.msra.mxu1 %vm6135_vm5, %v5332_v58 }
 0x3b5   : > { %4821 = vmatprep.subr.mxu1 %v5793_v15 }
 0x3bc   : > { %4822 = vmatpush3.xpose.msk.msra.mxu1 %vm898_vm4, %v897_v59 }
 0x3bd   : > { %5335 = vmatprep.subr.bf16.mxu1 %v5791_v3 }
 0x3bf   : > { %4824 = vmatmul.mubr.msk.f32.vlgmr.msra.gmra.mrb[6].mxu1 %vm898_vm4, %v6119_v44 }
 0x3c0   : > { %4826 = vmatprep.mubr.msk.f32.mxu1 %vm5792_vm3, %v5793_v15 }
 0x3c3   : > { %4827 = vmatmul.mubr.msk.f32.gmra.mrb[8].mxu1 %vm898_vm4, %v6121_v46 }
 0x3c4   : > { %4829 = vmatprep.mubr.msk.f32.mxu1 %vm5792_vm3, %v5793_v15 }
 0x3c7   : > { %4830 = vmatmul.mubr.msk.f32.gmra.mrb[10].mxu1 %vm898_vm4, %v6127_v51 }
 0x3c8   : > { %4838 = vmatprep.mubr.msk.f32.mxu1 %vm5792_vm3, %v5793_v15 }
 0x492   : > { %v977_v60 = vpop.f32.mrb[6].mxu1 }
 0x493   : > { %v4825_v61 = vpop.f32.mrb[7].mxu1  ;;  %v992_v62 = vsel %vm991_vm6, %v977_v60, -inf }
 0x494   : > { %993 = vmax.xlane.f32.xlu1 %v992_v62 }
 0x496   : > { %v982_v63 = vpop.f32.mrb[8].mxu1 }
 0x497   : > { %v4828_v0 = vpop.f32.mrb[9].mxu1  ;;  %v995_v1 = vsel %vm991_vm6, %v982_v63, -inf }
 0x498   : > { %996 = vmax.xlane.f32.xlu0 %v995_v1 }
 0x49a   : > { %v987_v2 = vpop.f32.mrb[10].mxu1 }
 0x49b   : > { %v4831_v4 = vpop.f32.mrb[11].mxu1  ;;  %v999_v5 = vsel %vm998_vm7, %v987_v2, -inf }
 0x49c   : > { %1000 = vmax.xlane.f32.xlu0 %v999_v5 }
 0x521   : > { %v994_v6 = vpop.xlane.xlu1 %993 }
 0x522   : > { %v1002_v7 = vsub.f32 %v977_v60, %v994_v6 }
 0x524   : > { %v1005_v8 = vmul.f32 1.442695, %v1002_v7 }
 0x525   : > { %v997_v9 = vpop.xlane.xlu0 %996 }
 0x526   : > { %5599 = vpow2.f32 %v1005_v8  ;;  %v1003_v10 = vsub.f32 %v982_v63, %v997_v9 }
 0x528   : > { %v1007_v11 = vmul.f32 1.442695, %v1003_v10 }
 0x529   : > { %v1001_v17 = vpop.xlane.xlu0 %1000 }
 0x52a   : > { %5601 = vpow2.f32 %v1007_v11  ;;  %v1004_v18 = vsub.f32 %v987_v2, %v1001_v17 }
 0x52c   : > { %v1009_v19 = vmul.f32 1.442695, %v1004_v18 }
 0x52e   : > { %5603 = vpow2.f32 %v1009_v19 }
 0x530   : > { %v5600_v12 = vpop.eup %5599 }
 0x531   : > { %v1011_v13 = vsel %vm991_vm6, %v5600_v12, 0.0 }
 0x532   : > { %1012 = vadd.xlane.f32.xlu1 %v1011_v13 }
 0x534   : > { %v5602_v14 = vpop.eup %5601 }
 0x535   : > { %v1014_v16 = vsel %vm991_vm6, %v5602_v14, 0.0 }
 0x536   : > { %1015 = vadd.xlane.f32.xlu0 %v1014_v16 }
 0x538   : > { %v5604_v20 = vpop.eup %5603 }
 0x539   : > { %v1017_v21 = vsel %vm998_vm7, %v5604_v20, 0.0 }
 0x543   : > { %1030 = vrot.lane.b32.xlu1 %v6127_v51, %s7076_s22 }
 0x547   : > { %5524 = vrot.lane.b32.xlu1 %v6125_v48, %s7080_s0 }
 0x54b   : > { %1136 = vrot.lane.b32.xlu1 %v6127_v51, %s7080_s0  ;;  %s7120_s0 = sld [smem:[#allocation18_spill]] }
 0x54c   : > { %5519 = vrot.lane.b32.xlu0 %v6125_v48, %s7076_s22  ;;  %s7112_s22 = smov 64  }
 0x550   : > { %1126 = vrot.lane.b32.xlu0 %v6119_v44, %s7078_s27 }
 0x554   : > { %1130 = vrot.lane.b32.xlu0 %v6127_v51, %s7078_s27 }
 0x558   : > { %1550 = vrot.lane.b32.xlu0 %v6127_v51, %s7064_s25 }
 0x55c   : > { %1542 = vrot.lane.b32.xlu0 %v6121_v46, %s7062_s2 }
 0x56f   : > { %1018 = vadd.xlane.f32.xlu1 %v1017_v21 }
 0x580   : > { %1128 = vrot.lane.b32.xlu1 %v6121_v46, %s7078_s27  ;;  %s7113_s27 = smov 56  }
 0x584   : > { %5529 = vrot.lane.b32.xlu1 %v6125_v48, %s7064_s25  ;;  %s7070_s25 = smov 72  }
 0x588   : > { %1540 = vrot.lane.b32.xlu1 %v6119_v44, %s7062_s2 }
 0x58c   : > { %1544 = vrot.lane.b32.xlu1 %v6127_v51, %s7062_s2  ;;  %s7068_s2 = smov 40  }
 0x5bf   : > { %v1013_v22 = vpop.xlane.xlu1 %1012 }
 0x5c0   : > { %5605 = vrcp.f32 %v1013_v22 }
 0x5c3   : > { %v1016_v23 = vpop.xlane.xlu0 %1015  ;;  %v1031_v25 = vpop.permute.xlu1 %1030 }
 0x5c4   : > { %5607 = vrcp.f32 %v1016_v23 }
 0x5c7   : > { %v5520_v24 = vpop.permute.xlu0 %5519  ;;  %v5525_v30 = vpop.permute.xlu1 %5524 }
 0x5c8   : > { %v5522_v26 = vunpack.i.h.bf16 %v5520_v24  ;;  %v5521_v27 = vunpack.i.l.bf16 %v5520_v24  ;;  %v5527_v33 = vunpack.i.h.bf16 %v5525_v30  ;;  %v5526_v34 = vunpack.i.l.bf16 %v5525_v30 }
 0x5ca   : > { %v5336_v28 = vpack.c.bf16 %v5522_v26, %v5521_v27  ;;  %v5606_v29 = vpop.eup %5605  ;;  %v5339_v36 = vpack.c.bf16 %v5527_v33, %v5526_v34 }
 0x5cb   : > { %v1021_v31 = vmul.f32 %v5606_v29, %v5600_v12  ;;  %v1137_v37 = vpop.permute.xlu1 %1136  ;;  %v1127_v40 = vpop.permute.xlu0 %1126 }
 0x5cc   : > { %5337 = vmatpush3.bf16.msra.mxu1 %v5336_v28 }
 0x5cd   : > { %4836 = vmatprep.subr.mxu1 %v5793_v15 }
 0x5ce   : > { %v5608_v32 = vpop.eup %5607 }
 0x5cf   : > { %v1023_v35 = vmul.f32 %v5608_v32, %v5602_v14  ;;  %v1131_v53 = vpop.permute.xlu0 %1130 }
 0x5d0   : > { %4837 = vmatpush3.msk.msra.mxu1 %vm1043_vm8, %v1031_v25 }
 0x5d1   : > { %4839 = vmatmul.mubr.msk.f32.vlgmr.msra.gmra.mrb[12].mxu1 %vm991_vm6, %v1021_v31  ;;  %5338 = vmatprep.subr.bf16.mxu1 %v5791_v3 }
 0x5d2   : > { %4841 = vmatprep.mubr.msk.f32.mxu1 %vm5792_vm3, %v5793_v15 }
 0x5d3   : > { %v1551_v54 = vpop.permute.xlu0 %1550 }
 0x5d5   : > { %4842 = vmatmul.mubr.msk.f32.gmra.mrb[14].mxu1 %vm991_vm6, %v1023_v35 }
 0x5d6   : > { %4844 = vmatprep.mubr.msk.f32.mxu1 %vm5792_vm3, %v5793_v15 }
 0x5d7   : > { %5341 = vmatpush3.bf16.xpose.msk.msra.mxu1 %vm6135_vm5, %v5339_v36  ;;  %v1543_v58 = vpop.permute.xlu0 %1542 }
 0x5d8   : > { %4851 = vmatprep.subr.mxu1 %v5793_v15 }
 0x5df   : > { %4852 = vmatpush3.xpose.msk.msra.mxu1 %vm898_vm4, %v1137_v37 }
 0x5e0   : > { %5342 = vmatprep.subr.bf16.mxu1 %v5791_v3 }
 0x5fc   : > { %v1019_v38 = vpop.xlane.xlu1 %1018 }
 0x5fd   : > { %5609 = vrcp.f32 %v1019_v38 }
 0x600   : > { %v1129_v39 = vpop.permute.xlu1 %1128 }
 0x604   : > { %v5530_v41 = vpop.permute.xlu1 %5529 }
 0x605   : > { %v5532_v42 = vunpack.i.h.bf16 %v5530_v41  ;;  %v5531_v43 = vunpack.i.l.bf16 %v5530_v41 }
 0x607   : > { %v5610_v47 = vpop.eup %5609  ;;  %v5346_v49 = vpack.c.bf16 %v5532_v42, %v5531_v43 }
 0x608   : > { %v1025_v52 = vmul.f32 %v5610_v47, %v5604_v20  ;;  %v1541_v56 = vpop.permute.xlu1 %1540 }
 0x609   : > { %5348 = vmatpush3.bf16.xpose.msk.msra.mxu0 %vm6135_vm5, %v5346_v49 }
 0x60a   : > { %4845 = vmatmul.mubr.msk.f32.gmra.mrb[16].mxu1 %vm991_vm6, %v1025_v52  ;;  %4903 = vmatprep.subr.mxu0 %v5793_v15 }
 0x60b   : > { %4853 = vmatprep.mubr.msk.f32.mxu1 %vm5792_vm3, %v5793_v15 }
 0x60c   : > { %v1545_v59 = vpop.permute.xlu1 %1544 }
 0x60e   : > { %4854 = vmatmul.mubr.msk.f32.vlgmr.msra.gmra.mrb[18].mxu1 %vm898_vm4, %v1127_v40 }
 0x60f   : > { %4856 = vmatprep.mubr.msk.f32.mxu1 %vm5792_vm3, %v5793_v15 }
 0x611   : > { %4904 = vmatpush3.xpose.msk.msra.mxu0 %vm898_vm4, %v1551_v54 }
 0x612   : > { %4857 = vmatmul.mubr.msk.f32.gmra.mrb[20].mxu1 %vm898_vm4, %v1129_v39  ;;  %4929 = vmatprep.subr.mxu0 %v5793_v15 }
 0x613   : > { %4859 = vmatprep.mubr.msk.f32.mxu1 %vm5792_vm3, %v5793_v15 }
 0x614   : > { %4906 = vmatmul.mubr.msk.f32.vlgmr.msra.gmra.mrb[6].mxu0 %vm898_vm4, %v1541_v56 }
 0x615   : > { %4908 = vmatprep.mubr.msk.f32.mxu0 %vm5792_vm3, %v5793_v15 }
 0x616   : > { %4860 = vmatmul.mubr.msk.f32.gmra.mrb[22].mxu1 %vm898_vm4, %v1131_v53 }
 0x617   : > { %4868 = vmatprep.mubr.msk.f32.mxu1 %vm5792_vm3, %v5793_v15 }
 0x618   : > { %4909 = vmatmul.mubr.msk.f32.gmra.mrb[8].mxu0 %vm898_vm4, %v1543_v58 }
 0x619   : > { %4911 = vmatprep.mubr.msk.f32.mxu0 %vm5792_vm3, %v5793_v15 }
 0x61c   : > { %4912 = vmatmul.mubr.msk.f32.gmra.mrb[10].mxu0 %vm898_vm4, %v1545_v59 }
 0x61d   : > { %4931 = vmatprep.mubr.msk.f32.mxu0 %vm5792_vm3, %v5793_v15 }
 0x6a4   : > { %v6226_v60 = vpop.f32.mrb[12].mxu1 }
 0x6a5   : > { %v4840_v61 = vpop.f32.mrb[13].mxu1 }
 0x6a8   : > { %v6228_v62 = vpop.f32.mrb[14].mxu1 }
 0x6a9   : > { %v4843_v63 = vpop.f32.mrb[15].mxu1 }
 0x6dd   : > { %v6230_v0 = vpop.f32.mrb[16].mxu1 }
 0x6de   : > { %v4846_v1 = vpop.f32.mrb[17].mxu1 }
 0x6e1   : > { %v1216_v2 = vpop.f32.mrb[18].mxu1 }
 0x6e2   : > { %v4855_v4 = vpop.f32.mrb[19].mxu1  ;;  %v1230_v5 = vsel %vm991_vm6, %v1216_v2, -inf }
 0x6e3   : > { %1231 = vmax.xlane.f32.xlu0 %v1230_v5 }
 0x6e5   : > { %v1221_v6 = vpop.f32.mrb[20].mxu1 }
 0x6e6   : > { %v4858_v7 = vpop.f32.mrb[21].mxu1  ;;  %v1233_v8 = vsel %vm991_vm6, %v1221_v6, -inf }
 0x6e7   : > { %v6234_v9 = vpop.f32.mrb[6].mxu0  ;;  %1234 = vmax.xlane.f32.xlu1 %v1233_v8 }
 0x6e8   : > { %v4907_v10 = vpop.f32.mrb[7].mxu0  ;;  %v1644_v36 = vsel %vm991_vm6, %v6234_v9, -inf }
 0x6e9   : > { %v1226_v11 = vpop.f32.mrb[22].mxu1 }
 0x6ea   : > { %v4861_v12 = vpop.f32.mrb[23].mxu1  ;;  %v1236_v13 = vsel %vm998_vm7, %v1226_v11, -inf }
 0x6eb   : > { %v6237_v14 = vpop.f32.mrb[8].mxu0  ;;  %1237 = vmax.xlane.f32.xlu0 %v1236_v13 }
 0x6ec   : > { %v4910_v16 = vpop.f32.mrb[9].mxu0  ;;  %v1647_v34 = vsel %vm991_vm6, %v6237_v14, -inf }
 0x6ef   : > { %v6239_v17 = vpop.f32.mrb[10].mxu0 }
 0x6f0   : > { %v4913_v18 = vpop.f32.mrb[11].mxu0  ;;  %v1650_v35 = vsel %vm998_vm7, %v6239_v17, -inf }
 0x770   : > { %v1232_v19 = vpop.xlane.xlu0 %1231 }
 0x771   : > { %v1239_v20 = vsub.f32 %v1216_v2, %v1232_v19 }
 0x773   : > { %v1242_v21 = vmul.f32 1.442695, %v1239_v20 }
 0x774   : > { %v1235_v22 = vpop.xlane.xlu1 %1234 }
 0x775   : > { %5611 = vpow2.f32 %v1242_v21  ;;  %v1240_v23 = vsub.f32 %v1221_v6, %v1235_v22 }
 0x777   : > { %v1244_v24 = vmul.f32 1.442695, %v1240_v23 }
 0x778   : > { %v1238_v25 = vpop.xlane.xlu0 %1237 }
 0x779   : > { %5613 = vpow2.f32 %v1244_v24  ;;  %v1241_v26 = vsub.f32 %v1226_v11, %v1238_v25 }
 0x77b   : > { %v1246_v27 = vmul.f32 1.442695, %v1241_v26 }
 0x77d   : > { %5615 = vpow2.f32 %v1246_v27 }
 0x77f   : > { %v5612_v28 = vpop.eup %5611 }
 0x780   : > { %v1248_v29 = vsel %vm991_vm6, %v5612_v28, 0.0 }
 0x781   : > { %1249 = vadd.xlane.f32.xlu0 %v1248_v29 }
 0x783   : > { %v5614_v30 = vpop.eup %5613 }
 0x784   : > { %v1251_v31 = vsel %vm991_vm6, %v5614_v30, 0.0 }
 0x785   : > { %1252 = vadd.xlane.f32.xlu0 %v1251_v31 }
 0x787   : > { %v5616_v32 = vpop.eup %5615 }
 0x788   : > { %v1254_v33 = vsel %vm998_vm7, %v5616_v32, 0.0 }
 0x789   : > { %1255 = vadd.xlane.f32.xlu1 %v1254_v33 }
 0x79a   : > { %1267 = vrot.lane.b32.xlu1 %v6127_v51, %s7074_s21 }
 0x79b   : > { %5534 = vrot.lane.b32.xlu0 %v6125_v48, %s7074_s21  ;;  %s7111_s21 = smov 120  }
 0x7ba   : > { %1648 = vmax.xlane.f32.xlu0 %v1647_v34 }
 0x7be   : > { %1651 = vmax.xlane.f32.xlu0 %v1650_v35  ;;  %1645 = vmax.xlane.f32.xlu1 %v1644_v36 }
 0x80e   : > { %v1250_v37 = vpop.xlane.xlu0 %1249 }
 0x80f   : > { %5617 = vrcp.f32 %v1250_v37 }
 0x812   : > { %v1253_v38 = vpop.xlane.xlu0 %1252 }
 0x813   : > { %5619 = vrcp.f32 %v1253_v38 }
 0x816   : > { %v1256_v39 = vpop.xlane.xlu1 %1255  ;;  %v5535_v40 = vpop.permute.xlu0 %5534 }
 0x817   : > { %v5537_v41 = vunpack.i.h.bf16 %v5535_v40  ;;  %v5536_v42 = vunpack.i.l.bf16 %v5535_v40  ;;  %5621 = vrcp.f32 %v1256_v39  ;;  %v887_v40 = vld [vmem:[%s7039_s7 + $0x10] sm:$0xff] }
 0x818   : > { %4930 = vmatpush3.msra.mxu0 %v887_v40 }
 0x819   : > { %v5343_v43 = vpack.c.bf16 %v5537_v41, %v5536_v42  ;;  %v5618_v47 = vpop.eup %5617  ;;  %5356 = vmatprep.subr.bf16.mxu0 %v5791_v3 }
 0x81a   : > { %v1258_v49 = vmul.f32 %v5618_v47, %v5612_v28  ;;  %v1268_v52 = vpop.permute.xlu1 %1267 }
 0x81b   : > { %5344 = vmatpush3.bf16.msra.mxu1 %v5343_v43 }
 0x81c   : > { %4866 = vmatprep.subr.mxu1 %v5793_v15 }
 0x81d   : > { %v5620_v53 = vpop.eup %5619 }
 0x81e   : > { %v1260_v54 = vmul.f32 %v5620_v53, %v5614_v30 }
 0x81f   : > { %4867 = vmatpush3.msk.msra.mxu1 %vm1043_vm8, %v1268_v52 }
 0x820   : > { %4869 = vmatmul.mubr.msk.f32.vlgmr.msra.gmra.mrb[24].mxu1 %vm991_vm6, %v1258_v49  ;;  %4877 = vmatprep.subr.mxu1 %v5793_v15 }
 0x821   : > { %4871 = vmatprep.mubr.msk.f32.mxu1 %vm5792_vm3, %v5793_v15  ;;  %v5622_v56 = vpop.eup %5621 }
 0x822   : > { %v1262_v58 = vmul.f32 %v5622_v56, %v5616_v32 }
 0x824   : > { %4872 = vmatmul.mubr.msk.f32.gmra.mrb[26].mxu1 %vm991_vm6, %v1260_v54 }
 0x825   : > { %4874 = vmatprep.mubr.msk.f32.mxu1 %vm5792_vm3, %v5793_v15 }
 0x828   : > { %4875 = vmatmul.mubr.msk.f32.gmra.mrb[28].mxu1 %vm991_vm6, %v1262_v58 }
 0x829   : > { %4879 = vmatprep.mubr.msk.f32.mxu1 %vm5792_vm3, %v5793_v15 }
 0x847   : > { %v1649_v59 = vpop.xlane.xlu0 %1648 }
 0x848   : > { %v1654_v61 = vsub.f32 %v6237_v14, %v1649_v59  ;;  %v886_v14 = vld [vmem:[%s7039_s7 + $0x8] sm:$0xff] }
 0x849   : > { %4878 = vmatpush3.msra.mxu1 %v886_v14 }
 0x84a   : > { %v1658_v63 = vmul.f32 1.442695, %v1654_v61  ;;  %4888 = vmatprep.subr.mxu1 %v5793_v15 }
 0x84b   : > { %v1646_v1 = vpop.xlane.xlu1 %1645  ;;  %v1652_v2 = vpop.xlane.xlu0 %1651 }
 0x84c   : > { %5623 = vpow2.f32 %v1658_v63  ;;  %v1653_v4 = vsub.f32 %v6234_v9, %v1646_v1  ;;  %v1655_v5 = vsub.f32 %v6239_v17, %v1652_v2  ;;  %v885_v17 = vld [vmem:[%s7039_s7] sm:$0xff] }
 0x84e   : > { %v1656_v6 = vmul.f32 1.442695, %v1653_v4  ;;  %v1660_v7 = vmul.f32 1.442695, %v1655_v5 }
 0x850   : > { %5625 = vpow2.f32 %v1656_v6 }
 0x851   : > { %5627 = vpow2.f32 %v1660_v7 }
 0x856   : > { %v6269_v8 = vpop.eup %5623 }
 0x857   : > { %v1665_v10 = vsel %vm991_vm6, %v6269_v8, 0.0 }
 0x858   : > { %1666 = vadd.xlane.f32.xlu0 %v1665_v10 }
 0x85a   : > { %v5626_v11 = vpop.eup %5625 }
 0x85b   : > { %v1662_v12 = vsel %vm991_vm6, %v5626_v11, 0.0  ;;  %v6274_v13 = vpop.eup %5627 }
 0x85c   : > { %1663 = vadd.xlane.f32.xlu1 %v1662_v12  ;;  %v1668_v9 = vsel %vm998_vm7, %v6274_v13, 0.0 }
 0x860   : > { %1669 = vadd.xlane.f32.xlu1 %v1668_v9 }
 0x86e   : > { %5539 = vrot.lane.b32.xlu0 %v6125_v48, %s7072_s23 }
 0x871   : > { %1681 = vrot.lane.b32.xlu1 %v6127_v51, %s7072_s23  ;;  %s7114_s23 = smov 80  }
 0x872   : > { %1868 = vrot.lane.b32.xlu0 %v6119_v44, %s7066_s24 }
 0x875   : > { %5544 = vrot.lane.b32.xlu1 %v6125_v48, %s7070_s25 }
 0x876   : > { %1872 = vrot.lane.b32.xlu0 %v6127_v51, %s7066_s24 }
 0x879   : > { %1878 = vrot.lane.b32.xlu1 %v6127_v51, %s7070_s25  ;;  %s7109_s25 = smov 96  }
 0x87d   : > { %1870 = vrot.lane.b32.xlu1 %v6121_v46, %s7066_s24  ;;  %s7115_s24 = smov 112  }
 0x8e5   : > { %v1667_v44 = vpop.xlane.xlu0 %1666 }
 0x8e9   : > { %v1664_v16 = vpop.xlane.xlu1 %1663  ;;  %v5540_v20 = vpop.permute.xlu0 %5539 }
 0x8ea   : > { %v5542_v23 = vunpack.i.h.bf16 %v5540_v20  ;;  %v5541_v24 = vunpack.i.l.bf16 %v5540_v20  ;;  %5629 = vrcp.f32 %v1664_v16 }
 0x8eb   : > { %5631 = vrcp.f32 %v1667_v44 }
 0x8ec   : > { %v5350_v28 = vpack.c.bf16 %v5542_v23, %v5541_v24 }
 0x8ed   : > { %v1670_v22 = vpop.xlane.xlu1 %1669  ;;  %v1869_v37 = vpop.permute.xlu0 %1868 }
 0x8ee   : > { %5633 = vrcp.f32 %v1670_v22 }
 0x8f1   : > { %v1682_v27 = vpop.permute.xlu1 %1681  ;;  %v1873_v39 = vpop.permute.xlu0 %1872 }
 0x8f3   : > { %v1348_v18 = vpop.f32.mrb[24].mxu1 }
 0x8f4   : > { %v4870_v19 = vpop.f32.mrb[25].mxu1  ;;  %4880 = vmatmul.mubr.msk.f32.vlgmr.msra.gmra.mrb[30].mxu1 %vm898_vm4, %v1348_v18 }
 0x8f5   : > { %4882 = vmatprep.mubr.msk.f32.mxu1 %vm5792_vm3, %v5793_v15  ;;  %4889 = vmatpush3.msra.mxu1 %v885_v17  ;;  %v5545_v29 = vpop.permute.xlu1 %5544 }
 0x8f6   : > { %5349 = vmatprep.subr.bf16.mxu1 %v5791_v3  ;;  %v5547_v30 = vunpack.i.h.bf16 %v5545_v29  ;;  %v5546_v31 = vunpack.i.l.bf16 %v5545_v29 }
 0x8f7   : > { %v1353_v21 = vpop.f32.mrb[26].mxu1 }
 0x8f8   : > { %v4873_v46 = vpop.f32.mrb[27].mxu1  ;;  %4883 = vmatmul.mubr.msk.f32.gmra.mrb[32].mxu1 %vm898_vm4, %v1353_v21 }
 0x8f9   : > { %4885 = vmatprep.mubr.msk.f32.mxu1 %vm5792_vm3, %v5793_v15  ;;  %v1879_v36 = vpop.permute.xlu1 %1878 }
 0x8fb   : > { %v1358_v25 = vpop.f32.mrb[28].mxu1 }
 0x8fc   : > { %v4876_v26 = vpop.f32.mrb[29].mxu1  ;;  %4886 = vmatmul.mubr.msk.f32.gmra.mrb[34].mxu1 %vm898_vm4, %v1358_v25 }
 0x8fd   : > { %4890 = vmatprep.mubr.msk.f32.mxu1 %vm5792_vm3, %v5793_v15  ;;  %v1871_v38 = vpop.permute.xlu1 %1870 }
 0x900   : > { %4891 = vmatmul.mubr.msk.f32.vlgmr.msra.gmra.mrb[36].mxu1 %vm898_vm4, %v6226_v60  ;;  %v5630_v60 = vpop.eup %5629 }
 0x901   : > { %5351 = vmatpush3.bf16.msra.mxu1 %v5350_v28  ;;  %4893 = vmatprep.mubr.msk.f32.mxu1 %vm5792_vm3, %v5793_v15  ;;  %v1672_v32 = vmul.f32 %v5630_v60, %v5626_v11  ;;  %v5632_v33 = vpop.eup %5631 }
 0x902   : > { %4918 = vmatprep.subr.mxu1 %v5793_v15  ;;  %v1674_v34 = vmul.f32 %v5632_v33, %v6269_v8  ;;  %v5634_v35 = vpop.eup %5633 }
 0x904   : > { %4894 = vmatmul.mubr.msk.f32.gmra.mrb[38].mxu1 %vm898_vm4, %v6228_v62  ;;  %v5353_v62 = vpack.c.bf16 %v5547_v30, %v5546_v31 }
 0x905   : > { %4919 = vmatpush3.msk.msra.mxu1 %vm1043_vm8, %v1682_v27  ;;  %4896 = vmatprep.mubr.msk.f32.mxu1 %vm5792_vm3, %v5793_v15 }
 0x906   : > { %5352 = vmatprep.subr.bf16.mxu1 %v5791_v3 }
 0x908   : > { %4897 = vmatmul.mubr.msk.f32.gmra.mrb[40].mxu1 %vm898_vm4, %v6230_v0  ;;  %v1676_v0 = vmul.f32 %v5634_v35, %v6274_v13 }
 0x909   : > { %4920 = vmatprep.mubr.msk.f32.mxu1 %vm5792_vm3, %v5793_v15 }
 0x90c   : > { %4921 = vmatmul.mubr.msk.f32.vlgmr.msra.gmra.mrb[42].mxu1 %vm991_vm6, %v1672_v32  ;;  %v888_v32 = vld [vmem:[%s7039_s7 + $0x18] sm:$0xff] }
 0x90d   : > { %5355 = vmatpush3.bf16.xpose.msk.msra.mxu1 %vm6135_vm5, %v5353_v62  ;;  %4923 = vmatprep.mubr.msk.f32.mxu1 %vm5792_vm3, %v5793_v15 }
 0x90e   : > { %4944 = vmatprep.subr.mxu1 %v5793_v15 }
 0x910   : > { %4924 = vmatmul.mubr.msk.f32.gmra.mrb[44].mxu1 %vm991_vm6, %v1674_v34 }
 0x911   : > { %4926 = vmatprep.mubr.msk.f32.mxu1 %vm5792_vm3, %v5793_v15 }
 0x914   : > { %4927 = vmatmul.mubr.msk.f32.gmra.mrb[46].mxu1 %vm991_vm6, %v1676_v0 }
 0x915   : > { %4945 = vmatpush3.xpose.msk.msra.mxu1 %vm898_vm4, %v1879_v36  ;;  %4946 = vmatprep.mubr.msk.f32.mxu1 %vm5792_vm3, %v5793_v15 }
 0x916   : > { %4970 = vmatprep.subr.mxu1 %v5793_v15 }
 0x918   : > { %4947 = vmatmul.mubr.msk.f32.vlgmr.msra.gmra.mrb[48].mxu1 %vm898_vm4, %v1869_v37 }
 0x919   : > { %4949 = vmatprep.mubr.msk.f32.mxu1 %vm5792_vm3, %v5793_v15  ;;  %4971 = vmatpush3.msra.mxu1 %v888_v32 }
 0x91a   : > { %5365 = vmatprep.subr.bf16.mxu1 %v5791_v3 }
 0x91c   : > { %4950 = vmatmul.mubr.msk.f32.gmra.mrb[50].mxu1 %vm898_vm4, %v1871_v38 }
 0x91d   : > { %4952 = vmatprep.mubr.msk.f32.mxu1 %vm5792_vm3, %v5793_v15 }
 0x920   : > { %4953 = vmatmul.mubr.msk.f32.gmra.mrb[52].mxu1 %vm898_vm4, %v1873_v39 }
 0x921   : > { %4972 = vmatprep.mubr.msk.f32.mxu1 %vm5792_vm3, %v5793_v15 }
 0x9c7   : > { %v1437_v41 = vpop.f32.mrb[30].mxu1 }
 0x9c8   : > { %v4881_v42 = vpop.f32.mrb[31].mxu1 }
 0x9cb   : > { %v1442_v43 = vpop.f32.mrb[32].mxu1 }
 0x9cc   : > { %v4884_v47 = vpop.f32.mrb[33].mxu1 }
 0x9cf   : > { %v1447_v49 = vpop.f32.mrb[34].mxu1 }
 0x9d0   : > { %v4887_v52 = vpop.f32.mrb[35].mxu1 }
 0x9d3   : > { %v1526_v53 = vpop.f32.mrb[36].mxu1 }
 0x9d4   : > { %v1527_v54 = vadd.f32 %v1526_v53, %v1437_v41  ;;  %v4892_v56 = vpop.f32.mrb[37].mxu1 }
 0x9d7   : > { %v1531_v58 = vpop.f32.mrb[38].mxu1 }
 0x9d8   : > { %v1532_v59 = vadd.f32 %v1531_v58, %v1442_v43  ;;  %v4895_v61 = vpop.f32.mrb[39].mxu1 }
 0x9db   : > { %v1536_v63 = vpop.f32.mrb[40].mxu1 }
 0x9dc   : > { %v1537_v1 = vadd.f32 %v1536_v63, %v1447_v49  ;;  %v4898_v2 = vpop.f32.mrb[41].mxu1 }
 0x9df   : > { %v1762_v4 = vpop.f32.mrb[42].mxu1 }
 0x9e0   : > { %v4922_v5 = vpop.f32.mrb[43].mxu1  ;;  %4932 = vmatmul.mubr.msk.f32.vlgmr.msra.gmra.mrb[12].mxu0 %vm898_vm4, %v1762_v4 }
 0x9e1   : > { %4934 = vmatprep.mubr.msk.f32.mxu0 %vm5792_vm3, %v5793_v15 }
 0x9e3   : > { %v1767_v6 = vpop.f32.mrb[44].mxu1 }
 0x9e4   : > { %v4925_v7 = vpop.f32.mrb[45].mxu1  ;;  %4935 = vmatmul.mubr.msk.f32.gmra.mrb[14].mxu0 %vm898_vm4, %v1767_v6 }
 0x9e5   : > { %4937 = vmatprep.mubr.msk.f32.mxu0 %vm5792_vm3, %v5793_v15 }
 0x9e7   : > { %v1772_v8 = vpop.f32.mrb[46].mxu1 }
 0x9e8   : > { %v4928_v10 = vpop.f32.mrb[47].mxu1  ;;  %4938 = vmatmul.mubr.msk.f32.gmra.mrb[16].mxu0 %vm898_vm4, %v1772_v8 }
 0x9e9   : > { %4961 = vmatprep.mubr.msk.f32.mxu0 %vm5792_vm3, %v5793_v15  ;;  %v4487_v10 = vld [vmem:[%s7040_s8] ss:$0 sm:$0xff] }
 0x9eb   : > { %v1958_v11 = vpop.f32.mrb[48].mxu1 }
 0x9ec   : > { %v4948_v12 = vpop.f32.mrb[49].mxu1  ;;  %v1972_v13 = vsel %vm991_vm6, %v1958_v11, -inf }
 0x9ed   : > { %1973 = vmax.xlane.f32.xlu1 %v1972_v13 }
 0x9ef   : > { %v1963_v9 = vpop.f32.mrb[50].mxu1 }
 0x9f0   : > { %v4951_v14 = vpop.f32.mrb[51].mxu1  ;;  %v1975_v44 = vsel %vm991_vm6, %v1963_v9, -inf }
 0x9f1   : > { %1976 = vmax.xlane.f32.xlu0 %v1975_v44 }
 0x9f3   : > { %v1968_v16 = vpop.f32.mrb[52].mxu1 }
 0x9f4   : > { %v4954_v17 = vpop.f32.mrb[53].mxu1  ;;  %v1978_v18 = vsel %vm998_vm7, %v1968_v16, -inf }
 0x9f5   : > { %1979 = vmax.xlane.f32.xlu0 %v1978_v18 }
 0xa7a   : > { %v1974_v19 = vpop.xlane.xlu1 %1973 }
 0xa7b   : > { %v1981_v20 = vsub.f32 %v1958_v11, %v1974_v19 }
 0xa7d   : > { %v1984_v21 = vmul.f32 1.442695, %v1981_v20 }
 0xa7e   : > { %v1977_v22 = vpop.xlane.xlu0 %1976 }
 0xa7f   : > { %5635 = vpow2.f32 %v1984_v21  ;;  %v1982_v46 = vsub.f32 %v1963_v9, %v1977_v22 }
 0xa81   : > { %v1986_v23 = vmul.f32 1.442695, %v1982_v46 }
 0xa82   : > { %v1980_v24 = vpop.xlane.xlu0 %1979 }
 0xa83   : > { %5637 = vpow2.f32 %v1986_v23  ;;  %v1983_v25 = vsub.f32 %v1968_v16, %v1980_v24 }
 0xa85   : > { %v1988_v26 = vmul.f32 1.442695, %v1983_v25 }
 0xa87   : > { %5639 = vpow2.f32 %v1988_v26 }
 0xa89   : > { %v5636_v27 = vpop.eup %5635 }
 0xa8a   : > { %v1990_v28 = vsel %vm991_vm6, %v5636_v27, 0.0 }
 0xa8b   : > { %1991 = vadd.xlane.f32.xlu0 %v1990_v28 }
 0xa8d   : > { %v5638_v29 = vpop.eup %5637 }
 0xa8e   : > { %v1993_v60 = vsel %vm991_vm6, %v5638_v29, 0.0 }
 0xa8f   : > { %1994 = vadd.xlane.f32.xlu1 %v1993_v60 }
 0xa91   : > { %v5640_v30 = vpop.eup %5639 }
 0xa92   : > { %v1996_v31 = vsel %vm998_vm7, %v5640_v30, 0.0 }
 0xa93   : > { %1997 = vadd.xlane.f32.xlu0 %v1996_v31 }
 0xaa0   : > { %5549 = vrot.lane.b32.xlu1 %v6125_v48, %s7068_s2 }
 0xaa9   : > { %2009 = vrot.lane.b32.xlu0 %v6127_v51, %s7068_s2  ;;  %s7110_s2 = smov 88  }
 0xab3   : > { %v1851_v33 = vpop.f32.mrb[12].mxu0 }
 0xab4   : > { %v1865_v62 = vadd.f32 %v1851_v33, %v1527_v54  ;;  %v4933_v34 = vpop.f32.mrb[13].mxu0 }
 0xab5   : > { %v2268_v34 = vld [vmem:[%s7043_s11] sm:$0xff] }
 0xab7   : > { %v1856_v35 = vpop.f32.mrb[14].mxu0 }
 0xab8   : > { %v1866_v0 = vadd.f32 %v1856_v35, %v1532_v59  ;;  %v4936_v36 = vpop.f32.mrb[15].mxu0  ;;  %v2269_v35 = vld [vmem:[%s7043_s11 + $0x8] sm:$0xff] }
 0xab9   : > { %v2270_v36 = vld [vmem:[%s7043_s11 + $0x10] sm:$0xff] }
 0xabb   : > { %v1861_v37 = vpop.f32.mrb[16].mxu0 }
 0xabc   : > { %v1867_v38 = vadd.f32 %v1861_v37, %v1537_v1  ;;  %v4939_v39 = vpop.f32.mrb[17].mxu0  ;;  %v2271_v37 = vld [vmem:[%s7043_s11 + $0x18] sm:$0xff] }
 0xabd   : > { %v2383_v39 = vld [vmem:[%s7045_s13] sm:$0xff] }
 0xb18   : > { %v1992_v48 = vpop.xlane.xlu0 %1991 }
 0xb19   : > { %5641 = vrcp.f32 %v1992_v48  ;;  %v2384_v48 = vld [vmem:[%s7045_s13 + $0x8] sm:$0xff] }
 0xb1c   : > { %v1995_v40 = vpop.xlane.xlu1 %1994 }
 0xb1d   : > { %5643 = vrcp.f32 %v1995_v40  ;;  %v2385_v40 = vld [vmem:[%s7045_s13 + $0x10] sm:$0xff] }
 0xb20   : > { %v5550_v51 = vpop.permute.xlu1 %5549  ;;  %v1998_v41 = vpop.xlane.xlu0 %1997 }
 0xb21   : > { %v5552_v42 = vunpack.i.h.bf16 %v5550_v51  ;;  %v5551_v43 = vunpack.i.l.bf16 %v5550_v51  ;;  %5645 = vrcp.f32 %v1998_v41  ;;  %v5366_v51 = vpack.c.bf16 %v2384_v48, %v2383_v39  ;;  %v2386_v41 = vld [vmem:[%s7045_s13 + $0x18] sm:$0xff] }
 0xb23   : > { %v5357_v47 = vpack.c.bf16 %v5552_v42, %v5551_v43  ;;  %v5642_v49 = vpop.eup %5641  ;;  %v5369_v42 = vpack.c.bf16 %v2386_v41, %v2385_v40  ;;  %v2387_v43 = vld [vmem:[%s7045_s13 + $0x20] sm:$0xff] }
 0xb24   : > { %v2000_v52 = vmul.f32 %v5642_v49, %v5636_v27  ;;  %v2010_v53 = vpop.permute.xlu0 %2009 }
 0xb25   : > { %5358 = vmatpush3.bf16.msra.mxu0 %v5357_v47  ;;  %v2388_v47 = vld [vmem:[%s7045_s13 + $0x28] sm:$0xff] }
 0xb26   : > { %4959 = vmatprep.subr.mxu0 %v5793_v15  ;;  %v5372_v49 = vpack.c.bf16 %v2388_v47, %v2387_v43 }
 0xb27   : > { %v5644_v54 = vpop.eup %5643 }
 0xb28   : > { %v2002_v56 = vmul.f32 %v5644_v54, %v5638_v29 }
 0xb29   : > { %4960 = vmatpush3.msk.msra.mxu0 %vm1043_vm8, %v2010_v53 }
 0xb2a   : > { %4962 = vmatmul.mubr.msk.f32.vlgmr.msra.gmra.mrb[18].mxu0 %vm991_vm6, %v2000_v52  ;;  %5359 = vmatprep.subr.bf16.mxu0 %v5791_v3 }
 0xb2b   : > { %4964 = vmatprep.mubr.msk.f32.mxu0 %vm5792_vm3, %v5793_v15  ;;  %v5646_v58 = vpop.eup %5645 }
 0xb2c   : > { %v2004_v59 = vmul.f32 %v5646_v58, %v5640_v30 }
 0xb2e   : > { %4965 = vmatmul.mubr.msk.f32.gmra.mrb[20].mxu0 %vm991_vm6, %v2002_v56 }
 0xb2f   : > { %4967 = vmatprep.mubr.msk.f32.mxu0 %vm5792_vm3, %v5793_v15 }
 0xb32   : > { %4968 = vmatmul.mubr.msk.f32.gmra.mrb[22].mxu0 %vm991_vm6, %v2004_v59 }
 0xb33   : > { %4989 = vmatprep.mubr.msk.f32.mxu0 %vm5792_vm3, %v5793_v15 }
 0xbfd   : > { %v2090_v61 = vpop.f32.mrb[18].mxu0 }
 0xbfe   : > { %v4963_v63 = vpop.f32.mrb[19].mxu0  ;;  %4973 = vmatmul.mubr.msk.f32.vlgmr.msra.gmra.mrb[54].mxu1 %vm898_vm4, %v2090_v61 }
 0xbff   : > { %4975 = vmatprep.mubr.msk.f32.mxu1 %vm5792_vm3, %v5793_v15  ;;  %5367 = vmatpush3.bf16.msra.mxu1 %v5366_v51 }
 0xc00   : > { %5368 = vmatprep.subr.bf16.mxu1 %v5791_v3 }
 0xc01   : > { %v2095_v1 = vpop.f32.mrb[20].mxu0 }
 0xc02   : > { %v4966_v2 = vpop.f32.mrb[21].mxu0  ;;  %4976 = vmatmul.mubr.msk.f32.gmra.mrb[56].mxu1 %vm898_vm4, %v2095_v1 }
 0xc03   : > { %4978 = vmatprep.mubr.msk.f32.mxu1 %vm5792_vm3, %v5793_v15  ;;  %5370 = vmatpush3.bf16.msra.mxu1 %v5369_v42 }
 0xc04   : > { %5371 = vmatprep.subr.bf16.mxu1 %v5791_v3 }
 0xc05   : > { %v2100_v4 = vpop.f32.mrb[22].mxu0 }
 0xc06   : > { %v4969_v5 = vpop.f32.mrb[23].mxu0  ;;  %4979 = vmatmul.mubr.msk.f32.gmra.mrb[58].mxu1 %vm898_vm4, %v2100_v4  ;;  %v4488_v4 = vld [vmem:[%s7041_s9] ss:$0 sm:$0xff] }
 0xc07   : > { %5030 = vmatprep.mubr.msk.f32.mxu1 %vm5792_vm3, %v5793_v15  ;;  %5373 = vmatpush3.bf16.msra.mxu1 %v5372_v49 }
 0xc08   : > { %5374 = vmatprep.subr.bf16.mxu1 %v5791_v3 }
 0xcd1   : > { %v2179_v6 = vpop.f32.mrb[54].mxu1 }
 0xcd2   : > { %v2193_v7 = vadd.f32 %v2179_v6, %v1865_v62  ;;  %v4974_v8 = vpop.f32.mrb[55].mxu1  ;;  %v4489_v6 = vld [vmem:[%s7042_s10] ss:$0 sm:$0xff] }
 0xcd4   : > { %v2196_v11 = vadd.f32 %v2193_v7, %v6059_v45 }
 0xcd5   : > { %v2184_v12 = vpop.f32.mrb[56].mxu1 }
 0xcd6   : > { %v6401_v13 = vadd.f32 %v4487_v10, %v2196_v11  ;;  %v2194_v9 = vadd.f32 %v2184_v12, %v1866_v0  ;;  %v4977_v14 = vpop.f32.mrb[57].mxu1  ;;  %v5360_v0 = vpack.c.bf16 %v2269_v35, %v2268_v34 }
 0xcd8   : > { %v2197_v44 = vadd.f32 %v2194_v9, %v6066_v50  ;;  %v2211_v16 = vsel %vm725_vm1, %v6401_v13, 0.0  ;;  %5361 = vmatpush3.bf16.msra.mxu0 %v5360_v0 }
 0xcd9   : > { %2212 = vadd.xlane.f32.xlu1 %v2211_v16  ;;  %v2189_v17 = vpop.f32.mrb[58].mxu1  ;;  %5362 = vmatprep.subr.bf16.mxu0 %v5791_v3 }
 0xcda   : > { %v6406_v18 = vadd.f32 %v4487_v10, %v2197_v44  ;;  %v2195_v19 = vadd.f32 %v2189_v17, %v1867_v38  ;;  %v4980_v20 = vpop.f32.mrb[59].mxu1  ;;  %v5363_v38 = vpack.c.bf16 %v2271_v37, %v2270_v36 }
 0xcdb   : > { %v2390_v20 = vld [vmem:[%s7045_s13 + $0x38] sm:$0xff] }
 0xcdc   : > { %v2198_v21 = vadd.f32 %v2195_v19, %v6073_v55  ;;  %v2214_v45 = vsel %vm725_vm1, %v6406_v18, 0.0  ;;  %5364 = vmatpush3.bf16.msra.mxu0 %v5363_v38  ;;  %v2389_v19 = vld [vmem:[%s7045_s13 + $0x30] sm:$0xff] }
 0xcdd   : > { %2215 = vadd.xlane.f32.xlu0 %v2214_v45  ;;  %5389 = vmatprep.subr.bf16.mxu0 %v5791_v3  ;;  %v2391_v45 = vld [vmem:[%s7045_s13 + $0x40] sm:$0xff] }
 0xcde   : > { %v6411_v22 = vadd.f32 %v4487_v10, %v2198_v21  ;;  %v5375_v21 = vpack.c.bf16 %v2390_v20, %v2389_v19 }
 0xce0   : > { %v2217_v50 = vsel %vm732_vm2, %v6411_v22, 0.0  ;;  %5376 = vmatpush3.bf16.msra.mxu1 %v5375_v21 }
 0xce1   : > { %2218 = vadd.xlane.f32.xlu1 %v2217_v50  ;;  %5377 = vmatprep.subr.bf16.mxu1 %v5791_v3  ;;  %v2392_v50 = vld [vmem:[%s7045_s13 + $0x48] sm:$0xff] }
 0xd66   : > { %v2213_v46 = vpop.xlane.xlu1 %2212 }
 0xd67   : > { %v2220_v23 = vmul.f32 0.03125, %v2213_v46  ;;  %v5378_v46 = vpack.c.bf16 %v2392_v50, %v2391_v45 }
 0xd69   : > { %v2223_v24 = vsub.f32 %v6401_v13, %v2220_v23  ;;  %5379 = vmatpush3.bf16.msra.mxu1 %v5378_v46  ;;  %v2393_v23 = vld [vmem:[%s7045_s13 + $0x50] sm:$0xff] }
 0xd6a   : > { %v2216_v25 = vpop.xlane.xlu0 %2215  ;;  %5380 = vmatprep.subr.bf16.mxu1 %v5791_v3 }
 0xd6b   : > { %v2221_v26 = vmul.f32 0.03125, %v2216_v25  ;;  %v2226_v27 = vmul.f32 %v2223_v24, %v2223_v24 }
 0xd6d   : > { %v2224_v28 = vsub.f32 %v6406_v18, %v2221_v26  ;;  %v2229_v55 = vsel %vm725_vm1, %v2226_v27, 0.0  ;;  %v2395_v26 = vld [vmem:[%s7045_s13 + $0x60] sm:$0xff]  ;;  %v2396_v27 = vld [vmem:[%s7045_s13 + $0x68] sm:$0xff] }
 0xd6e   : > { %2230 = vadd.xlane.f32.xlu0 %v2229_v55  ;;  %v2219_v29 = vpop.xlane.xlu1 %2218  ;;  %v2397_v55 = vld [vmem:[%s7045_s13 + $0x70] sm:$0xff] }
 0xd6f   : > { %v2222_v60 = vmul.f32 0.03125, %v2219_v29  ;;  %v2227_v30 = vmul.f32 %v2224_v28, %v2224_v28  ;;  %v2398_v29 = vld [vmem:[%s7045_s13 + $0x78] sm:$0xff] }
 0xd71   : > { %v2225_v31 = vsub.f32 %v6411_v22, %v2222_v60  ;;  %v2232_v32 = vsel %vm725_vm1, %v2227_v30, 0.0  ;;  %v5387_v60 = vpack.c.bf16 %v2398_v29, %v2397_v55  ;;  %v4490_v30 = vld [vmem:[%s7044_s12] ss:$0 sm:$0xff]  ;;  %v4501_v29 = vld [vmem:[%s7103_s5 + $0x30] sm:$0xff] }
 0xd72   : > { %2233 = vadd.xlane.f32.xlu1 %v2232_v32 }
 0xd73   : > { %v2228_v33 = vmul.f32 %v2225_v31, %v2225_v31 }
 0xd75   : > { %v2235_v62 = vsel %vm732_vm2, %v2228_v33, 0.0 }
 0xd76   : > { %2236 = vadd.xlane.f32.xlu0 %v2235_v62 }
 0xdfb   : > { %v2231_v52 = vpop.xlane.xlu0 %2230 }
 0xdfc   : > { %v2238_v53 = vmul.f32 0.03125, %v2231_v52 }
 0xdfe   : > { %v2241_v54 = vadd.f32 1e-06, %v2238_v53 }
 0xdff   : > { %v2234_v56 = vpop.xlane.xlu1 %2233 }
 0xe00   : > { %5647 = vrsqrt.f32 %v2241_v54  ;;  %v2239_v58 = vmul.f32 0.03125, %v2234_v56 }
 0xe02   : > { %v2242_v59 = vadd.f32 1e-06, %v2239_v58 }
 0xe03   : > { %v2237_v61 = vpop.xlane.xlu0 %2236 }
 0xe04   : > { %5649 = vrsqrt.f32 %v2242_v59  ;;  %v2240_v63 = vmul.f32 0.03125, %v2237_v61  ;;  %v4494_v59 = vld [vmem:[%s7046_s14] ss:$0 sm:$0xff] }
 0xe06   : > { %v2243_v1 = vadd.f32 1e-06, %v2240_v63 }
 0xe08   : > { %5651 = vrsqrt.f32 %v2243_v1 }
 0xe0a   : > { %v5648_v2 = vpop.eup %5647 }
 0xe0b   : > { %v2247_v5 = vmul.f32 %v5648_v2, %v2223_v24  ;;  %v2394_v24 = vld [vmem:[%s7045_s13 + $0x58] sm:$0xff] }
 0xe0c   : > { %v5381_v25 = vpack.c.bf16 %v2394_v24, %v2393_v23 }
 0xe0d   : > { %v2256_v7 = vmul.f32 %v4488_v4, %v2247_v5 }
 0xe0e   : > { %v5650_v8 = vpop.eup %5649  ;;  %5382 = vmatpush3.bf16.msra.mxu1 %v5381_v25 }
 0xe0f   : > { %v2265_v10 = vadd.f32 %v4489_v6, %v2256_v7  ;;  %v2248_v11 = vmul.f32 %v5650_v8, %v2224_v28  ;;  %5383 = vmatprep.subr.bf16.mxu1 %v5791_v3  ;;  %v5384_v28 = vpack.c.bf16 %v2396_v27, %v2395_v26  ;;  %v4499_v27 = vld [vmem:[%s7103_s5 + $0x20] sm:$0xff] }
 0xe11   : > { %4990 = vmatmul.mubr.msk.f32.vlgmr.msra.gmra.mrb[24].mxu0 %vm725_vm1, %v2265_v10  ;;  %v2257_v12 = vmul.f32 %v4488_v4, %v2248_v11 }
 0xe12   : > { %v5652_v9 = vpop.eup %5651  ;;  %4992 = vmatprep.mubr.msk.f32.mxu0 %vm5792_vm3, %v5793_v15  ;;  %5385 = vmatpush3.bf16.msra.mxu1 %v5384_v28  ;;  %v4500_v28 = vld [vmem:[%s7103_s5 + $0x28] sm:$0xff] }
 0xe13   : > { %v2266_v14 = vadd.f32 %v4489_v6, %v2257_v12  ;;  %v2249_v44 = vmul.f32 %v5652_v9, %v2225_v31  ;;  %5386 = vmatprep.subr.bf16.mxu1 %v5791_v3  ;;  %v5390_v55 = vpack.c.bf16 %v4500_v28, %v4499_v27 }
 0xe15   : > { %4993 = vmatmul.mubr.msk.f32.gmra.mrb[26].mxu0 %vm725_vm1, %v2266_v14  ;;  %v2258_v16 = vmul.f32 %v4488_v4, %v2249_v44 }
 0xe16   : > { %4995 = vmatprep.mubr.msk.f32.mxu0 %vm5792_vm3, %v5793_v15  ;;  %5388 = vmatpush3.bf16.msra.mxu1 %v5387_v60  ;;  %v4502_v60 = vld [vmem:[%s7103_s5 + $0x38] sm:$0xff] }
 0xe17   : > { %v2267_v17 = vadd.f32 %v4489_v6, %v2258_v16  ;;  %5402 = vmatprep.subr.bf16.mxu1 %v5791_v3  ;;  %5391 = vmatpush3.bf16.msra.mxu0 %v5390_v55 }
 0xe18   : > { %5392 = vmatprep.subr.bf16.mxu0 %v5791_v3 }
 0xe19   : > { %4996 = vmatmul.mubr.msk.f32.gmra.mrb[28].mxu0 %vm725_vm1, %v2267_v17 }
 0xe1a   : > { %5047 = vmatprep.mubr.msk.f32.mxu0 %vm5792_vm3, %v5793_v15 }
 0xee4   : > { %v2354_v31 = vpop.f32.mrb[24].mxu0 }
 0xee5   : > { %v2355_v32 = vadd.f32 %v4490_v30, %v2354_v31  ;;  %v4991_v33 = vpop.f32.mrb[25].mxu0 }
 0xee7   : > { %v2371_v62 = vmul.f32 0.70710677, %v2355_v32  ;;  %v2368_v51 = vmul.f32 0.5, %v2355_v32 }
 0xee8   : > { %v2359_v34 = vpop.f32.mrb[26].mxu0 }
 0xee9   : > { %5653 = verf.f32 %v2371_v62  ;;  %v2360_v35 = vadd.f32 %v4490_v30, %v2359_v34  ;;  %v4994_v0 = vpop.f32.mrb[27].mxu0 }
 0xeeb   : > { %v2372_v36 = vmul.f32 0.70710677, %v2360_v35  ;;  %v2369_v47 = vmul.f32 0.5, %v2360_v35 }
 0xeec   : > { %v2364_v37 = vpop.f32.mrb[28].mxu0 }
 0xeed   : > { %5655 = verf.f32 %v2372_v36  ;;  %v2365_v38 = vadd.f32 %v4490_v30, %v2364_v37  ;;  %v4997_v39 = vpop.f32.mrb[29].mxu0  ;;  %v5393_v30 = vpack.c.bf16 %v4502_v60, %v4501_v29 }
 0xeee   : > { %v4497_v39 = vld [vmem:[%s7104_s19 + $0x1] ss:$0 sm:$0xff] }
 0xeef   : > { %v2373_v48 = vmul.f32 0.70710677, %v2365_v38  ;;  %v2370_v54 = vmul.f32 0.5, %v2365_v38  ;;  %5394 = vmatpush3.bf16.msra.mxu0 %v5393_v30 }
 0xef0   : > { %5395 = vmatprep.subr.bf16.mxu0 %v5791_v3 }
 0xef1   : > { %5657 = verf.f32 %v2373_v48 }
 0xef3   : > { %v5654_v40 = vpop.eup %5653 }
 0xef4   : > { %v2377_v41 = vadd.f32 1.0, %v5654_v40  ;;  %v4498_v40 = vld [vmem:[%s7105_s4 + $0x1] ss:$0 sm:$0xff] }
 0xef6   : > { %v2380_v42 = vmul.f32 %v2377_v41, %v2368_v51 }
 0xef7   : > { %v5656_v43 = vpop.eup %5655 }
 0xef8   : > { %v2378_v49 = vadd.f32 1.0, %v5656_v43  ;;  %5031 = vmatmul.mubr.f32.vlgmr.msra.gmra.mrb[60].mxu1 %v2380_v42 }
 0xef9   : > { %5033 = vmatprep.mubr.msk.f32.mxu1 %vm5792_vm3, %v5793_v15 }
 0xefa   : > { %v2381_v52 = vmul.f32 %v2378_v49, %v2369_v47 }
 0xefb   : > { %v5658_v53 = vpop.eup %5657 }
 0xefc   : > { %v2379_v56 = vadd.f32 1.0, %v5658_v53  ;;  %5034 = vmatmul.mubr.f32.gmra.mrb[62].mxu1 %v2381_v52 }
 0xefd   : > { %5036 = vmatprep.mubr.msk.f32.mxu1 %vm5792_vm3, %v5793_v15 }
 0xefe   : > { %v2382_v58 = vmul.f32 %v2379_v56, %v2370_v54 }
 0xf00   : > { %5037 = vmatmul.mubr.f32.gmra.mrb[64].mxu1 %v2382_v58 }
 0xf01   : > { %5092 = vmatprep.mubr.msk.f32.mxu1 %vm5792_vm3, %v5793_v15 }
 0xfcb   : > { %v2472_v61 = vpop.f32.mrb[60].mxu1 }
 0xfcc   : > { %v2473_v63 = vadd.f32 %v4494_v59, %v2472_v61  ;;  %v5032_v1 = vpop.f32.mrb[61].mxu1  ;;  %v4504_v61 = vld [vmem:[%s7106_s6 + $0x1] ss:$0 sm:$0xff] }
 0xfce   : > { %v6519_v2 = vadd.f32 %v2473_v63, %v6401_v13 }
 0xfcf   : > { %v2477_v4 = vpop.f32.mrb[62].mxu1 }
 0xfd0   : > { %v2478_v5 = vadd.f32 %v4494_v59, %v2477_v4  ;;  %v5035_v6 = vpop.f32.mrb[63].mxu1  ;;  %v2493_v7 = vsel %vm725_vm1, %v6519_v2, 0.0 }
 0xfd1   : > { %2494 = vadd.xlane.f32.xlu1 %v2493_v7 }
 0xfd2   : > { %v6524_v8 = vadd.f32 %v2478_v5, %v6406_v18 }
 0xfd3   : > { %v2482_v10 = vpop.f32.mrb[64].mxu1 }
 0xfd4   : > { %v2483_v11 = vadd.f32 %v4494_v59, %v2482_v10  ;;  %v5038_v12 = vpop.f32.mrb[65].mxu1  ;;  %v2496_v9 = vsel %vm725_vm1, %v6524_v8, 0.0 }
 0xfd5   : > { %2497 = vadd.xlane.f32.xlu0 %v2496_v9 }
 0xfd6   : > { %v6529_v13 = vadd.f32 %v2483_v11, %v6411_v22 }
 0xfd8   : > { %v2499_v14 = vsel %vm732_vm2, %v6529_v13, 0.0 }
 0xfd9   : > { %2500 = vadd.xlane.f32.xlu1 %v2499_v14 }
0x105e   : > { %v2495_v44 = vpop.xlane.xlu1 %2494 }
0x105f   : > { %v2502_v16 = vmul.f32 0.03125, %v2495_v44 }
0x1061   : > { %v2505_v17 = vsub.f32 %v6519_v2, %v2502_v16 }
0x1062   : > { %v2498_v18 = vpop.xlane.xlu0 %2497 }
0x1063   : > { %v2503_v19 = vmul.f32 0.03125, %v2498_v18  ;;  %v2508_v20 = vmul.f32 %v2505_v17, %v2505_v17 }
0x1065   : > { %v2506_v21 = vsub.f32 %v6524_v8, %v2503_v19  ;;  %v2511_v45 = vsel %vm725_vm1, %v2508_v20, 0.0 }
0x1066   : > { %2512 = vadd.xlane.f32.xlu0 %v2511_v45  ;;  %v2501_v50 = vpop.xlane.xlu1 %2500 }
0x1067   : > { %v2504_v46 = vmul.f32 0.03125, %v2501_v50  ;;  %v2509_v22 = vmul.f32 %v2506_v21, %v2506_v21 }
0x1069   : > { %v2507_v23 = vsub.f32 %v6529_v13, %v2504_v46  ;;  %v2514_v24 = vsel %vm725_vm1, %v2509_v22, 0.0 }
0x106a   : > { %2515 = vadd.xlane.f32.xlu1 %v2514_v24 }
0x106b   : > { %v2510_v25 = vmul.f32 %v2507_v23, %v2507_v23 }
0x106d   : > { %v2517_v26 = vsel %vm732_vm2, %v2510_v25, 0.0 }
0x106e   : > { %2518 = vadd.xlane.f32.xlu0 %v2517_v26 }
0x10f3   : > { %v2513_v31 = vpop.xlane.xlu0 %2512 }
0x10f4   : > { %v2520_v32 = vmul.f32 0.03125, %v2513_v31 }
0x10f6   : > { %v2523_v33 = vadd.f32 1e-06, %v2520_v32 }
0x10f7   : > { %v2516_v62 = vpop.xlane.xlu1 %2515 }
0x10f8   : > { %5659 = vrsqrt.f32 %v2523_v33  ;;  %v2521_v34 = vmul.f32 0.03125, %v2516_v62 }
0x10fa   : > { %v2524_v35 = vadd.f32 1e-06, %v2521_v34 }
0x10fb   : > { %v2519_v0 = vpop.xlane.xlu0 %2518 }
0x10fc   : > { %5661 = vrsqrt.f32 %v2524_v35  ;;  %v2522_v36 = vmul.f32 0.03125, %v2519_v0 }
0x10fe   : > { %v2525_v37 = vadd.f32 1e-06, %v2522_v36 }
0x1100   : > { %5663 = vrsqrt.f32 %v2525_v37 }
0x1102   : > { %v5660_v38 = vpop.eup %5659 }
0x1103   : > { %v2529_v48 = vmul.f32 %v5660_v38, %v2505_v17 }
0x1105   : > { %v2538_v51 = vmul.f32 %v4497_v39, %v2529_v48 }
0x1106   : > { %v5662_v41 = vpop.eup %5661 }
0x1107   : > { %v2547_v42 = vadd.f32 %v4498_v40, %v2538_v51  ;;  %v2530_v43 = vmul.f32 %v5662_v41, %v2506_v21 }
0x1109   : > { %5048 = vmatmul.mubr.msk.f32.vlgmr.msra.gmra.mrb[30].mxu0 %vm725_vm1, %v2547_v42  ;;  %v2539_v47 = vmul.f32 %v4497_v39, %v2530_v43 }
0x110a   : > { %v5664_v49 = vpop.eup %5663  ;;  %5050 = vmatprep.mubr.msk.f32.mxu0 %vm5792_vm3, %v5793_v15 }
0x110b   : > { %v2548_v52 = vadd.f32 %v4498_v40, %v2539_v47  ;;  %v2531_v53 = vmul.f32 %v5664_v49, %v2507_v23 }
0x110d   : > { %5051 = vmatmul.mubr.msk.f32.gmra.mrb[32].mxu0 %vm725_vm1, %v2548_v52  ;;  %v2540_v54 = vmul.f32 %v4497_v39, %v2531_v53 }
0x110e   : > { %5053 = vmatprep.mubr.msk.f32.mxu0 %vm5792_vm3, %v5793_v15 }
0x110f   : > { %v2549_v56 = vadd.f32 %v4498_v40, %v2540_v54 }
0x1111   : > { %5054 = vmatmul.mubr.msk.f32.gmra.mrb[34].mxu0 %vm725_vm1, %v2549_v56 }
0x1112   : > { %5062 = vmatprep.mubr.msk.f32.mxu0 %vm5792_vm3, %v5793_v15 }
0x11dc   : > { %v2638_v58 = vpop.f32.mrb[30].mxu0 }
0x11dd   : > { %v5049_v59 = vpop.f32.mrb[31].mxu0  ;;  %v6571_v1 = vadd.f32 %v4504_v61, %v2638_v58 }
0x11e0   : > { %v2643_v63 = vpop.f32.mrb[32].mxu0 }
0x11e1   : > { %v6573_v4 = vadd.f32 %v4504_v61, %v2643_v63  ;;  %v5052_v5 = vpop.f32.mrb[33].mxu0 }
0x11e3   : > { %v6577_v6 = vpack.i.bf16 %v6573_v4, %v6571_v1 }
0x11e4   : > { %v2648_v7 = vpop.f32.mrb[34].mxu0 }
0x11e5   : > { %v6579_v10 = vadd.f32 %v4504_v61, %v2648_v7  ;;  %5554 = vrot.lane.b32.xlu1 %v6577_v6, %s7109_s25  ;;  %v5055_v11 = vpop.f32.mrb[35].mxu0 }
0x11e7   : > { %2664 = vrot.lane.b32.xlu0 %v6579_v10, %s7109_s25  ;;  %s7121_s25 = smov %s7120_s0 }
0x11e9   : > { %5559 = vrot.lane.b32.xlu1 %v6577_v6, %s7110_s2 }
0x11eb   : > { %2892 = vrot.lane.b32.xlu0 %v6573_v4, %s7111_s21 }
0x11ed   : > { %2900 = vrot.lane.b32.xlu1 %v6579_v10, %s7110_s2  ;;  %s7116_s2 = smov 48  }
0x11f1   : > { %2890 = vrot.lane.b32.xlu1 %v6571_v1, %s7111_s21 }
0x11f5   : > { %2894 = vrot.lane.b32.xlu1 %v6579_v10, %s7111_s21  ;;  %s7117_s21 = smov 72  }
0x1257   : > { %v5555_v12 = vpop.permute.xlu1 %5554 }
0x1258   : > { %v5557_v9 = vunpack.i.h.bf16 %v5555_v12  ;;  %v5556_v14 = vunpack.i.l.bf16 %v5555_v12 }
0x1259   : > { %v2665_v20 = vpop.permute.xlu0 %2664 }
0x125a   : > { %v5396_v44 = vpack.c.bf16 %v5557_v9, %v5556_v14 }
0x125b   : > { %v5560_v16 = vpop.permute.xlu1 %5559 }
0x125c   : > { %v5562_v17 = vunpack.i.h.bf16 %v5560_v16  ;;  %v5561_v18 = vunpack.i.l.bf16 %v5560_v16  ;;  %5398 = vmatpush3.bf16.xpose.msk.msra.mxu0 %vm6135_vm5, %v5396_v44 }
0x125d   : > { %5060 = vmatprep.subr.mxu0 %v5793_v15  ;;  %v2893_v50 = vpop.permute.xlu0 %2892 }
0x125e   : > { %v5403_v19 = vpack.c.bf16 %v5562_v17, %v5561_v18 }
0x125f   : > { %v2901_v21 = vpop.permute.xlu1 %2900 }
0x1260   : > { %5405 = vmatpush3.bf16.xpose.msk.msra.mxu1 %vm6135_vm5, %v5403_v19 }
0x1261   : > { %5090 = vmatprep.subr.mxu1 %v5793_v15 }
0x1263   : > { %v2891_v45 = vpop.permute.xlu1 %2890 }
0x1264   : > { %5061 = vmatpush3.xpose.msk.msra.mxu0 %vm898_vm4, %v2665_v20 }
0x1265   : > { %5399 = vmatprep.subr.bf16.mxu0 %v5791_v3 }
0x1267   : > { %5063 = vmatmul.mubr.msk.f32.vlgmr.msra.gmra.mrb[36].mxu0 %vm898_vm4, %v6571_v1  ;;  %v2895_v46 = vpop.permute.xlu1 %2894 }
0x1268   : > { %5091 = vmatpush3.xpose.msk.msra.mxu1 %vm898_vm4, %v2901_v21  ;;  %5065 = vmatprep.mubr.msk.f32.mxu0 %vm5792_vm3, %v5793_v15 }
0x1269   : > { %5116 = vmatprep.subr.mxu1 %v5793_v15 }
0x126b   : > { %5066 = vmatmul.mubr.msk.f32.gmra.mrb[38].mxu0 %vm898_vm4, %v6573_v4  ;;  %5093 = vmatmul.mubr.msk.f32.vlgmr.msra.gmra.mrb[66].mxu1 %vm898_vm4, %v2891_v45 }
0x126c   : > { %5068 = vmatprep.mubr.msk.f32.mxu0 %vm5792_vm3, %v5793_v15  ;;  %5095 = vmatprep.mubr.msk.f32.mxu1 %vm5792_vm3, %v5793_v15 }
0x126f   : > { %5069 = vmatmul.mubr.msk.f32.gmra.mrb[40].mxu0 %vm898_vm4, %v6579_v10  ;;  %5096 = vmatmul.mubr.msk.f32.gmra.mrb[68].mxu1 %vm898_vm4, %v2893_v50 }
0x1270   : > { %5098 = vmatprep.mubr.msk.f32.mxu1 %vm5792_vm3, %v5793_v15  ;;  %5077 = vmatprep.mubr.msk.f32.mxu0 %vm5792_vm3, %v5793_v15 }
0x1273   : > { %5099 = vmatmul.mubr.msk.f32.gmra.mrb[70].mxu1 %vm898_vm4, %v2895_v46 }
0x1274   : > { %5118 = vmatprep.mubr.msk.f32.mxu1 %vm5792_vm3, %v5793_v15 }
0x133a   : > { %v2744_v22 = vpop.f32.mrb[36].mxu0 }
0x133b   : > { %v5064_v23 = vpop.f32.mrb[37].mxu0  ;;  %v2758_v24 = vsel %vm991_vm6, %v2744_v22, -inf }
0x133c   : > { %2759 = vmax.xlane.f32.xlu0 %v2758_v24 }
0x133e   : > { %v2749_v25 = vpop.f32.mrb[38].mxu0  ;;  %v2980_v26 = vpop.f32.mrb[66].mxu1 }
0x133f   : > { %v5067_v27 = vpop.f32.mrb[39].mxu0  ;;  %v5094_v28 = vpop.f32.mrb[67].mxu1  ;;  %v2761_v55 = vsel %vm991_vm6, %v2749_v25, -inf  ;;  %v2994_v34 = vsel %vm991_vm6, %v2980_v26, -inf }
0x1340   : > { %2762 = vmax.xlane.f32.xlu1 %v2761_v55 }
0x1342   : > { %v2754_v29 = vpop.f32.mrb[40].mxu0  ;;  %v2985_v60 = vpop.f32.mrb[68].mxu1 }
0x1343   : > { %v5070_v30 = vpop.f32.mrb[41].mxu0  ;;  %v5097_v31 = vpop.f32.mrb[69].mxu1  ;;  %v2764_v32 = vsel %vm998_vm7, %v2754_v29, -inf  ;;  %v2997_v0 = vsel %vm991_vm6, %v2985_v60, -inf }
0x1344   : > { %2765 = vmax.xlane.f32.xlu0 %v2764_v32 }
0x1346   : > { %v2990_v33 = vpop.f32.mrb[70].mxu1 }
0x1347   : > { %v5100_v62 = vpop.f32.mrb[71].mxu1  ;;  %v3000_v35 = vsel %vm998_vm7, %v2990_v33, -inf }
0x1348   : > { %2995 = vmax.xlane.f32.xlu0 %v2994_v34  ;;  %3001 = vmax.xlane.f32.xlu1 %v3000_v35 }
0x134c   : > { %2998 = vmax.xlane.f32.xlu0 %v2997_v0 }
0x1359   : > { %5564 = vrot.lane.b32.xlu1 %v6577_v6, %s7112_s22 }
0x13c9   : > { %v2760_v36 = vpop.xlane.xlu0 %2759 }
0x13ca   : > { %v2767_v37 = vsub.f32 %v2744_v22, %v2760_v36 }
0x13cc   : > { %v2770_v38 = vmul.f32 1.442695, %v2767_v37 }
0x13cd   : > { %v2763_v39 = vpop.xlane.xlu1 %2762 }
0x13ce   : > { %5665 = vpow2.f32 %v2770_v38  ;;  %v2768_v40 = vsub.f32 %v2749_v25, %v2763_v39 }
0x13d0   : > { %v2772_v43 = vmul.f32 1.442695, %v2768_v40  ;;  %v4509_v40 = vld [vmem:[%s7039_s7 + $0x28] sm:$0xff] }
0x13d1   : > { %v2766_v48 = vpop.xlane.xlu0 %2765  ;;  %5117 = vmatpush3.msra.mxu1 %v4509_v40 }
0x13d2   : > { %v2769_v49 = vsub.f32 %v2754_v29, %v2766_v48  ;;  %v4508_v48 = vld [vmem:[%s7039_s7 + $0x20] sm:$0xff]  ;;  %5409 = vmatprep.subr.bf16.mxu1 %v5791_v3 }
0x13d4   : > { %v2774_v63 = vmul.f32 1.442695, %v2769_v49 }
0x13d5   : > { %v2996_v51 = vpop.xlane.xlu0 %2995  ;;  %v3002_v41 = vpop.xlane.xlu1 %3001 }
0x13d6   : > { %v3003_v42 = vsub.f32 %v2980_v26, %v2996_v51  ;;  %v3005_v5 = vsub.f32 %v2990_v33, %v3002_v41 }
0x13d8   : > { %v5666_v47 = vpop.eup %5665  ;;  %v3006_v52 = vmul.f32 1.442695, %v3003_v42  ;;  %v3010_v12 = vmul.f32 1.442695, %v3005_v5 }
0x13d9   : > { %v2999_v53 = vpop.xlane.xlu0 %2998  ;;  %v5565_v54 = vpop.permute.xlu1 %5564  ;;  %v2776_v56 = vsel %vm991_vm6, %v5666_v47, 0.0 }
0x13da   : > { %5667 = vpow2.f32 %v3006_v52  ;;  %v3004_v58 = vsub.f32 %v2985_v60, %v2999_v53  ;;  %v5567_v59 = vunpack.i.h.bf16 %v5565_v54  ;;  %v5566_v61 = vunpack.i.l.bf16 %v5565_v54  ;;  %2777 = vadd.xlane.f32.xlu0 %v2776_v56 }
0x13db   : > { %5669 = vpow2.f32 %v2772_v43 }
0x13dc   : > { %v3008_v7 = vmul.f32 1.442695, %v3004_v58  ;;  %v5400_v11 = vpack.c.bf16 %v5567_v59, %v5566_v61 }
0x13de   : > { %5671 = vpow2.f32 %v3008_v7  ;;  %5401 = vmatpush3.bf16.msra.mxu0 %v5400_v11 }
0x13df   : > { %5075 = vmatprep.subr.mxu0 %v5793_v15  ;;  %5673 = vpow2.f32 %v2774_v63 }
0x13e0   : > { %5675 = vpow2.f32 %v3010_v12 }
0x13e4   : > { %v5668_v9 = vpop.eup %5667 }
0x13e5   : > { %v5670_v14 = vpop.eup %5669  ;;  %v3012_v44 = vsel %vm991_vm6, %v5668_v9, 0.0 }
0x13e6   : > { %3013 = vadd.xlane.f32.xlu1 %v3012_v44  ;;  %v2779_v18 = vsel %vm991_vm6, %v5670_v14, 0.0 }
0x13e8   : > { %v5672_v16 = vpop.eup %5671 }
0x13e9   : > { %v3015_v17 = vsel %vm991_vm6, %v5672_v16, 0.0  ;;  %v5674_v19 = vpop.eup %5673 }
0x13ea   : > { %3016 = vadd.xlane.f32.xlu0 %v3015_v17  ;;  %2780 = vadd.xlane.f32.xlu1 %v2779_v18  ;;  %v2782_v20 = vsel %vm998_vm7, %v5674_v19, 0.0  ;;  %v5676_v21 = vpop.eup %5675 }
0x13eb   : > { %v3018_v45 = vsel %vm998_vm7, %v5676_v21, 0.0 }
0x13ee   : > { %2783 = vadd.xlane.f32.xlu0 %v2782_v20 }
0x13f2   : > { %3019 = vadd.xlane.f32.xlu0 %v3018_v45 }
0x13fb   : > { %5569 = vrot.lane.b32.xlu1 %v6577_v6, %s7113_s27 }
0x13ff   : > { %3031 = vrot.lane.b32.xlu1 %v6579_v10, %s7113_s27  ;;  %s7119_s27 = smov 40  }
0x1403   : > { %5574 = vrot.lane.b32.xlu1 %v6577_v6, %s7114_s23 }
0x1407   : > { %3314 = vrot.lane.b32.xlu1 %v6579_v10, %s7114_s23 }
0x1408   : > { %2795 = vrot.lane.b32.xlu0 %v6579_v10, %s7112_s22  ;;  %s7118_s22 = smov 104  }
0x140b   : > { %3306 = vrot.lane.b32.xlu1 %v6573_v4, %s7115_s24 }
0x140c   : > { %3304 = vrot.lane.b32.xlu0 %v6571_v1, %s7115_s24 }
0x1410   : > { %3308 = vrot.lane.b32.xlu0 %v6579_v10, %s7115_s24 }
0x1467   : > { %v2778_v50 = vpop.xlane.xlu0 %2777 }
0x1468   : > { %5677 = vrcp.f32 %v2778_v50 }
0x1472   : > { %v5678_v27 = vpop.eup %5677 }
0x1473   : > { %v3014_v46 = vpop.xlane.xlu1 %3013  ;;  %v2786_v29 = vmul.f32 %v5678_v27, %v5666_v47 }
0x1477   : > { %v3017_v22 = vpop.xlane.xlu0 %3016  ;;  %v2781_v23 = vpop.xlane.xlu1 %2780 }
0x1478   : > { %5679 = vrcp.f32 %v2781_v23 }
0x147b   : > { %v2784_v24 = vpop.xlane.xlu0 %2783  ;;  %v5570_v25 = vpop.permute.xlu1 %5569 }
0x147c   : > { %5681 = vrcp.f32 %v2784_v24  ;;  %v5572_v28 = vunpack.i.h.bf16 %v5570_v25  ;;  %v5571_v55 = vunpack.i.l.bf16 %v5570_v25 }
0x147d   : > { %5683 = vrcp.f32 %v3014_v46 }
0x147e   : > { %v5407_v31 = vpack.c.bf16 %v5572_v28, %v5571_v55  ;;  %5685 = vrcp.f32 %v3017_v22 }
0x147f   : > { %v3020_v26 = vpop.xlane.xlu0 %3019  ;;  %v3032_v62 = vpop.permute.xlu1 %3031 }
0x1480   : > { %5687 = vrcp.f32 %v3020_v26 }
0x1482   : > { %v5680_v30 = vpop.eup %5679 }
0x1483   : > { %v2796_v60 = vpop.permute.xlu0 %2795  ;;  %v2788_v32 = vmul.f32 %v5680_v30, %v5670_v14  ;;  %v5575_v43 = vpop.permute.xlu1 %5574 }
0x1484   : > { %5076 = vmatpush3.msk.msra.mxu0 %vm1043_vm8, %v2796_v60  ;;  %v5577_v49 = vunpack.i.h.bf16 %v5575_v43  ;;  %v5576_v52 = vunpack.i.l.bf16 %v5575_v43 }
0x1485   : > { %5078 = vmatmul.mubr.msk.f32.vlgmr.msra.gmra.mrb[42].mxu0 %vm991_vm6, %v2786_v29  ;;  %5406 = vmatprep.subr.bf16.mxu0 %v5791_v3 }
0x1486   : > { %5408 = vmatpush3.bf16.msra.mxu0 %v5407_v31  ;;  %5080 = vmatprep.mubr.msk.f32.mxu0 %vm5792_vm3, %v5793_v15  ;;  %v5682_v33 = vpop.eup %5681  ;;  %v5410_v56 = vpack.c.bf16 %v5577_v49, %v5576_v52 }
0x1487   : > { %5105 = vmatprep.subr.mxu0 %v5793_v15  ;;  %v2790_v34 = vmul.f32 %v5682_v33, %v5674_v19  ;;  %v5684_v35 = vpop.eup %5683  ;;  %v3315_v7 = vpop.permute.xlu1 %3314 }
0x1488   : > { %v3022_v0 = vmul.f32 %v5684_v35, %v5668_v9  ;;  %v5686_v36 = vpop.eup %5685  ;;  %v3305_v12 = vpop.permute.xlu0 %3304 }
0x1489   : > { %5081 = vmatmul.mubr.msk.f32.gmra.mrb[44].mxu0 %vm991_vm6, %v2788_v32  ;;  %v3024_v37 = vmul.f32 %v5686_v36, %v5672_v16 }
0x148a   : > { %5106 = vmatpush3.msk.msra.mxu0 %vm1043_vm8, %v3032_v62  ;;  %5083 = vmatprep.mubr.msk.f32.mxu0 %vm5792_vm3, %v5793_v15  ;;  %v5688_v38 = vpop.eup %5687 }
0x148b   : > { %5127 = vmatprep.subr.mxu0 %v5793_v15  ;;  %v3026_v39 = vmul.f32 %v5688_v38, %v5676_v21  ;;  %v3307_v9 = vpop.permute.xlu1 %3306 }
0x148c   : > { %v3309_v14 = vpop.permute.xlu0 %3308 }
0x148d   : > { %5084 = vmatmul.mubr.msk.f32.gmra.mrb[46].mxu0 %vm991_vm6, %v2790_v34 }
0x148e   : > { %5107 = vmatprep.mubr.msk.f32.mxu0 %vm5792_vm3, %v5793_v15 }
0x1491   : > { %5108 = vmatmul.mubr.msk.f32.vlgmr.msra.gmra.mrb[48].mxu0 %vm991_vm6, %v3022_v0 }
0x1492   : > { %5110 = vmatprep.mubr.msk.f32.mxu0 %vm5792_vm3, %v5793_v15  ;;  %5128 = vmatpush3.msra.mxu0 %v4508_v48 }
0x1493   : > { %5413 = vmatprep.subr.bf16.mxu0 %v5791_v3 }
0x1495   : > { %5111 = vmatmul.mubr.msk.f32.gmra.mrb[50].mxu0 %vm991_vm6, %v3024_v37 }
0x1496   : > { %5113 = vmatprep.mubr.msk.f32.mxu0 %vm5792_vm3, %v5793_v15 }
0x1499   : > { %5114 = vmatmul.mubr.msk.f32.gmra.mrb[52].mxu0 %vm991_vm6, %v3026_v39 }
0x149a   : > { %5129 = vmatprep.mubr.msk.f32.mxu0 %vm5792_vm3, %v5793_v15 }
0x1558   : > { %v2876_v51 = vpop.f32.mrb[42].mxu0 }
0x1559   : > { %v5079_v41 = vpop.f32.mrb[43].mxu0  ;;  %5130 = vmatmul.mubr.msk.f32.vlgmr.msra.gmra.mrb[54].mxu0 %vm898_vm4, %v2876_v51 }
0x155a   : > { %5132 = vmatprep.mubr.msk.f32.mxu0 %vm5792_vm3, %v5793_v15 }
0x155c   : > { %v2881_v42 = vpop.f32.mrb[44].mxu0 }
0x155d   : > { %v5082_v47 = vpop.f32.mrb[45].mxu0  ;;  %5133 = vmatmul.mubr.msk.f32.gmra.mrb[56].mxu0 %vm898_vm4, %v2881_v42 }
0x155e   : > { %5135 = vmatprep.mubr.msk.f32.mxu0 %vm5792_vm3, %v5793_v15 }
0x1560   : > { %v2886_v53 = vpop.f32.mrb[46].mxu0 }
0x1561   : > { %v5085_v54 = vpop.f32.mrb[47].mxu0  ;;  %5136 = vmatmul.mubr.msk.f32.gmra.mrb[58].mxu0 %vm898_vm4, %v2886_v53 }
0x1562   : > { %5159 = vmatprep.mubr.msk.f32.mxu0 %vm5792_vm3, %v5793_v15 }
0x1564   : > { %v3112_v58 = vpop.f32.mrb[48].mxu0 }
0x1565   : > { %v5109_v59 = vpop.f32.mrb[49].mxu0  ;;  %5119 = vmatmul.mubr.msk.f32.vlgmr.msra.gmra.mrb[72].mxu1 %vm898_vm4, %v3112_v58 }
0x1566   : > { %5412 = vmatpush3.bf16.xpose.msk.msra.mxu1 %vm6135_vm5, %v5410_v56  ;;  %5121 = vmatprep.mubr.msk.f32.mxu1 %vm5792_vm3, %v5793_v15 }
0x1567   : > { %5142 = vmatprep.subr.mxu1 %v5793_v15 }
0x1568   : > { %v3117_v61 = vpop.f32.mrb[50].mxu0 }
0x1569   : > { %v5112_v63 = vpop.f32.mrb[51].mxu0  ;;  %5122 = vmatmul.mubr.msk.f32.gmra.mrb[74].mxu1 %vm898_vm4, %v3117_v61 }
0x156a   : > { %5124 = vmatprep.mubr.msk.f32.mxu1 %vm5792_vm3, %v5793_v15 }
0x156c   : > { %v3122_v5 = vpop.f32.mrb[52].mxu0 }
0x156d   : > { %v5115_v11 = vpop.f32.mrb[53].mxu0  ;;  %5125 = vmatmul.mubr.msk.f32.gmra.mrb[76].mxu1 %vm898_vm4, %v3122_v5 }
0x156e   : > { %5143 = vmatpush3.xpose.msk.msra.mxu1 %vm898_vm4, %v3315_v7  ;;  %5144 = vmatprep.mubr.msk.f32.mxu1 %vm5792_vm3, %v5793_v15 }
0x156f   : > { %5168 = vmatprep.subr.mxu1 %v5793_v15 }
0x1571   : > { %5145 = vmatmul.mubr.msk.f32.vlgmr.msra.gmra.mrb[78].mxu1 %vm898_vm4, %v3305_v12 }
0x1572   : > { %5147 = vmatprep.mubr.msk.f32.mxu1 %vm5792_vm3, %v5793_v15  ;;  %5169 = vmatpush3.msra.mxu1 %v4510_v57  ;;  %v6821_v57 = vld [vmem:[%s7040_s8 + $0x1] ss:$0 sm:$0xff] }
0x1573   : > { %5420 = vmatprep.subr.bf16.mxu1 %v5791_v3 }
0x1575   : > { %5148 = vmatmul.mubr.msk.f32.gmra.mrb[80].mxu1 %vm898_vm4, %v3307_v9 }
0x1576   : > { %5150 = vmatprep.mubr.msk.f32.mxu1 %vm5792_vm3, %v5793_v15 }
0x1579   : > { %5151 = vmatmul.mubr.msk.f32.gmra.mrb[82].mxu1 %vm898_vm4, %v3309_v14 }
0x157a   : > { %5170 = vmatprep.mubr.msk.f32.mxu1 %vm5792_vm3, %v5793_v15 }
0x162c   : > { %v3290_v44 = vpop.f32.mrb[54].mxu0 }
0x162d   : > { %v5131_v16 = vpop.f32.mrb[55].mxu0 }
0x1630   : > { %v3295_v17 = vpop.f32.mrb[56].mxu0 }
0x1631   : > { %v5134_v18 = vpop.f32.mrb[57].mxu0 }
0x1634   : > { %v3300_v19 = vpop.f32.mrb[58].mxu0 }
0x1635   : > { %v5137_v20 = vpop.f32.mrb[59].mxu0 }
0x1638   : > { %v3201_v21 = vpop.f32.mrb[72].mxu1 }
0x1639   : > { %v6720_v45 = vadd.f32 %v3290_v44, %v3201_v21  ;;  %v5120_v50 = vpop.f32.mrb[73].mxu1 }
0x163c   : > { %v3206_v46 = vpop.f32.mrb[74].mxu1 }
0x163d   : > { %v6722_v22 = vadd.f32 %v3295_v17, %v3206_v46  ;;  %v5123_v23 = vpop.f32.mrb[75].mxu1 }
0x1640   : > { %v3211_v24 = vpop.f32.mrb[76].mxu1 }
0x1641   : > { %v6724_v25 = vadd.f32 %v3300_v19, %v3211_v24  ;;  %v5126_v26 = vpop.f32.mrb[77].mxu1 }
0x1644   : > { %v3394_v27 = vpop.f32.mrb[78].mxu1 }
0x1645   : > { %v5146_v28 = vpop.f32.mrb[79].mxu1  ;;  %v3408_v55 = vsel %vm991_vm6, %v3394_v27, -inf }
0x1646   : > { %3409 = vmax.xlane.f32.xlu1 %v3408_v55 }
0x1648   : > { %v3399_v29 = vpop.f32.mrb[80].mxu1 }
0x1649   : > { %v5149_v60 = vpop.f32.mrb[81].mxu1  ;;  %v3411_v30 = vsel %vm991_vm6, %v3399_v29, -inf }
0x164a   : > { %3412 = vmax.xlane.f32.xlu0 %v3411_v30 }
0x164c   : > { %v3404_v31 = vpop.f32.mrb[82].mxu1 }
0x164d   : > { %v5152_v32 = vpop.f32.mrb[83].mxu1  ;;  %v3414_v33 = vsel %vm998_vm7, %v3404_v31, -inf }
0x164e   : > { %3415 = vmax.xlane.f32.xlu0 %v3414_v33 }
0x1657   : > { %5579 = vrot.lane.b32.xlu1 %v6577_v6, %s7116_s2 }
0x16d3   : > { %v3410_v62 = vpop.xlane.xlu1 %3409 }
0x16d4   : > { %v3417_v34 = vsub.f32 %v3394_v27, %v3410_v62 }
0x16d6   : > { %v3420_v35 = vmul.f32 1.442695, %v3417_v34 }
0x16d7   : > { %v5580_v0 = vpop.permute.xlu1 %5579  ;;  %v3413_v36 = vpop.xlane.xlu0 %3412 }
0x16d8   : > { %5689 = vpow2.f32 %v3420_v35  ;;  %v5582_v37 = vunpack.i.h.bf16 %v5580_v0  ;;  %v5581_v38 = vunpack.i.l.bf16 %v5580_v0  ;;  %v3418_v39 = vsub.f32 %v3399_v29, %v3413_v36 }
0x16da   : > { %v5414_v48 = vpack.c.bf16 %v5582_v37, %v5581_v38  ;;  %v3422_v40 = vmul.f32 1.442695, %v3418_v39 }
0x16db   : > { %v3416_v51 = vpop.xlane.xlu0 %3415 }
0x16dc   : > { %5691 = vpow2.f32 %v3422_v40  ;;  %v3419_v41 = vsub.f32 %v3404_v31, %v3416_v51  ;;  %5415 = vmatpush3.bf16.msra.mxu0 %v5414_v48 }
0x16dd   : > { %5157 = vmatprep.subr.mxu0 %v5793_v15 }
0x16de   : > { %v3424_v42 = vmul.f32 1.442695, %v3419_v41 }
0x16e0   : > { %5693 = vpow2.f32 %v3424_v42 }
0x16e2   : > { %v5690_v43 = vpop.eup %5689 }
0x16e3   : > { %v3426_v47 = vsel %vm991_vm6, %v5690_v43, 0.0 }
0x16e4   : > { %3427 = vadd.xlane.f32.xlu0 %v3426_v47 }
0x16e6   : > { %v5692_v49 = vpop.eup %5691 }
0x16e7   : > { %v3429_v52 = vsel %vm991_vm6, %v5692_v49, 0.0 }
0x16e8   : > { %3430 = vadd.xlane.f32.xlu1 %v3429_v52 }
0x16ea   : > { %v5694_v53 = vpop.eup %5693 }
0x16eb   : > { %v3432_v54 = vsel %vm998_vm7, %v5694_v53, 0.0 }
0x16ec   : > { %3433 = vadd.xlane.f32.xlu0 %v3432_v54 }
0x16f9   : > { %5584 = vrot.lane.b32.xlu1 %v6577_v6, %s7117_s21 }
0x16fd   : > { %3642 = vrot.lane.b32.xlu1 %v6579_v10, %s7117_s21 }
0x1701   : > { %3632 = vrot.lane.b32.xlu1 %v6571_v1, %s7118_s22 }
0x1702   : > { %3445 = vrot.lane.b32.xlu0 %v6579_v10, %s7116_s2  ;;  %s593_s2 = sand.u32 1, %s5781_s30  }
0x1703   : > { %s594_s23 = scalar_lea.vmem [#allocation2], %s593_s2  ;;  %s4354_s21 = scalar_lea.sflag [#allocation3], %s593_s2 }
0x1704   : > { %s4366_s24 = sshll.u32 %s594_s23, 4  ;;  %s6992_s24 = int_to_ptr.vmem [resolvable:$true] %s4366_s24 }
0x1705   : > { %3773 = vrot.lane.b32.xlu1 %v6579_v10, %s7119_s27 }
0x1771   : > { %v3428_v56 = vpop.xlane.xlu0 %3427 }
0x1772   : > { %5695 = vrcp.f32 %v3428_v56 }
0x1775   : > { %v3431_v58 = vpop.xlane.xlu1 %3430 }
0x1776   : > { %5697 = vrcp.f32 %v3431_v58 }
0x1779   : > { %v3434_v59 = vpop.xlane.xlu0 %3433  ;;  %v5585_v63 = vpop.permute.xlu1 %5584 }
0x177a   : > { %5699 = vrcp.f32 %v3434_v59  ;;  %v5587_v11 = vunpack.i.h.bf16 %v5585_v63  ;;  %v5586_v1 = vunpack.i.l.bf16 %v5585_v63 }
0x177c   : > { %v5696_v61 = vpop.eup %5695  ;;  %v5417_v14 = vpack.c.bf16 %v5587_v11, %v5586_v1 }
0x177d   : > { %v3436_v5 = vmul.f32 %v5696_v61, %v5690_v43  ;;  %v3446_v7 = vpop.permute.xlu0 %3445  ;;  %v3643_v17 = vpop.permute.xlu1 %3642  ;;  %v4511_v43 = vld [vmem:[%s7039_s7 + $0x38] sm:$0xff] }
0x177e   : > { %5158 = vmatpush3.msk.msra.mxu0 %vm1043_vm8, %v3446_v7 }
0x177f   : > { %5160 = vmatmul.mubr.msk.f32.vlgmr.msra.gmra.mrb[60].mxu0 %vm991_vm6, %v3436_v5  ;;  %5416 = vmatprep.subr.bf16.mxu0 %v5791_v3 }
0x1780   : > { %v5698_v12 = vpop.eup %5697  ;;  %5162 = vmatprep.mubr.msk.f32.mxu0 %vm5792_vm3, %v5793_v15 }
0x1781   : > { %v3438_v9 = vmul.f32 %v5698_v12, %v5692_v49  ;;  %v3633_v18 = vpop.permute.xlu1 %3632 }
0x1783   : > { %5163 = vmatmul.mubr.msk.f32.gmra.mrb[62].mxu0 %vm991_vm6, %v3438_v9 }
0x1784   : > { %v5700_v44 = vpop.eup %5699  ;;  %5165 = vmatprep.mubr.msk.f32.mxu0 %vm5792_vm3, %v5793_v15 }
0x1785   : > { %5419 = vmatpush3.bf16.xpose.msk.msra.mxu0 %vm6135_vm5, %v5417_v14  ;;  %v3440_v16 = vmul.f32 %v5700_v44, %v5694_v53 }
0x1786   : > { %5183 = vmatprep.subr.mxu0 %v5793_v15 }
0x1787   : > { %5166 = vmatmul.mubr.msk.f32.gmra.mrb[64].mxu0 %vm991_vm6, %v3440_v16 }
0x1788   : > { %5185 = vmatprep.mubr.msk.f32.mxu0 %vm5792_vm3, %v5793_v15 }
0x178d   : > { %5184 = vmatpush3.xpose.msk.msra.mxu0 %vm898_vm4, %v3643_v17 }
0x178e   : > { %5209 = vmatprep.subr.mxu0 %v5793_v15 }
0x1790   : > { %5186 = vmatmul.mubr.msk.f32.vlgmr.msra.gmra.mrb[66].mxu0 %vm898_vm4, %v3633_v18 }
0x1791   : > { %5188 = vmatprep.mubr.msk.f32.mxu0 %vm5792_vm3, %v5793_v15  ;;  %5210 = vmatpush3.msra.mxu0 %v4511_v43 }
0x1792   : > { %5429 = vmatprep.subr.bf16.mxu0 %v5791_v3 }
0x1852   : > { %v3526_v19 = vpop.f32.mrb[60].mxu0 }
0x1853   : > { %v5161_v20 = vpop.f32.mrb[61].mxu0  ;;  %5171 = vmatmul.mubr.msk.f32.vlgmr.msra.gmra.mrb[84].mxu1 %vm898_vm4, %v3526_v19 }
0x1854   : > { %5173 = vmatprep.mubr.msk.f32.mxu1 %vm5792_vm3, %v5793_v15 }
0x1856   : > { %v3531_v21 = vpop.f32.mrb[62].mxu0 }
0x1857   : > { %v5164_v50 = vpop.f32.mrb[63].mxu0  ;;  %5174 = vmatmul.mubr.msk.f32.gmra.mrb[86].mxu1 %vm898_vm4, %v3531_v21 }
0x1858   : > { %5176 = vmatprep.mubr.msk.f32.mxu1 %vm5792_vm3, %v5793_v15 }
0x185a   : > { %v3536_v46 = vpop.f32.mrb[64].mxu0 }
0x185b   : > { %v5167_v23 = vpop.f32.mrb[65].mxu0  ;;  %5177 = vmatmul.mubr.msk.f32.gmra.mrb[88].mxu1 %vm898_vm4, %v3536_v46 }
0x185c   : > { %5200 = vmatprep.mubr.msk.f32.mxu1 %vm5792_vm3, %v5793_v15 }
0x1863   : > { %v3722_v24 = vpop.f32.mrb[66].mxu0 }
0x1864   : > { %v5187_v26 = vpop.f32.mrb[67].mxu0  ;;  %v3736_v27 = vsel %vm991_vm6, %v3722_v24, -inf }
0x1865   : > { %3737 = vmax.xlane.f32.xlu0 %v3736_v27 }
0x187b   : > { %5589 = vrot.lane.b32.xlu0 %v6577_v6, %s7119_s27  ;;  %v3774_v6 = vpop.permute.xlu1 %3773  ;;  %s4598_s27 = sshll.u32 %s5927_s1, 4  ;;  %s5805_s1 = smov [#allocation2]  }
0x187c   : > { %s6990_s4 = scalar_lea.hbm %s7120_s0, %s4598_s27  ;;  %s5731_s5 = sshll.u32 %s5805_s1, 4  ;;  %s5732_s5 = int_to_ptr.vmem [resolvable:$false] %s5731_s5 }
0x187d   : > { %s5733_s6 = scalar_lea.vmem %s5732_s5, 32  ;;  %p5734_p0 = scmp.lt.s32.totalorder %s6992_s24, %s5732_s5 }
0x187f   : > { %3634 = vrot.lane.b32.xlu0 %v6573_v4, %s7118_s22 }
0x18f2   : > { %v3738_v28 = vpop.xlane.xlu0 %3737 }
0x18f3   : > { %v3745_v55 = vsub.f32 %v3722_v24, %v3738_v28 }
0x18f5   : > { %v3748_v29 = vmul.f32 1.442695, %v3745_v55 }
0x18f6   : > { %v5590_v60 = vpop.permute.xlu0 %5589 }
0x18f7   : > { %5701 = vpow2.f32 %v3748_v29  ;;  %v5592_v30 = vunpack.i.h.bf16 %v5590_v60  ;;  %v5591_v31 = vunpack.i.l.bf16 %v5590_v60  ;;  %v4570_v60 = vld [vmem:[%s7043_s11 + $0x20] sm:$0xff] }
0x18f9   : > { %v5421_v32 = vpack.c.bf16 %v5592_v30, %v5591_v31  ;;  %v4571_v30 = vld [vmem:[%s7043_s11 + $0x28] sm:$0xff] }
0x18fa   : > { %v3635_v33 = vpop.permute.xlu0 %3634  ;;  %v5424_v31 = vpack.c.bf16 %v4571_v30, %v4570_v60  ;;  %v6936_v60 = vld [vmem:[%s7044_s12 + $0x1] ss:$0 sm:$0xff] }
0x18fb   : > { %5189 = vmatmul.mubr.msk.f32.gmra.mrb[68].mxu0 %vm898_vm4, %v3635_v33  ;;  %5422 = vmatpush3.bf16.msra.mxu1 %v5421_v32  ;;  %v4572_v32 = vld [vmem:[%s7043_s11 + $0x30] sm:$0xff]  ;;  %v4573_v33 = vld [vmem:[%s7043_s11 + $0x38] sm:$0xff] }
0x18fc   : > { %5198 = vmatprep.subr.mxu1 %v5793_v15  ;;  %5191 = vmatprep.mubr.msk.f32.mxu0 %vm5792_vm3, %v5793_v15 }
0x18ff   : > { %5199 = vmatpush3.msk.msra.mxu1 %vm1043_vm8, %v3774_v6  ;;  %v5427_v6 = vpack.c.bf16 %v4573_v33, %v4572_v32 }
0x1900   : > { %5423 = vmatprep.subr.bf16.mxu1 %v5791_v3 }
0x1901   : > { %v5702_v4 = vpop.eup %5701 }
0x1902   : > { %v3754_v62 = vsel %vm991_vm6, %v5702_v4, 0.0 }
0x1903   : > { %3755 = vadd.xlane.f32.xlu1 %v3754_v62 }
0x1914   : > { %3636 = vrot.lane.b32.xlu1 %v6579_v10, %s7118_s22  ;;  %s5727_s22 = scalar_lea.vmem %s6992_s24, 16 }
0x1915   : > { %p5728_p11 = scmp.ne.s32.totalorder %s6992_s24, %s5727_s22  ;;  %p5735_p1 = scmp.lt.s32.totalorder %s5733_s6, %s5727_s22 }
0x1917   : > { %p5729_p12 = pnand %p5728_p11, %p5944_p5  ;;  %p5736_p2 = por %p5735_p1, %p5734_p0 }
0x1919   : > { %p5730_p13 = pneg %p5729_p12 }
0x191b   : > { %p5737_p3 = pnand %p5736_p2, %p5730_p13 }
0x1926   : > { %v3615_v34 = vpop.f32.mrb[84].mxu1 }
0x1927   : > { %v3629_v35 = vadd.f32 %v3615_v34, %v6720_v45  ;;  %v5172_v0 = vpop.f32.mrb[85].mxu1 }
0x192a   : > { %v3620_v36 = vpop.f32.mrb[86].mxu1 }
0x192b   : > { %v6793_v37 = vadd.f32 %v3620_v36, %v6722_v22  ;;  %v5175_v38 = vpop.f32.mrb[87].mxu1 }
0x192c   : > { %v6857_v38 = vld [vmem:[%s7041_s9 + $0x1] ss:$0 sm:$0xff] }
0x192e   : > { %v3625_v39 = vpop.f32.mrb[88].mxu1 }
0x192f   : > { %v6796_v48 = vadd.f32 %v3625_v39, %v6724_v25  ;;  %v5178_v40 = vpop.f32.mrb[89].mxu1 }
0x1930   : > { %v6862_v40 = vld [vmem:[%s7042_s10 + $0x1] ss:$0 sm:$0xff] }
0x1990   : > { %v3756_v51 = vpop.xlane.xlu1 %3755 }
0x1991   : > { %5703 = vrcp.f32 %v3756_v51 }
0x1994   : > { %v3637_v41 = vpop.permute.xlu1 %3636 }
0x1995   : > { %5192 = vmatmul.mubr.msk.f32.gmra.mrb[70].mxu0 %vm898_vm4, %v3637_v41 }
0x1996   : > { %5211 = vmatprep.mubr.msk.f32.mxu0 %vm5792_vm3, %v5793_v15 }
0x199b   : > { %v5704_v10 = vpop.eup %5703 }
0x199c   : > { %v3764_v45 = vmul.f32 %v5704_v10, %v5702_v4 }
0x199e   : > { %5201 = vmatmul.mubr.msk.f32.vlgmr.msra.gmra.mrb[90].mxu1 %vm991_vm6, %v3764_v45 }
0x199f   : > { %5203 = vmatprep.mubr.msk.f32.mxu1 %vm5792_vm3, %v5793_v15  ;;  %5425 = vmatpush3.bf16.msra.mxu1 %v5424_v31 }
0x19a0   : > { %5426 = vmatprep.subr.bf16.mxu1 %v5791_v3 }
0x19a3   : > { %5428 = vmatpush3.bf16.msra.mxu1 %v5427_v6 }
0x19a4   : > { %5453 = vmatprep.subr.bf16.mxu1 %v5791_v3 }
0x19ce   : > { %v3727_v22 = vpop.f32.mrb[68].mxu0 }
0x19cf   : > { %v5190_v42 = vpop.f32.mrb[69].mxu0  ;;  %v3739_v25 = vsel %vm991_vm6, %v3727_v22, -inf }
0x19d0   : > { %3740 = vmax.xlane.f32.xlu0 %v3739_v25 }
0x1a5d   : > { %v3741_v47 = vpop.xlane.xlu0 %3740 }
0x1a5e   : > { %v3746_v49 = vsub.f32 %v3727_v22, %v3741_v47  ;;  %v4579_v47 = vld [vmem:[%s7045_s13 + $0x80] sm:$0xff] }
0x1a60   : > { %v3750_v52 = vmul.f32 1.442695, %v3746_v49  ;;  %v4580_v49 = vld [vmem:[%s7045_s13 + $0x88] sm:$0xff] }
0x1a62   : > { %5705 = vpow2.f32 %v3750_v52  ;;  %v5430_v52 = vpack.c.bf16 %v4580_v49, %v4579_v47 }
0x1a68   : > { %v3732_v53 = vpop.f32.mrb[70].mxu0 }
0x1a69   : > { %v5193_v54 = vpop.f32.mrb[71].mxu0  ;;  %v3742_v56 = vsel %vm998_vm7, %v3732_v53, -inf }
0x1a6a   : > { %3743 = vmax.xlane.f32.xlu1 %v3742_v56  ;;  %v4583_v54 = vld [vmem:[%s7045_s13 + $0xa0] sm:$0xff]  ;;  %v4584_v56 = vld [vmem:[%s7045_s13 + $0xa8] sm:$0xff] }
0x1a6c   : > { %v5706_v58 = vpop.eup %5705 }
0x1a6d   : > { %v3757_v59 = vsel %vm991_vm6, %v5706_v58, 0.0 }
0x1a6e   : > { %3758 = vadd.xlane.f32.xlu0 %v3757_v59  ;;  %v4585_v59 = vld [vmem:[%s7045_s13 + $0xb0] sm:$0xff] }
0x1a71   : > { %v3854_v61 = vpop.f32.mrb[90].mxu1 }
0x1a72   : > { %v5202_v63 = vpop.f32.mrb[91].mxu1  ;;  %5212 = vmatmul.mubr.msk.f32.vlgmr.msra.gmra.mrb[72].mxu0 %vm898_vm4, %v3854_v61  ;;  %v4586_v61 = vld [vmem:[%s7045_s13 + $0xb8] sm:$0xff] }
0x1a73   : > { %5214 = vmatprep.mubr.msk.f32.mxu0 %vm5792_vm3, %v5793_v15  ;;  %5431 = vmatpush3.bf16.msra.mxu0 %v5430_v52  ;;  %v5439_v63 = vpack.c.bf16 %v4586_v61, %v4585_v59 }
0x1a74   : > { %5432 = vmatprep.subr.bf16.mxu0 %v5791_v3 }
0x1af7   : > { %v3744_v5 = vpop.xlane.xlu1 %3743 }
0x1af8   : > { %v3747_v7 = vsub.f32 %v3732_v53, %v3744_v5  ;;  %v4587_v5 = vld [vmem:[%s7045_s13 + $0xc0] sm:$0xff] }
0x1afa   : > { %v3752_v11 = vmul.f32 1.442695, %v3747_v7  ;;  %v4588_v7 = vld [vmem:[%s7045_s13 + $0xc8] sm:$0xff] }
0x1afb   : > { %v3759_v1 = vpop.xlane.xlu0 %3758 }
0x1afc   : > { %5707 = vpow2.f32 %v3752_v11  ;;  %v5442_v11 = vpack.c.bf16 %v4588_v7, %v4587_v5 }
0x1afd   : > { %5709 = vrcp.f32 %v3759_v1  ;;  %v4589_v1 = vld [vmem:[%s7045_s13 + $0xd0] sm:$0xff] }
0x1b06   : > { %v5708_v12 = vpop.eup %5707 }
0x1b07   : > { %v5710_v9 = vpop.eup %5709  ;;  %v3760_v14 = vsel %vm998_vm7, %v5708_v12, 0.0 }
0x1b08   : > { %3761 = vadd.xlane.f32.xlu0 %v3760_v14  ;;  %v3766_v44 = vmul.f32 %v5710_v9, %v5706_v58  ;;  %v5436_v58 = vpack.c.bf16 %v4584_v56, %v4583_v54  ;;  %v4591_v14 = vld [vmem:[%s7045_s13 + $0xe0] sm:$0xff] }
0x1b0a   : > { %5204 = vmatmul.mubr.msk.f32.gmra.mrb[92].mxu1 %vm991_vm6, %v3766_v44  ;;  %v4592_v44 = vld [vmem:[%s7045_s13 + $0xe8] sm:$0xff] }
0x1b0b   : > { %5206 = vmatprep.mubr.msk.f32.mxu1 %vm5792_vm3, %v5793_v15 }
0x1b45   : > { %v3943_v16 = vpop.f32.mrb[72].mxu0 }
0x1b46   : > { %v3957_v17 = vadd.f32 %v3943_v16, %v3629_v35  ;;  %v5213_v18 = vpop.f32.mrb[73].mxu0  ;;  %v5448_v16 = vpack.c.bf16 %v4592_v44, %v4591_v14 }
0x1b47   : > { %v4594_v18 = vld [vmem:[%s7045_s13 + $0xf8] sm:$0xff] }
0x1b48   : > { %v3960_v19 = vadd.f32 %v3957_v17, %v6519_v2  ;;  %v4593_v17 = vld [vmem:[%s7045_s13 + $0xf0] sm:$0xff] }
0x1b4a   : > { %v6825_v20 = vadd.f32 %v6821_v57, %v3960_v19  ;;  %v5451_v19 = vpack.c.bf16 %v4594_v18, %v4593_v17  ;;  %v4274_v17 = vld [vmem:[%s7049_s17 + $0x8] sm:$0xff] }
0x1b4c   : > { %v3978_v21 = vsel %vm725_vm1, %v6825_v20, 0.0 }
0x1b4d   : > { %3979 = vadd.xlane.f32.xlu0 %v3978_v21 }
0x1b95   : > { %v3762_v50 = vpop.xlane.xlu0 %3761 }
0x1b96   : > { %5711 = vrcp.f32 %v3762_v50 }
0x1ba0   : > { %v5712_v46 = vpop.eup %5711 }
0x1ba1   : > { %v3768_v23 = vmul.f32 %v5712_v46, %v5708_v12  ;;  %v4590_v12 = vld [vmem:[%s7045_s13 + $0xd8] sm:$0xff] }
0x1ba2   : > { %v5445_v9 = vpack.c.bf16 %v4590_v12, %v4589_v1 }
0x1ba3   : > { %5207 = vmatmul.mubr.msk.f32.gmra.mrb[94].mxu1 %vm991_vm6, %v3768_v23 }
0x1ba4   : > { %5228 = vmatprep.mubr.msk.f32.mxu1 %vm5792_vm3, %v5793_v15 }
0x1bda   : > { %v3980_v24 = vpop.xlane.xlu0 %3979 }
0x1bdb   : > { %v3987_v26 = vmul.f32 0.03125, %v3980_v24 }
0x1bdd   : > { %v3990_v2 = vsub.f32 %v6825_v20, %v3987_v26  ;;  %v3859_v27 = vpop.f32.mrb[92].mxu1 }
0x1bde   : > { %v5205_v28 = vpop.f32.mrb[93].mxu1  ;;  %5215 = vmatmul.mubr.msk.f32.gmra.mrb[74].mxu0 %vm898_vm4, %v3859_v27 }
0x1bdf   : > { %v3993_v55 = vmul.f32 %v3990_v2, %v3990_v2  ;;  %5217 = vmatprep.mubr.msk.f32.mxu0 %vm5792_vm3, %v5793_v15 }
0x1be1   : > { %v3996_v29 = vsel %vm725_vm1, %v3993_v55, 0.0 }
0x1be2   : > { %3997 = vadd.xlane.f32.xlu1 %v3996_v29 }
0x1c6f   : > { %v3998_v4 = vpop.xlane.xlu1 %3997 }
0x1c70   : > { %v4005_v62 = vmul.f32 0.03125, %v3998_v4 }
0x1c72   : > { %v4008_v34 = vadd.f32 1e-06, %v4005_v62 }
0x1c74   : > { %5713 = vrsqrt.f32 %v4008_v34 }
0x1c76   : > { %v3864_v35 = vpop.f32.mrb[94].mxu1 }
0x1c77   : > { %v5208_v0 = vpop.f32.mrb[95].mxu1  ;;  %5218 = vmatmul.mubr.msk.f32.gmra.mrb[76].mxu0 %vm898_vm4, %v3864_v35 }
0x1c78   : > { %5269 = vmatprep.mubr.msk.f32.mxu0 %vm5792_vm3, %v5793_v15 }
0x1c7e   : > { %v5714_v36 = vpop.eup %5713 }
0x1c7f   : > { %v4014_v39 = vmul.f32 %v5714_v36, %v3990_v2 }
0x1c81   : > { %v4023_v51 = vmul.f32 %v6857_v38, %v4014_v39 }
0x1c83   : > { %v4032_v41 = vadd.f32 %v6862_v40, %v4023_v51 }
0x1c85   : > { %5229 = vmatmul.mubr.msk.f32.vlgmr.msra.gmra.mrb[96].mxu1 %vm725_vm1, %v4032_v41 }
0x1c86   : > { %5231 = vmatprep.mubr.msk.f32.mxu1 %vm5792_vm3, %v5793_v15 }
0x1cb1   : > { %v3948_v10 = vpop.f32.mrb[74].mxu0 }
0x1cb2   : > { %v3958_v45 = vadd.f32 %v3948_v10, %v6793_v37  ;;  %v5216_v22 = vpop.f32.mrb[75].mxu0  ;;  %v4581_v37 = vld [vmem:[%s7045_s13 + $0x90] sm:$0xff] }
0x1cb4   : > { %v3961_v42 = vadd.f32 %v3958_v45, %v6524_v8  ;;  %v4582_v8 = vld [vmem:[%s7045_s13 + $0x98] sm:$0xff] }
0x1cb5   : > { %v5433_v53 = vpack.c.bf16 %v4582_v8, %v4581_v37 }
0x1cb6   : > { %v3972_v25 = vadd.f32 %v6821_v57, %v3961_v42  ;;  %v4596_v42 = vld [vmem:[%s7046_s14 + $0x1] ss:$0 sm:$0xff] }
0x1cb7   : > { %5434 = vmatpush3.bf16.msra.mxu0 %v5433_v53 }
0x1cb8   : > { %v3981_v43 = vsel %vm725_vm1, %v3972_v25, 0.0  ;;  %5435 = vmatprep.subr.bf16.mxu0 %v5791_v3 }
0x1cb9   : > { %3982 = vadd.xlane.f32.xlu0 %v3981_v43 }
0x1cbb   : > { %5437 = vmatpush3.bf16.msra.mxu0 %v5436_v58 }
0x1cbc   : > { %5438 = vmatprep.subr.bf16.mxu0 %v5791_v3 }
0x1cbf   : > { %5440 = vmatpush3.bf16.msra.mxu0 %v5439_v63 }
0x1cc0   : > { %5441 = vmatprep.subr.bf16.mxu0 %v5791_v3 }
0x1cc3   : > { %5443 = vmatpush3.bf16.msra.mxu0 %v5442_v11 }
0x1cc4   : > { %5444 = vmatprep.subr.bf16.mxu0 %v5791_v3 }
0x1cc7   : > { %5446 = vmatpush3.bf16.msra.mxu0 %v5445_v9 }
0x1cc8   : > { %5447 = vmatprep.subr.bf16.mxu0 %v5791_v3 }
0x1ccb   : > { %5449 = vmatpush3.bf16.msra.mxu0 %v5448_v16  ;;  %v4273_v16 = vld [vmem:[%s7049_s17] sm:$0xff] }
0x1ccc   : > { %5450 = vmatprep.subr.bf16.mxu0 %v5791_v3  ;;  %v5454_v18 = vpack.c.bf16 %v4274_v17, %v4273_v16 }
0x1cce   : > { %5455 = vmatpush3.bf16.msra.mxu1 %v5454_v18 }
0x1ccf   : > { %5452 = vmatpush3.bf16.msra.mxu0 %v5451_v19  ;;  %5456 = vmatprep.subr.bf16.mxu1 %v5791_v3  ;;  %v4275_v19 = vld [vmem:[%s7049_s17 + $0x10] sm:$0xff] }
0x1d46   : > { %v3983_v21 = vpop.xlane.xlu0 %3982 }
0x1d47   : > { %v3988_v50 = vmul.f32 0.03125, %v3983_v21 }
0x1d49   : > { %v3991_v46 = vsub.f32 %v3972_v25, %v3988_v50 }
0x1d4a   : > { %v3953_v23 = vpop.f32.mrb[76].mxu0 }
0x1d4b   : > { %v3959_v24 = vadd.f32 %v3953_v23, %v6796_v48  ;;  %v5219_v26 = vpop.f32.mrb[77].mxu0  ;;  %v3994_v2 = vmul.f32 %v3991_v46, %v3991_v46 }
0x1d4d   : > { %v3962_v27 = vadd.f32 %v3959_v24, %v6529_v13  ;;  %v3999_v28 = vsel %vm725_vm1, %v3994_v2, 0.0 }
0x1d4e   : > { %4000 = vadd.xlane.f32.xlu0 %v3999_v28 }
0x1d4f   : > { %v3973_v55 = vadd.f32 %v6821_v57, %v3962_v27 }
0x1d51   : > { %v3984_v29 = vsel %vm732_vm2, %v3973_v55, 0.0 }
0x1d52   : > { %3985 = vadd.xlane.f32.xlu1 %v3984_v29 }
0x1d58   : > { %v4123_v30 = vpop.f32.mrb[96].mxu1 }
0x1d59   : > { %v4124_v48 = vadd.f32 %v6936_v60, %v4123_v30  ;;  %v5230_v31 = vpop.f32.mrb[97].mxu1 }
0x1d5a   : > { %v4257_v31 = vld [vmem:[%s7048_s16] sm:$0x1] }
0x1d5b   : > { %v4140_v32 = vmul.f32 0.70710677, %v4124_v48  ;;  %v4137_v33 = vmul.f32 0.5, %v4124_v48  ;;  %v4256_v48 = vld [vmem:[%s7047_s15] sm:$0x1] }
0x1d5d   : > { %5715 = verf.f32 %v4140_v32 }
0x1d67   : > { %v5716_v13 = vpop.eup %5715 }
0x1d68   : > { %v4146_v6 = vadd.f32 1.0, %v5716_v13 }
0x1d6a   : > { %v4149_v4 = vmul.f32 %v4146_v6, %v4137_v33 }
0x1d6c   : > { %5270 = vmatmul.mubr.f32.vlgmr.msra.gmra.mrb[78].mxu0 %v4149_v4 }
0x1d6d   : > { %5272 = vmatprep.mubr.msk.f32.mxu0 %vm5792_vm3, %v5793_v15 }
0x1ddb   : > { %v4001_v57 = vpop.xlane.xlu0 %4000 }
0x1ddc   : > { %v4006_v62 = vmul.f32 0.03125, %v4001_v57 }
0x1dde   : > { %v4009_v34 = vadd.f32 1e-06, %v4006_v62  ;;  %v4277_v62 = vld [vmem:[%s7050_s18] sm:$0x1] }
0x1ddf   : > { %v3986_v35 = vpop.xlane.xlu1 %3985 }
0x1de0   : > { %5717 = vrsqrt.f32 %v4009_v34  ;;  %v3989_v0 = vmul.f32 0.03125, %v3986_v35 }
0x1de2   : > { %v3992_v36 = vsub.f32 %v3973_v55, %v3989_v0 }
0x1de4   : > { %v3995_v39 = vmul.f32 %v3992_v36, %v3992_v36 }
0x1de6   : > { %v4002_v51 = vsel %vm732_vm2, %v3995_v39, 0.0 }
0x1de7   : > { %4003 = vadd.xlane.f32.xlu1 %v4002_v51 }
0x1dea   : > { %v5718_v41 = vpop.eup %5717 }
0x1deb   : > { %v4015_v10 = vmul.f32 %v5718_v41, %v3991_v46 }
0x1ded   : > { %v4024_v45 = vmul.f32 %v6857_v38, %v4015_v10 }
0x1def   : > { %v4033_v22 = vadd.f32 %v6862_v40, %v4024_v45 }
0x1df1   : > { %5232 = vmatmul.mubr.msk.f32.gmra.mrb[98].mxu1 %vm725_vm1, %v4033_v22 }
0x1df2   : > { %5234 = vmatprep.mubr.msk.f32.mxu1 %vm5792_vm3, %v5793_v15 }
0x1e3f   : > { %v4243_v25 = vpop.f32.mrb[78].mxu0 }
0x1e40   : > { %v4244_v43 = vadd.f32 %v4596_v42, %v4243_v25  ;;  %v5271_v47 = vpop.f32.mrb[79].mxu0 }
0x1e42   : > { %v4255_v49 = vadd.f32 %v4244_v43, %v6825_v20 }
0x1e44   : > { %v4258_v52 = vsel %vm732_vm2, %v4255_v49, 0.0 }
0x1e45   : > { %4259 = vadd.xlane.f32.xlu0 %v4258_v52 }
0x1e74   : > { %v4004_v37 = vpop.xlane.xlu1 %4003 }
0x1e75   : > { %v4007_v8 = vmul.f32 0.03125, %v4004_v37 }
0x1e77   : > { %v4010_v53 = vadd.f32 1e-06, %v4007_v8 }
0x1e79   : > { %5719 = vrsqrt.f32 %v4010_v53 }
0x1e83   : > { %v5720_v54 = vpop.eup %5719 }
0x1e84   : > { %v4016_v56 = vmul.f32 %v5720_v54, %v3992_v36 }
0x1e86   : > { %v4025_v58 = vmul.f32 %v6857_v38, %v4016_v56 }
0x1e88   : > { %v4034_v59 = vadd.f32 %v6862_v40, %v4025_v58 }
0x1e8a   : > { %5235 = vmatmul.mubr.msk.f32.gmra.mrb[100].mxu1 %vm725_vm1, %v4034_v59 }
0x1e8b   : > { %5286 = vmatprep.mubr.msk.f32.mxu1 %vm5792_vm3, %v5793_v15 }
0x1ec4   : > { %v4128_v61 = vpop.f32.mrb[98].mxu1 }
0x1ec5   : > { %v4129_v20 = vadd.f32 %v6936_v60, %v4128_v61  ;;  %v5233_v63 = vpop.f32.mrb[99].mxu1 }
0x1ec7   : > { %v4141_v5 = vmul.f32 0.70710677, %v4129_v20  ;;  %v4138_v12 = vmul.f32 0.5, %v4129_v20 }
0x1ec9   : > { %5721 = verf.f32 %v4141_v5 }
0x1ed2   : > { %v4260_v7 = vpop.xlane.xlu0 %4259 }
0x1ed3   : > { %v5722_v11 = vpop.eup %5721  ;;  %v4261_v1 = vmul.f32 0.03125, %v4260_v7 }
0x1ed4   : > { %v4147_v9 = vadd.f32 1.0, %v5722_v11 }
0x1ed5   : > { %v4262_v14 = vsub.f32 %v4255_v49, %v4261_v1 }
0x1ed6   : > { %v4150_v38 = vmul.f32 %v4147_v9, %v4138_v12 }
0x1ed7   : > { %v4263_v44 = vmul.f32 %v4262_v14, %v4262_v14 }
0x1ed8   : > { %5273 = vmatmul.mubr.f32.gmra.mrb[80].mxu0 %v4150_v38 }
0x1ed9   : > { %v4264_v40 = vsel %vm732_vm2, %v4263_v44, 0.0  ;;  %5275 = vmatprep.mubr.msk.f32.mxu0 %vm5792_vm3, %v5793_v15  ;;  %v4276_v15 = vld [vmem:[%s7049_s17 + $0x18] sm:$0xff] }
0x1eda   : > { %4265 = vadd.xlane.f32.xlu1 %v4264_v40  ;;  %v5457_v21 = vpack.c.bf16 %v4276_v15, %v4275_v19 }
0x1edc   : > { %5458 = vmatpush3.bf16.msra.mxu1 %v5457_v21 }
0x1f5d   : > { %v4133_v50 = vpop.f32.mrb[100].mxu1 }
0x1f5e   : > { %v4134_v46 = vadd.f32 %v6936_v60, %v4133_v50  ;;  %v5236_v23 = vpop.f32.mrb[101].mxu1 }
0x1f60   : > { %v4142_v24 = vmul.f32 0.70710677, %v4134_v46  ;;  %v4139_v28 = vmul.f32 0.5, %v4134_v46 }
0x1f62   : > { %5723 = verf.f32 %v4142_v24 }
0x1f67   : > { %v4266_v26 = vpop.xlane.xlu1 %4265 }
0x1f68   : > { %v4267_v2 = vmul.f32 0.03125, %v4266_v26 }
0x1f6a   : > { %v4268_v27 = vadd.f32 1e-06, %v4267_v2 }
0x1f6c   : > { %v5724_v3 = vpop.eup %5723  ;;  %5725 = vrsqrt.f32 %v4268_v27 }
0x1f6d   : > { %v4148_v55 = vadd.f32 1.0, %v5724_v3 }
0x1f6f   : > { %v4151_v29 = vmul.f32 %v4148_v55, %v4139_v28 }
0x1f71   : > { %5276 = vmatmul.mubr.f32.gmra.mrb[82].mxu0 %v4151_v29 }
0x1f76   : > { %v5726_v30 = vpop.eup %5725 }
0x1f77   : > { %v4270_v60 = vmul.f32 %v5726_v30, %v4262_v14 }
0x1f79   : > { %v4271_v32 = vmul.f32 %v4270_v60, %v4256_v48 }
0x1f7b   : > { %v4272_v13 = vadd.f32 %v4271_v32, %v4257_v31 }
0x1f7d   : > { %5287 = vmatmul.mubr.msk.f32.vlgmr.msra.gmra.mrb[102].mxu1 %vm725_vm1, %v4272_v13 }
0x1fab   : > { %v4248_v33 = vpop.f32.mrb[80].mxu0 }
0x1fac   : > { %v5274_v6 = vpop.f32.mrb[81].mxu0 }
0x2044   : > { %v4252_v4 = vpop.f32.mrb[82].mxu0 }
0x2045   : > { %v5277_v57 = vpop.f32.mrb[83].mxu0 }
0x2050   : > { %v4347_v34 = vpop.f32.mrb[102].mxu1 }
0x2051   : > { %v4348_v35 = vadd.f32 %v4347_v34, %v4277_v62  ;;  %v5288_v0 = vpop.f32.mrb[103].mxu1 }
0x2053   : > { %4352 = vst.msk [vmem:[%s594_s23] sm:$0x1] %vm4351_vm9, %v4348_v35 }
0x2054   : > { %5740 = shalt.err (!%p5737_p3)
}
0x2055   : > { %s5741_s2 = scalar_lea.hbm %s6990_s4, 16  ;;  %s5745_s20 = scalar_lea.hbm %s7121_s25, 32 }
0x2056   : > { %p5742_p4 = scmp.ne.s32.totalorder %s6990_s4, %s5741_s2  ;;  %p5746_p9 = scmp.lt.u32.totalorder %s6990_s4, %s7121_s25 }
0x2057   : > { %p5747_p10 = scmp.lt.u32.totalorder %s5745_s20, %s5741_s2  ;;  %p5749_p12 = scmp.lt.u32.totalorder %s5741_s2, %s6990_s4 }
0x2058   : > { %p5743_p7 = pnand %p5742_p4, %p5944_p5 }
0x2059   : > { %p5748_p11 = por %p5747_p10, %p5746_p9 }
0x205a   : > { %p5744_p8 = pneg %p5743_p7 }
0x205b   : > { %p5750_p13 = por %p5749_p12, %p5748_p11 }
0x205d   : > { %p5751_p0 = pnand %p5750_p13, %p5744_p8 }
0x205f   : > { %5754 = shalt.err (!%p5751_p0)
}
0x2060   : > { %5460 = dma.vmem_to_hbm [thread:$0]  (%p5944_p5), %s6992_s24, 16, %s6990_s4, %s4354_s21  }
0x2061 PF: > { %s7122_s6 = sld [smem:[#allocation7_spill]]  ;;  %s7123_s0 = sld [smem:[#allocation5_spill]] }
0x2067   : > { %p5466_p1 = scmp.ge.s32.totalorder %s7122_s6, 2  ;;  %s4378_s1 = sand.u32 1, %s7123_s0  }
0x2068   : > { %s4379_s27 = scalar_lea.sflag [#allocation3], %s4378_s1 }
0x2069   : > { %p5463_p2 = pnand %p5466_p1, %p5948_p6 }
0x206b   : > { %5772 = dma.done.wait (!%p5463_p2), %s4379_s27, 16  }
0x206c   : > { %5774 = vsyncadd (!%p5463_p2), %s4379_s27, 4294967280  ;;  %s7125_s21 = sld [smem:[#allocation8_spill]]  ;;  %s7126_s2 = sld [smem:[#allocation6_spill]] }
0x206d   : > { %s7127_s20 = sld [smem:[#allocation9_spill]]  ;;  %s7128_s0 = smov %s5781_s30 }
0x2072   : > { %p29_p3 = scmp.ge.s32.totalorder %s7125_s21, 4   ;;  %s7129_s30 = smov %s7126_s2 }
0x2074   :  { %31 = sbr.rel (!%p29_p3) target bundleno = 12 (0xc), region = 143 }
0x207b   :  { %4383 = vsyncpa [#allocation3], 1 }
0x207c   :  { %4385 = vsyncpa [#allocation3 + $0x1], 1 }

</bundles_post_ra>
